<compile_context>
chip_gen: v6e
topology: v6e:2x2x1
jax: 0.10.0
libtpu: 0.0.40
codegen_flags: <defaults>
</compile_context>

<pallas_src>
import functools

import jax
import jax.numpy as jnp
from jax import lax
from jax.experimental import pallas as pl
from jax.experimental.pallas import tpu as pltpu


B_BLK = 8  # sequences per grid step: fills the 8 sublanes of each vreg


def _round_up(n, m):
    return ((n + m - 1) // m) * m


def _id_at_lstm_kernel(
    # per-batch inputs
    x_ref, lu_ref, asp_ref,
    # LSTM (+ folded policy) weights
    w_ih_ref, w_hh_ref, b_lstm_ref, dwc_ref,
    # attention / output-head weights
    wh_w_ref, wh_b_ref, wv_w_ref, wv_b_ref,
    wA_ref, wB_ref, w_b_ref,
    wp_w_ref, wp_b_ref, wx_w_ref, wx_b_ref,
    dec_w_ref, dec_b_ref,
    # output
    out_ref,
    # scratch
    outbuf_sc,
    *, hidden_size, hidden_pad, out_size,
):
    H, Hp, O = hidden_size, hidden_pad, out_size
    T, B, I = x_ref.shape
    f32 = jnp.float32

    # ---- hoisted x-dependent gate pre-activations for ALL (t, b): one MXU matmul ----
    # (T, B, I) -> (T*B, I) is a layout-trivial reshape (B is the sublane dim).
    x_all = x_ref[...].reshape(T * B, I)
    xg = (jnp.dot(x_all, w_ih_ref[...], preferred_element_type=f32)
          + b_lstm_ref[...])                                    # (T*B, 4*Hp), f32 (one-time)

    # lane H carries the per-row retain flag inside the lane-dense output row
    lane = lax.broadcasted_iota(jnp.int32, (1, Hp), 1)
    is_flag = lane == H
    # row 0 of the retained-output buffer: initial hidden state (zeros), flag = 1
    outbuf_sc[0] = jnp.broadcast_to(
        jnp.where(is_flag, 1.0, 0.0).astype(f32), (B, Hp))

    dwc = dwc_ref[...]                                          # (1, Hp) loop-invariant

    ht = jnp.zeros((B, Hp), f32)
    ct = jnp.zeros((B, Hp), f32)

    # Statically unrolled recurrence (T is small and static).
    for t in range(T):
        xg_t = xg[t * B:(t + 1) * B, :]                         # (B, 4*Hp) static, aligned slice

        # serial recurrent dot on the MXU in bf16 (single pass), f32 accumulate
        gates = xg_t + jnp.dot(ht.astype(jnp.bfloat16), w_hh_ref[...],
                               preferred_element_type=f32)      # (B, 4*Hp)

        # policy: keep (action 1) iff logit(u) >= l0 - l1
        # (x.dwx + db + ht.dwh) rides in lane H of the i-gate block (folded into
        # w_ih / w_hh / bias); only ct.dwc needs an explicit lane reduce.
        s = jnp.sum(ct * dwc, axis=1, keepdims=True) + gates[:, H:H + 1]   # (B, 1)
        act = lu_ref[t] >= s                                    # (B, 1) bool
        act_f = act.astype(f32)

        # LSTMCell step (gate order i, f, g, o); each gate is a full Hp lane block.
        i_g = jax.nn.sigmoid(gates[:, 0:Hp])
        f_g = jax.nn.sigmoid(gates[:, Hp:2 * Hp])
        g_g = jnp.tanh(gates[:, 2 * Hp:3 * Hp])
        o_g = jax.nn.sigmoid(gates[:, 3 * Hp:4 * Hp])
        ct_new = f_g * ct + i_g * g_g
        ht_new = o_g * jnp.tanh(ct_new)

        ht = jnp.where(act, ht_new, ht)
        ct = jnp.where(act, ct_new, ct)

        # single lane-dense (B, Hp) store: ht plus the retain flag in lane H
        outbuf_sc[t + 1] = jnp.where(is_flag, act_f, ht)

    hidden = ht                                                 # final hidden state (B, Hp)

    # ---- attention over retained rows (masked softmax over the time axis) ----
    out_all = outbuf_sc[...]                                    # (T+1, B, Hp)
    out2d = out_all.reshape((T + 1) * B, Hp)                    # layout-trivial
    mask3 = out_all[:, :, H:H + 1]                              # (T+1, B, 1) retain flags

    wh_out = (jnp.dot(out2d, wh_w_ref[...], preferred_element_type=f32)
              + wh_b_ref[...])                                  # ((T+1)*B, Hp)
    sc = jnp.dot(jnp.tanh(wh_out), wA_ref[...],
                 preferred_element_type=f32)                    # ((T+1)*B, 1)
    sc3 = sc.reshape(T + 1, B, 1)                               # layout-trivial

    # aspect branch: w([A, B]) = A @ wA + B @ wB + b. The B-part is constant over the
    # softmax axis (cancels exactly), computed anyway for fidelity.
    wv_asp = (jnp.dot(asp_ref[...], wv_w_ref[...], preferred_element_type=f32)
              + wv_b_ref[...])                                  # (B, I)
    asp_term = (jnp.dot(jnp.tanh(wv_asp), wB_ref[...], preferred_element_type=f32)
                + w_b_ref[...])                                 # (B, 1)

    scores = jnp.where(mask3 > 0.5, sc3 + asp_term, jnp.float32(-1e30))
    smax = jnp.max(scores, axis=0, keepdims=True)               # (1, B, 1)
    es = jnp.exp(scores - smax) * mask3
    denom = jnp.sum(es, axis=0, keepdims=True)                  # (1, B, 1) >= 1 (row 0 kept)
    weights = es / denom                                        # exact softmax (one-time)

    r = jnp.sum(weights * out_all, axis=0)                      # (B, Hp)
    r = jnp.tanh(
        jnp.dot(r, wp_w_ref[...], preferred_element_type=f32) + wp_b_ref[...]
        + jnp.dot(hidden, wx_w_ref[...], preferred_element_type=f32) + wx_b_ref[...])
    # TODO(synk): nn.Dropout(0.3) in train mode is stochastic; implemented as identity (eval mode).
    decoded = (jnp.dot(r, dec_w_ref[...], preferred_element_type=f32)
               + dec_b_ref[...])                                # (B, Op)

    # retain count (excludes the h0 row) rides in spare lane O of the output row.
    retain = jnp.sum(mask3, axis=0) - 1.0                       # (B, 1)
    lane_o = lax.broadcasted_iota(jnp.int32, (1, decoded.shape[1]), 1)
    out_ref[...] = jnp.where(lane_o == O, retain, decoded)


def init_params(key, input_size, hidden_size, output_size, aspect_size):
    ks = jax.random.split(key, 12)

    def lin(k, out_f, in_f):
        bound = 1.0 / (in_f ** 0.5)
        kw, kb = jax.random.split(k)
        w = jax.random.uniform(kw, (out_f, in_f), jnp.float32, -bound, bound)
        b = jax.random.uniform(kb, (out_f,), jnp.float32, -bound, bound)
        return w, b

    H = hidden_size
    bound = 1.0 / (H ** 0.5)
    params = {
        "AE": jax.random.normal(ks[0], (aspect_size, input_size), jnp.float32),
        "W_h": lin(ks[1], H, H),
        "W_v": lin(ks[2], input_size, input_size),
        "w": lin(ks[3], 1, H + input_size),
        "W_p": lin(ks[4], H, H),
        "W_x": lin(ks[5], H, H),
        "w_ih": jax.random.uniform(ks[6], (4 * H, input_size), jnp.float32, -bound, bound),
        "w_hh": jax.random.uniform(ks[7], (4 * H, H), jnp.float32, -bound, bound),
        "b_ih": jax.random.uniform(ks[8], (4 * H,), jnp.float32, -bound, bound),
        "b_hh": jax.random.uniform(ks[9], (4 * H,), jnp.float32, -bound, bound),
        "decoder": lin(ks[10], output_size, H),
        "PNet": lin(ks[11], 2, 2 * H + input_size),
    }
    return params


def prepare_params(params, hidden_size):
    """One-time weight prep (transpose / pad / fold / cast). Cache across forward calls."""
    H = hidden_size
    I = params["w_ih"].shape[1]
    O = params["decoder"][0].shape[0]
    Hp = _round_up(H + 1, 128)      # +1 reserves a spare lane for flag / policy terms
    Op = _round_up(O + 1, 128)      # +1 reserves a spare lane for the retain count

    def pad2(a, r, c):
        a = jnp.asarray(a, jnp.float32)
        return jnp.zeros((r, c), jnp.float32).at[:a.shape[0], :a.shape[1]].set(a)

    # ---- policy net folded to a single logit difference (row0 - row1) ----
    # PNet state order in the reference: [c_t (H), h_t (H), x_t (I)]
    pnet_w, pnet_b = params["PNet"]
    d = jnp.asarray(pnet_w[0] - pnet_w[1], jnp.float32)
    db = jnp.asarray(pnet_b[0] - pnet_b[1], jnp.float32)
    dwc, dwh, dwx = d[:H], d[H:2 * H], d[2 * H:]

    # ---- LSTMCell weights: per-gate lane padding to Hp; lane H of the i-gate block
    #      carries the folded policy terms (dwx in w_ih, dwh in w_hh, db in bias) ----
    w_ih_t = jnp.asarray(params["w_ih"], jnp.float32).T.reshape(I, 4, H)
    w_ih_p = jnp.zeros((I, 4, Hp), jnp.float32).at[:, :, :H].set(w_ih_t)
    w_ih_p = w_ih_p.at[:, 0, H].set(dwx).reshape(I, 4 * Hp)

    w_hh_t = jnp.asarray(params["w_hh"], jnp.float32).T.reshape(H, 4, H)
    w_hh_p = jnp.zeros((Hp, 4, Hp), jnp.float32).at[:H, :, :H].set(w_hh_t)
    w_hh_p = w_hh_p.at[:H, 0, H].set(dwh).reshape(Hp, 4 * Hp)
    w_hh_p = w_hh_p.astype(jnp.bfloat16)   # bf16 single-pass MXU on the serial dot

    b_lstm = (params["b_ih"] + params["b_hh"]).astype(jnp.float32).reshape(4, H)
    b_lstm_p = jnp.zeros((4, Hp), jnp.float32).at[:, :H].set(b_lstm)
    b_lstm_p = b_lstm_p.at[0, H].set(db).reshape(1, 4 * Hp)

    wh_w, wh_b = params["W_h"]
    wv_w, wv_b = params["W_v"]
    w_w, w_b = params["w"]
    wp_w, wp_b = params["W_p"]
    wx_w, wx_b = params["W_x"]
    dec_w, dec_b = params["decoder"]

    return {
        "AE": jnp.asarray(params["AE"], jnp.float32),
        "w_ih": w_ih_p,
        "w_hh": w_hh_p,
        "b_lstm": b_lstm_p,
        "dwc": pad2(dwc.reshape(1, H), 1, Hp),
        "wh_w": pad2(wh_w.T, Hp, Hp),
        "wh_b": pad2(wh_b.reshape(1, H), 1, Hp),
        "wv_w": jnp.asarray(wv_w, jnp.float32).T,
        "wv_b": jnp.asarray(wv_b, jnp.float32).reshape(1, I),
        "wA": pad2(w_w[:, :H].T, Hp, 1),
        "wB": jnp.asarray(w_w[:, H:], jnp.float32).T,
        "w_b": jnp.asarray(w_b, jnp.float32).reshape(1, 1),
        "wp_w": pad2(wp_w.T, Hp, Hp),
        "wp_b": pad2(wp_b.reshape(1, H), 1, Hp),
        "wx_w": pad2(wx_w.T, Hp, Hp),
        "wx_b": pad2(wx_b.reshape(1, H), 1, Hp),
        "dec_w": pad2(dec_w.T, Hp, Op),
        "dec_b": pad2(dec_b.reshape(1, O), 1, Op),
    }


@functools.partial(jax.jit, static_argnames=("hidden_size", "output_size"))
def id_at_lstm_forward(prep, inputs, aspects, action_key, hidden_size, output_size):
    """inputs: (B, T, 1, I) = B stacked copies of the module's per-sample (T, 1, I)."""
    H, O = hidden_size, output_size
    B, T = inputs.shape[0], inputs.shape[1]
    x = inputs.reshape(B, T, -1).astype(jnp.float32)
    I = x.shape[2]
    Hp = prep["dwc"].shape[1]
    Op = prep["dec_b"].shape[1]

    # pad batch to a multiple of B_BLK (padded rows never contaminate real rows)
    Bp = _round_up(B, B_BLK)
    x_p = jnp.zeros((Bp, T, I), jnp.float32).at[:B].set(x)
    asp_idx = jnp.zeros((Bp,), jnp.int32).at[:B].set(aspects.astype(jnp.int32))
    asp_emb = prep["AE"][asp_idx]                               # (Bp, I)

    # replaces torch.multinomial: keep (action 1) iff logit(u) >= l0 - l1
    u = jax.random.uniform(action_key, (T, Bp, 1), jnp.float32, 1e-7, 1.0 - 1e-7)
    logit_u = jnp.log(u) - jnp.log1p(-u)                        # (T, Bp, 1)

    x_tbi = jnp.transpose(x_p, (1, 0, 2))                       # (T, Bp, I): B in sublanes

    nb = Bp // B_BLK
    in_specs = [
        pl.BlockSpec((T, B_BLK, I), lambda g: (0, g, 0)),       # x
        pl.BlockSpec((T, B_BLK, 1), lambda g: (0, g, 0)),       # logit(u)
        pl.BlockSpec((B_BLK, I), lambda g: (g, 0)),             # aspect embedding
        pl.BlockSpec((I, 4 * Hp), lambda g: (0, 0)),            # W_ih (+ dwx fold)
        pl.BlockSpec((Hp, 4 * Hp), lambda g: (0, 0)),           # W_hh (+ dwh fold), bf16
        pl.BlockSpec((1, 4 * Hp), lambda g: (0, 0)),            # b_ih + b_hh (+ db fold)
        pl.BlockSpec((1, Hp), lambda g: (0, 0)),                # dwc
        pl.BlockSpec((Hp, Hp), lambda g: (0, 0)),               # W_h
        pl.BlockSpec((1, Hp), lambda g: (0, 0)),
        pl.BlockSpec((I, I), lambda g: (0, 0)),                 # W_v
        pl.BlockSpec((1, I), lambda g: (0, 0)),
        pl.BlockSpec((Hp, 1), lambda g: (0, 0)),                # w[:, :H]
        pl.BlockSpec((I, 1), lambda g: (0, 0)),                 # w[:, H:]
        pl.BlockSpec((1, 1), lambda g: (0, 0)),                 # w bias
        pl.BlockSpec((Hp, Hp), lambda g: (0, 0)),               # W_p
        pl.BlockSpec((1, Hp), lambda g: (0, 0)),
        pl.BlockSpec((Hp, Hp), lambda g: (0, 0)),               # W_x
        pl.BlockSpec((1, Hp), lambda g: (0, 0)),
        pl.BlockSpec((Hp, Op), lambda g: (0, 0)),               # decoder
        pl.BlockSpec((1, Op), lambda g: (0, 0)),
    ]

    out_full = pl.pallas_call(
        functools.partial(_id_at_lstm_kernel,
                          hidden_size=H, hidden_pad=Hp, out_size=O),
        out_shape=jax.ShapeDtypeStruct((Bp, Op), jnp.float32),
        grid=(nb,),
        in_specs=in_specs,
        out_specs=pl.BlockSpec((B_BLK, Op), lambda g: (g, 0)),
        scratch_shapes=[
            pltpu.VMEM((T + 1, B_BLK, Hp), jnp.float32),        # lane-dense retained-output buffer
        ],
        compiler_params=pltpu.CompilerParams(
            dimension_semantics=("parallel",)),                 # shards batch blocks on v7x's 2 TCs
    )(
        x_tbi, logit_u, asp_emb,
        prep["w_ih"], prep["w_hh"], prep["b_lstm"], prep["dwc"],
        prep["wh_w"], prep["wh_b"], prep["wv_w"], prep["wv_b"],
        prep["wA"], prep["wB"], prep["w_b"],
        prep["wp_w"], prep["wp_b"], prep["wx_w"], prep["wx_b"],
        prep["dec_w"], prep["dec_b"],
    )

    logits = out_full[:B, :O]
    retain = out_full[:B, O]
    return logits, (T, retain)


if __name__ == "__main__":
    key = jax.random.PRNGKey(0)
    k_param, k_in, k_act = jax.random.split(key, 3)

    input_size, hidden_size, output_size, aspect_size = 16, 32, 4, 5
    batch, T = 2, 8

    params = init_params(k_param, input_size, hidden_size, output_size, aspect_size)
    prep = prepare_params(params, hidden_size)      # one-time padded/transposed weights

    # B stacked copies of the module's per-sample (seq, batch=1, input_size) input
    inputs = jax.random.normal(k_in, (batch, T, 1, input_size), jnp.float32)
    aspects = jnp.array([2, 4], dtype=jnp.int32)

    out, (seq_len, retain) = id_at_lstm_forward(
        prep, inputs, aspects, k_act,
        hidden_size=hidden_size, output_size=output_size)
    out = jax.block_until_ready(out)
    retain = jax.block_until_ready(retain)

    assert out.shape == (batch, output_size)
    assert seq_len == T
    for rl in jax.device_get(retain):
        rli = int(round(float(rl)))
        assert 0 <= rli <= T
    print("KERNEL_OK")
</pallas_src>

<mosaic_0001>
module attributes {stable_mosaic.version = 11 : i64} {
  func.func @_id_at_lstm_kernel(%arg0: i32, %arg1: memref<8x8x16xf32, #tpu.memory_space<vmem>>, %arg2: memref<8x8x1xf32, #tpu.memory_space<vmem>>, %arg3: memref<8x16xf32, #tpu.memory_space<vmem>>, %arg4: memref<16x512xf32, #tpu.memory_space<vmem>>, %arg5: memref<128x512xbf16, #tpu.memory_space<vmem>>, %arg6: memref<1x512xf32, #tpu.memory_space<vmem>>, %arg7: memref<1x128xf32, #tpu.memory_space<vmem>>, %arg8: memref<128x128xf32, #tpu.memory_space<vmem>>, %arg9: memref<1x128xf32, #tpu.memory_space<vmem>>, %arg10: memref<16x16xf32, #tpu.memory_space<vmem>>, %arg11: memref<1x16xf32, #tpu.memory_space<vmem>>, %arg12: memref<128x1xf32, #tpu.memory_space<vmem>>, %arg13: memref<16x1xf32, #tpu.memory_space<vmem>>, %arg14: memref<1x1xf32, #tpu.memory_space<vmem>>, %arg15: memref<128x128xf32, #tpu.memory_space<vmem>>, %arg16: memref<1x128xf32, #tpu.memory_space<vmem>>, %arg17: memref<128x128xf32, #tpu.memory_space<vmem>>, %arg18: memref<1x128xf32, #tpu.memory_space<vmem>>, %arg19: memref<128x128xf32, #tpu.memory_space<vmem>>, %arg20: memref<1x128xf32, #tpu.memory_space<vmem>>, %arg21: memref<8x128xf32, #tpu.memory_space<vmem>>, %arg22: memref<9x8x128xf32, #tpu.memory_space<vmem>>) attributes {dimension_semantics = [#tpu.dimension_semantics<parallel>], iteration_bounds = array<i64: 1>, scalar_prefetch = 0 : i64, scratch_operands = 1 : i64, tpu.core_type = #tpu.core_type<tc>, window_params = [{transform_indices = @transform_0, window_bounds = array<i64: 8, 8, 16>}, {transform_indices = @transform_1, window_bounds = array<i64: 8, 8, 1>}, {transform_indices = @transform_2, window_bounds = array<i64: 8, 16>}, {pipeline_mode = #tpu.pipeline_mode<synchronous>, transform_indices = @transform_3, window_bounds = array<i64: 16, 512>}, {pipeline_mode = #tpu.pipeline_mode<synchronous>, transform_indices = @transform_4, window_bounds = array<i64: 128, 512>}, {pipeline_mode = #tpu.pipeline_mode<synchronous>, transform_indices = @transform_5, window_bounds = array<i64: 1, 512>}, {pipeline_mode = #tpu.pipeline_mode<synchronous>, transform_indices = @transform_6, window_bounds = array<i64: 1, 128>}, {pipeline_mode = #tpu.pipeline_mode<synchronous>, transform_indices = @transform_7, window_bounds = array<i64: 128, 128>}, {pipeline_mode = #tpu.pipeline_mode<synchronous>, transform_indices = @transform_8, window_bounds = array<i64: 1, 128>}, {pipeline_mode = #tpu.pipeline_mode<synchronous>, transform_indices = @transform_9, window_bounds = array<i64: 16, 16>}, {pipeline_mode = #tpu.pipeline_mode<synchronous>, transform_indices = @transform_10, window_bounds = array<i64: 1, 16>}, {pipeline_mode = #tpu.pipeline_mode<synchronous>, transform_indices = @transform_11, window_bounds = array<i64: 128, 1>}, {pipeline_mode = #tpu.pipeline_mode<synchronous>, transform_indices = @transform_12, window_bounds = array<i64: 16, 1>}, {pipeline_mode = #tpu.pipeline_mode<synchronous>, transform_indices = @transform_13, window_bounds = array<i64: 1, 1>}, {pipeline_mode = #tpu.pipeline_mode<synchronous>, transform_indices = @transform_14, window_bounds = array<i64: 128, 128>}, {pipeline_mode = #tpu.pipeline_mode<synchronous>, transform_indices = @transform_15, window_bounds = array<i64: 1, 128>}, {pipeline_mode = #tpu.pipeline_mode<synchronous>, transform_indices = @transform_16, window_bounds = array<i64: 128, 128>}, {pipeline_mode = #tpu.pipeline_mode<synchronous>, transform_indices = @transform_17, window_bounds = array<i64: 1, 128>}, {pipeline_mode = #tpu.pipeline_mode<synchronous>, transform_indices = @transform_18, window_bounds = array<i64: 128, 128>}, {pipeline_mode = #tpu.pipeline_mode<synchronous>, transform_indices = @transform_19, window_bounds = array<i64: 1, 128>}, {transform_indices = @transform_20, window_bounds = array<i64: 8, 128>}]} {
    %c0 = arith.constant 0 : index
    %c0_0 = arith.constant 0 : index
    %c0_1 = arith.constant 0 : index
    %0 = vector.load %arg1[%c0, %c0_0, %c0_1] : memref<8x8x16xf32, #tpu.memory_space<vmem>>, vector<8x8x16xf32>
    %1 = vector.shape_cast %0 : vector<8x8x16xf32> to vector<64x16xf32>
    %c0_2 = arith.constant 0 : index
    %c0_3 = arith.constant 0 : index
    %2 = vector.load %arg4[%c0_2, %c0_3] : memref<16x512xf32, #tpu.memory_space<vmem>>, vector<16x512xf32>
    %cst = arith.constant dense<0.000000e+00> : vector<64x512xf32>
    %3 = tpu.matmul %1, %2, %cst {dimension_numbers = #tpu.dot_dimension_numbers<[1], [0], [0], [1], [0, 0, 1, 1], [], []>} : vector<64x16xf32>, vector<16x512xf32>, vector<64x512xf32> -> vector<64x512xf32>
    %c0_4 = arith.constant 0 : index
    %c0_5 = arith.constant 0 : index
    %4 = vector.load %arg6[%c0_4, %c0_5] : memref<1x512xf32, #tpu.memory_space<vmem>>, vector<1x512xf32>
    %5 = vector.broadcast %4 : vector<1x512xf32> to vector<64x512xf32>
    %6 = arith.addf %3, %5 : vector<64x512xf32>
    %7 = tpu.iota {dimensions = array<i32: 1>} : vector<1x128xi32>
    %c32_i32 = arith.constant 32 : i32
    %8 = vector.broadcast %c32_i32 : i32 to vector<1x128xi32>
    %9 = arith.cmpi eq, %7, %8 : vector<1x128xi32>
    %cst_6 = arith.constant 1.000000e+00 : f32
    %cst_7 = arith.constant 0.000000e+00 : f32
    %10 = vector.broadcast %cst_6 : f32 to vector<1x128xf32>
    %11 = vector.broadcast %cst_7 : f32 to vector<1x128xf32>
    %12 = arith.select %9, %10, %11 : vector<1x128xi1>, vector<1x128xf32>
    %13 = vector.shape_cast %12 : vector<1x128xf32> to vector<1x128xf32>
    %14 = vector.broadcast %13 : vector<1x128xf32> to vector<8x128xf32>
    %c0_8 = arith.constant 0 : index
    %c0_9 = arith.constant 0 : index
    %c0_10 = arith.constant 0 : index
    %15 = vector.load %arg22[%c0_8, %c0_9, %c0_10] : memref<9x8x128xf32, #tpu.memory_space<vmem>>, vector<1x8x128xf32>
    %16 = vector.shape_cast %15 : vector<1x8x128xf32> to vector<8x128xf32>
    %17 = vector.shape_cast %14 : vector<8x128xf32> to vector<1x8x128xf32>
    tpu.vector_store %arg22[%c0_8, %c0_9, %c0_10], %17 {strides = array<i32>} : memref<9x8x128xf32, #tpu.memory_space<vmem>>, vector<1x8x128xf32>,
    %c0_11 = arith.constant 0 : index
    %c0_12 = arith.constant 0 : index
    %18 = vector.load %arg7[%c0_11, %c0_12] : memref<1x128xf32, #tpu.memory_space<vmem>>, vector<1x128xf32>
    %cst_13 = arith.constant 0.000000e+00 : f32
    %19 = vector.broadcast %cst_13 : f32 to vector<8x128xf32>
    %cst_14 = arith.constant 0.000000e+00 : f32
    %20 = vector.broadcast %cst_14 : f32 to vector<8x128xf32>
    %21 = vector.extract_strided_slice %6 {offsets = [0, 0], sizes = [8, 512], strides = [1, 1]} : vector<64x512xf32> to vector<8x512xf32>
    %22 = arith.truncf %19 : vector<8x128xf32> to vector<8x128xbf16>
    %c0_15 = arith.constant 0 : index
    %c0_16 = arith.constant 0 : index
    %23 = vector.load %arg5[%c0_15, %c0_16] : memref<128x512xbf16, #tpu.memory_space<vmem>>, vector<128x512xbf16>
    %cst_17 = arith.constant dense<0.000000e+00> : vector<8x512xf32>
    %24 = tpu.matmul %22, %23, %cst_17 {dimension_numbers = #tpu.dot_dimension_numbers<[1], [0], [0], [1], [0, 0, 1, 1], [], []>} : vector<8x128xbf16>, vector<128x512xbf16>, vector<8x512xf32> -> vector<8x512xf32>
    %25 = arith.addf %21, %24 : vector<8x512xf32>
    %26 = vector.broadcast %18 : vector<1x128xf32> to vector<8x128xf32>
    %27 = arith.mulf %20, %26 : vector<8x128xf32>
    %cst_18 = arith.constant dense<0.000000e+00> : vector<8xf32>
    %28 = vector.multi_reduction <add>, %27, %cst_18 [1] : vector<8x128xf32> to vector<8xf32>
    %29 = vector.shape_cast %28 : vector<8xf32> to vector<8x1xf32>
    %30 = vector.extract_strided_slice %25 {offsets = [0, 32], sizes = [8, 1], strides = [1, 1]} : vector<8x512xf32> to vector<8x1xf32>
    %31 = arith.addf %29, %30 : vector<8x1xf32>
    %c0_19 = arith.constant 0 : index
    %c0_20 = arith.constant 0 : index
    %c0_21 = arith.constant 0 : index
    %32 = vector.load %arg2[%c0_19, %c0_20, %c0_21] : memref<8x8x1xf32, #tpu.memory_space<vmem>>, vector<1x8x1xf32>
    %33 = vector.shape_cast %32 : vector<1x8x1xf32> to vector<8x1xf32>
    %34 = arith.cmpf oge, %33, %31 : vector<8x1xf32>
    %35 = arith.extui %34 : vector<8x1xi1> to vector<8x1xi32>
    %36 = arith.sitofp %35 : vector<8x1xi32> to vector<8x1xf32>
    %37 = vector.extract_strided_slice %25 {offsets = [0, 0], sizes = [8, 128], strides = [1, 1]} : vector<8x512xf32> to vector<8x128xf32>
    %38 = arith.negf %37 : vector<8x128xf32>
    %39 = math.exp %38 : vector<8x128xf32>
    %cst_22 = arith.constant 1.000000e+00 : f32
    %40 = vector.broadcast %cst_22 : f32 to vector<8x128xf32>
    %41 = arith.addf %40, %39 : vector<8x128xf32>
    %42 = arith.divf %40, %41 : vector<8x128xf32>
    %43 = vector.extract_strided_slice %25 {offsets = [0, 128], sizes = [8, 128], strides = [1, 1]} : vector<8x512xf32> to vector<8x128xf32>
    %44 = arith.negf %43 : vector<8x128xf32>
    %45 = math.exp %44 : vector<8x128xf32>
    %cst_23 = arith.constant 1.000000e+00 : f32
    %46 = vector.broadcast %cst_23 : f32 to vector<8x128xf32>
    %47 = arith.addf %46, %45 : vector<8x128xf32>
    %48 = arith.divf %46, %47 : vector<8x128xf32>
    %49 = vector.extract_strided_slice %25 {offsets = [0, 256], sizes = [8, 128], strides = [1, 1]} : vector<8x512xf32> to vector<8x128xf32>
    %50 = math.tanh %49 : vector<8x128xf32>
    %51 = vector.extract_strided_slice %25 {offsets = [0, 384], sizes = [8, 128], strides = [1, 1]} : vector<8x512xf32> to vector<8x128xf32>
    %52 = arith.negf %51 : vector<8x128xf32>
    %53 = math.exp %52 : vector<8x128xf32>
    %cst_24 = arith.constant 1.000000e+00 : f32
    %54 = vector.broadcast %cst_24 : f32 to vector<8x128xf32>
    %55 = arith.addf %54, %53 : vector<8x128xf32>
    %56 = arith.divf %54, %55 : vector<8x128xf32>
    %57 = arith.mulf %48, %20 : vector<8x128xf32>
    %58 = arith.mulf %42, %50 : vector<8x128xf32>
    %59 = arith.addf %57, %58 : vector<8x128xf32>
    %60 = math.tanh %59 : vector<8x128xf32>
    %61 = arith.mulf %56, %60 : vector<8x128xf32>
    %62 = vector.shape_cast %34 : vector<8x1xi1> to vector<8x1xi1>
    %63 = vector.broadcast %62 : vector<8x1xi1> to vector<8x128xi1>
    %64 = arith.select %63, %61, %19 : vector<8x128xi1>, vector<8x128xf32>
    %65 = vector.shape_cast %34 : vector<8x1xi1> to vector<8x1xi1>
    %66 = vector.broadcast %65 : vector<8x1xi1> to vector<8x128xi1>
    %67 = arith.select %66, %59, %20 : vector<8x128xi1>, vector<8x128xf32>
    %68 = vector.shape_cast %9 : vector<1x128xi1> to vector<1x128xi1>
    %69 = vector.broadcast %68 : vector<1x128xi1> to vector<8x128xi1>
    %70 = vector.shape_cast %36 : vector<8x1xf32> to vector<8x1xf32>
    %71 = vector.broadcast %70 : vector<8x1xf32> to vector<8x128xf32>
    %72 = arith.select %69, %71, %64 : vector<8x128xi1>, vector<8x128xf32>
    %c1 = arith.constant 1 : index
    %c0_25 = arith.constant 0 : index
    %c0_26 = arith.constant 0 : index
    %73 = vector.load %arg22[%c1, %c0_25, %c0_26] : memref<9x8x128xf32, #tpu.memory_space<vmem>>, vector<1x8x128xf32>
    %74 = vector.shape_cast %73 : vector<1x8x128xf32> to vector<8x128xf32>
    %75 = vector.shape_cast %72 : vector<8x128xf32> to vector<1x8x128xf32>
    tpu.vector_store %arg22[%c1, %c0_25, %c0_26], %75 {strides = array<i32>} : memref<9x8x128xf32, #tpu.memory_space<vmem>>, vector<1x8x128xf32>,
    %76 = vector.extract_strided_slice %6 {offsets = [8, 0], sizes = [8, 512], strides = [1, 1]} : vector<64x512xf32> to vector<8x512xf32>
    %77 = arith.truncf %64 : vector<8x128xf32> to vector<8x128xbf16>
    %c0_27 = arith.constant 0 : index
    %c0_28 = arith.constant 0 : index
    %78 = vector.load %arg5[%c0_27, %c0_28] : memref<128x512xbf16, #tpu.memory_space<vmem>>, vector<128x512xbf16>
    %cst_29 = arith.constant dense<0.000000e+00> : vector<8x512xf32>
    %79 = tpu.matmul %77, %78, %cst_29 {dimension_numbers = #tpu.dot_dimension_numbers<[1], [0], [0], [1], [0, 0, 1, 1], [], []>} : vector<8x128xbf16>, vector<128x512xbf16>, vector<8x512xf32> -> vector<8x512xf32>
    %80 = arith.addf %76, %79 : vector<8x512xf32>
    %81 = vector.broadcast %18 : vector<1x128xf32> to vector<8x128xf32>
    %82 = arith.mulf %67, %81 : vector<8x128xf32>
    %cst_30 = arith.constant dense<0.000000e+00> : vector<8xf32>
    %83 = vector.multi_reduction <add>, %82, %cst_30 [1] : vector<8x128xf32> to vector<8xf32>
    %84 = vector.shape_cast %83 : vector<8xf32> to vector<8x1xf32>
    %85 = vector.extract_strided_slice %80 {offsets = [0, 32], sizes = [8, 1], strides = [1, 1]} : vector<8x512xf32> to vector<8x1xf32>
    %86 = arith.addf %84, %85 : vector<8x1xf32>
    %c1_31 = arith.constant 1 : index
    %c0_32 = arith.constant 0 : index
    %c0_33 = arith.constant 0 : index
    %87 = vector.load %arg2[%c1_31, %c0_32, %c0_33] : memref<8x8x1xf32, #tpu.memory_space<vmem>>, vector<1x8x1xf32>
    %88 = vector.shape_cast %87 : vector<1x8x1xf32> to vector<8x1xf32>
    %89 = arith.cmpf oge, %88, %86 : vector<8x1xf32>
    %90 = arith.extui %89 : vector<8x1xi1> to vector<8x1xi32>
    %91 = arith.sitofp %90 : vector<8x1xi32> to vector<8x1xf32>
    %92 = vector.extract_strided_slice %80 {offsets = [0, 0], sizes = [8, 128], strides = [1, 1]} : vector<8x512xf32> to vector<8x128xf32>
    %93 = arith.negf %92 : vector<8x128xf32>
    %94 = math.exp %93 : vector<8x128xf32>
    %cst_34 = arith.constant 1.000000e+00 : f32
    %95 = vector.broadcast %cst_34 : f32 to vector<8x128xf32>
    %96 = arith.addf %95, %94 : vector<8x128xf32>
    %97 = arith.divf %95, %96 : vector<8x128xf32>
    %98 = vector.extract_strided_slice %80 {offsets = [0, 128], sizes = [8, 128], strides = [1, 1]} : vector<8x512xf32> to vector<8x128xf32>
    %99 = arith.negf %98 : vector<8x128xf32>
    %100 = math.exp %99 : vector<8x128xf32>
    %cst_35 = arith.constant 1.000000e+00 : f32
    %101 = vector.broadcast %cst_35 : f32 to vector<8x128xf32>
    %102 = arith.addf %101, %100 : vector<8x128xf32>
    %103 = arith.divf %101, %102 : vector<8x128xf32>
    %104 = vector.extract_strided_slice %80 {offsets = [0, 256], sizes = [8, 128], strides = [1, 1]} : vector<8x512xf32> to vector<8x128xf32>
    %105 = math.tanh %104 : vector<8x128xf32>
    %106 = vector.extract_strided_slice %80 {offsets = [0, 384], sizes = [8, 128], strides = [1, 1]} : vector<8x512xf32> to vector<8x128xf32>
    %107 = arith.negf %106 : vector<8x128xf32>
    %108 = math.exp %107 : vector<8x128xf32>
    %cst_36 = arith.constant 1.000000e+00 : f32
    %109 = vector.broadcast %cst_36 : f32 to vector<8x128xf32>
    %110 = arith.addf %109, %108 : vector<8x128xf32>
    %111 = arith.divf %109, %110 : vector<8x128xf32>
    %112 = arith.mulf %103, %67 : vector<8x128xf32>
    %113 = arith.mulf %97, %105 : vector<8x128xf32>
    %114 = arith.addf %112, %113 : vector<8x128xf32>
    %115 = math.tanh %114 : vector<8x128xf32>
    %116 = arith.mulf %111, %115 : vector<8x128xf32>
    %117 = vector.shape_cast %89 : vector<8x1xi1> to vector<8x1xi1>
    %118 = vector.broadcast %117 : vector<8x1xi1> to vector<8x128xi1>
    %119 = arith.select %118, %116, %64 : vector<8x128xi1>, vector<8x128xf32>
    %120 = vector.shape_cast %89 : vector<8x1xi1> to vector<8x1xi1>
    %121 = vector.broadcast %120 : vector<8x1xi1> to vector<8x128xi1>
    %122 = arith.select %121, %114, %67 : vector<8x128xi1>, vector<8x128xf32>
    %123 = vector.shape_cast %9 : vector<1x128xi1> to vector<1x128xi1>
    %124 = vector.broadcast %123 : vector<1x128xi1> to vector<8x128xi1>
    %125 = vector.shape_cast %91 : vector<8x1xf32> to vector<8x1xf32>
    %126 = vector.broadcast %125 : vector<8x1xf32> to vector<8x128xf32>
    %127 = arith.select %124, %126, %119 : vector<8x128xi1>, vector<8x128xf32>
    %c2 = arith.constant 2 : index
    %c0_37 = arith.constant 0 : index
    %c0_38 = arith.constant 0 : index
    %128 = vector.load %arg22[%c2, %c0_37, %c0_38] : memref<9x8x128xf32, #tpu.memory_space<vmem>>, vector<1x8x128xf32>
    %129 = vector.shape_cast %128 : vector<1x8x128xf32> to vector<8x128xf32>
    %130 = vector.shape_cast %127 : vector<8x128xf32> to vector<1x8x128xf32>
    tpu.vector_store %arg22[%c2, %c0_37, %c0_38], %130 {strides = array<i32>} : memref<9x8x128xf32, #tpu.memory_space<vmem>>, vector<1x8x128xf32>,
    %131 = vector.extract_strided_slice %6 {offsets = [16, 0], sizes = [8, 512], strides = [1, 1]} : vector<64x512xf32> to vector<8x512xf32>
    %132 = arith.truncf %119 : vector<8x128xf32> to vector<8x128xbf16>
    %c0_39 = arith.constant 0 : index
    %c0_40 = arith.constant 0 : index
    %133 = vector.load %arg5[%c0_39, %c0_40] : memref<128x512xbf16, #tpu.memory_space<vmem>>, vector<128x512xbf16>
    %cst_41 = arith.constant dense<0.000000e+00> : vector<8x512xf32>
    %134 = tpu.matmul %132, %133, %cst_41 {dimension_numbers = #tpu.dot_dimension_numbers<[1], [0], [0], [1], [0, 0, 1, 1], [], []>} : vector<8x128xbf16>, vector<128x512xbf16>, vector<8x512xf32> -> vector<8x512xf32>
    %135 = arith.addf %131, %134 : vector<8x512xf32>
    %136 = vector.broadcast %18 : vector<1x128xf32> to vector<8x128xf32>
    %137 = arith.mulf %122, %136 : vector<8x128xf32>
    %cst_42 = arith.constant dense<0.000000e+00> : vector<8xf32>
    %138 = vector.multi_reduction <add>, %137, %cst_42 [1] : vector<8x128xf32> to vector<8xf32>
    %139 = vector.shape_cast %138 : vector<8xf32> to vector<8x1xf32>
    %140 = vector.extract_strided_slice %135 {offsets = [0, 32], sizes = [8, 1], strides = [1, 1]} : vector<8x512xf32> to vector<8x1xf32>
    %141 = arith.addf %139, %140 : vector<8x1xf32>
    %c2_43 = arith.constant 2 : index
    %c0_44 = arith.constant 0 : index
    %c0_45 = arith.constant 0 : index
    %142 = vector.load %arg2[%c2_43, %c0_44, %c0_45] : memref<8x8x1xf32, #tpu.memory_space<vmem>>, vector<1x8x1xf32>
    %143 = vector.shape_cast %142 : vector<1x8x1xf32> to vector<8x1xf32>
    %144 = arith.cmpf oge, %143, %141 : vector<8x1xf32>
    %145 = arith.extui %144 : vector<8x1xi1> to vector<8x1xi32>
    %146 = arith.sitofp %145 : vector<8x1xi32> to vector<8x1xf32>
    %147 = vector.extract_strided_slice %135 {offsets = [0, 0], sizes = [8, 128], strides = [1, 1]} : vector<8x512xf32> to vector<8x128xf32>
    %148 = arith.negf %147 : vector<8x128xf32>
    %149 = math.exp %148 : vector<8x128xf32>
    %cst_46 = arith.constant 1.000000e+00 : f32
    %150 = vector.broadcast %cst_46 : f32 to vector<8x128xf32>
    %151 = arith.addf %150, %149 : vector<8x128xf32>
    %152 = arith.divf %150, %151 : vector<8x128xf32>
    %153 = vector.extract_strided_slice %135 {offsets = [0, 128], sizes = [8, 128], strides = [1, 1]} : vector<8x512xf32> to vector<8x128xf32>
    %154 = arith.negf %153 : vector<8x128xf32>
    %155 = math.exp %154 : vector<8x128xf32>
    %cst_47 = arith.constant 1.000000e+00 : f32
    %156 = vector.broadcast %cst_47 : f32 to vector<8x128xf32>
    %157 = arith.addf %156, %155 : vector<8x128xf32>
    %158 = arith.divf %156, %157 : vector<8x128xf32>
    %159 = vector.extract_strided_slice %135 {offsets = [0, 256], sizes = [8, 128], strides = [1, 1]} : vector<8x512xf32> to vector<8x128xf32>
    %160 = math.tanh %159 : vector<8x128xf32>
    %161 = vector.extract_strided_slice %135 {offsets = [0, 384], sizes = [8, 128], strides = [1, 1]} : vector<8x512xf32> to vector<8x128xf32>
    %162 = arith.negf %161 : vector<8x128xf32>
    %163 = math.exp %162 : vector<8x128xf32>
    %cst_48 = arith.constant 1.000000e+00 : f32
    %164 = vector.broadcast %cst_48 : f32 to vector<8x128xf32>
    %165 = arith.addf %164, %163 : vector<8x128xf32>
    %166 = arith.divf %164, %165 : vector<8x128xf32>
    %167 = arith.mulf %158, %122 : vector<8x128xf32>
    %168 = arith.mulf %152, %160 : vector<8x128xf32>
    %169 = arith.addf %167, %168 : vector<8x128xf32>
    %170 = math.tanh %169 : vector<8x128xf32>
    %171 = arith.mulf %166, %170 : vector<8x128xf32>
    %172 = vector.shape_cast %144 : vector<8x1xi1> to vector<8x1xi1>
    %173 = vector.broadcast %172 : vector<8x1xi1> to vector<8x128xi1>
    %174 = arith.select %173, %171, %119 : vector<8x128xi1>, vector<8x128xf32>
    %175 = vector.shape_cast %144 : vector<8x1xi1> to vector<8x1xi1>
    %176 = vector.broadcast %175 : vector<8x1xi1> to vector<8x128xi1>
    %177 = arith.select %176, %169, %122 : vector<8x128xi1>, vector<8x128xf32>
    %178 = vector.shape_cast %9 : vector<1x128xi1> to vector<1x128xi1>
    %179 = vector.broadcast %178 : vector<1x128xi1> to vector<8x128xi1>
    %180 = vector.shape_cast %146 : vector<8x1xf32> to vector<8x1xf32>
    %181 = vector.broadcast %180 : vector<8x1xf32> to vector<8x128xf32>
    %182 = arith.select %179, %181, %174 : vector<8x128xi1>, vector<8x128xf32>
    %c3 = arith.constant 3 : index
    %c0_49 = arith.constant 0 : index
    %c0_50 = arith.constant 0 : index
    %183 = vector.load %arg22[%c3, %c0_49, %c0_50] : memref<9x8x128xf32, #tpu.memory_space<vmem>>, vector<1x8x128xf32>
    %184 = vector.shape_cast %183 : vector<1x8x128xf32> to vector<8x128xf32>
    %185 = vector.shape_cast %182 : vector<8x128xf32> to vector<1x8x128xf32>
    tpu.vector_store %arg22[%c3, %c0_49, %c0_50], %185 {strides = array<i32>} : memref<9x8x128xf32, #tpu.memory_space<vmem>>, vector<1x8x128xf32>,
    %186 = vector.extract_strided_slice %6 {offsets = [24, 0], sizes = [8, 512], strides = [1, 1]} : vector<64x512xf32> to vector<8x512xf32>
    %187 = arith.truncf %174 : vector<8x128xf32> to vector<8x128xbf16>
    %c0_51 = arith.constant 0 : index
    %c0_52 = arith.constant 0 : index
    %188 = vector.load %arg5[%c0_51, %c0_52] : memref<128x512xbf16, #tpu.memory_space<vmem>>, vector<128x512xbf16>
    %cst_53 = arith.constant dense<0.000000e+00> : vector<8x512xf32>
    %189 = tpu.matmul %187, %188, %cst_53 {dimension_numbers = #tpu.dot_dimension_numbers<[1], [0], [0], [1], [0, 0, 1, 1], [], []>} : vector<8x128xbf16>, vector<128x512xbf16>, vector<8x512xf32> -> vector<8x512xf32>
    %190 = arith.addf %186, %189 : vector<8x512xf32>
    %191 = vector.broadcast %18 : vector<1x128xf32> to vector<8x128xf32>
    %192 = arith.mulf %177, %191 : vector<8x128xf32>
    %cst_54 = arith.constant dense<0.000000e+00> : vector<8xf32>
    %193 = vector.multi_reduction <add>, %192, %cst_54 [1] : vector<8x128xf32> to vector<8xf32>
    %194 = vector.shape_cast %193 : vector<8xf32> to vector<8x1xf32>
    %195 = vector.extract_strided_slice %190 {offsets = [0, 32], sizes = [8, 1], strides = [1, 1]} : vector<8x512xf32> to vector<8x1xf32>
    %196 = arith.addf %194, %195 : vector<8x1xf32>
    %c3_55 = arith.constant 3 : index
    %c0_56 = arith.constant 0 : index
    %c0_57 = arith.constant 0 : index
    %197 = vector.load %arg2[%c3_55, %c0_56, %c0_57] : memref<8x8x1xf32, #tpu.memory_space<vmem>>, vector<1x8x1xf32>
    %198 = vector.shape_cast %197 : vector<1x8x1xf32> to vector<8x1xf32>
    %199 = arith.cmpf oge, %198, %196 : vector<8x1xf32>
    %200 = arith.extui %199 : vector<8x1xi1> to vector<8x1xi32>
    %201 = arith.sitofp %200 : vector<8x1xi32> to vector<8x1xf32>
    %202 = vector.extract_strided_slice %190 {offsets = [0, 0], sizes = [8, 128], strides = [1, 1]} : vector<8x512xf32> to vector<8x128xf32>
    %203 = arith.negf %202 : vector<8x128xf32>
    %204 = math.exp %203 : vector<8x128xf32>
    %cst_58 = arith.constant 1.000000e+00 : f32
    %205 = vector.broadcast %cst_58 : f32 to vector<8x128xf32>
    %206 = arith.addf %205, %204 : vector<8x128xf32>
    %207 = arith.divf %205, %206 : vector<8x128xf32>
    %208 = vector.extract_strided_slice %190 {offsets = [0, 128], sizes = [8, 128], strides = [1, 1]} : vector<8x512xf32> to vector<8x128xf32>
    %209 = arith.negf %208 : vector<8x128xf32>
    %210 = math.exp %209 : vector<8x128xf32>
    %cst_59 = arith.constant 1.000000e+00 : f32
    %211 = vector.broadcast %cst_59 : f32 to vector<8x128xf32>
    %212 = arith.addf %211, %210 : vector<8x128xf32>
    %213 = arith.divf %211, %212 : vector<8x128xf32>
    %214 = vector.extract_strided_slice %190 {offsets = [0, 256], sizes = [8, 128], strides = [1, 1]} : vector<8x512xf32> to vector<8x128xf32>
    %215 = math.tanh %214 : vector<8x128xf32>
    %216 = vector.extract_strided_slice %190 {offsets = [0, 384], sizes = [8, 128], strides = [1, 1]} : vector<8x512xf32> to vector<8x128xf32>
    %217 = arith.negf %216 : vector<8x128xf32>
    %218 = math.exp %217 : vector<8x128xf32>
    %cst_60 = arith.constant 1.000000e+00 : f32
    %219 = vector.broadcast %cst_60 : f32 to vector<8x128xf32>
    %220 = arith.addf %219, %218 : vector<8x128xf32>
    %221 = arith.divf %219, %220 : vector<8x128xf32>
    %222 = arith.mulf %213, %177 : vector<8x128xf32>
    %223 = arith.mulf %207, %215 : vector<8x128xf32>
    %224 = arith.addf %222, %223 : vector<8x128xf32>
    %225 = math.tanh %224 : vector<8x128xf32>
    %226 = arith.mulf %221, %225 : vector<8x128xf32>
    %227 = vector.shape_cast %199 : vector<8x1xi1> to vector<8x1xi1>
    %228 = vector.broadcast %227 : vector<8x1xi1> to vector<8x128xi1>
    %229 = arith.select %228, %226, %174 : vector<8x128xi1>, vector<8x128xf32>
    %230 = vector.shape_cast %199 : vector<8x1xi1> to vector<8x1xi1>
    %231 = vector.broadcast %230 : vector<8x1xi1> to vector<8x128xi1>
    %232 = arith.select %231, %224, %177 : vector<8x128xi1>, vector<8x128xf32>
    %233 = vector.shape_cast %9 : vector<1x128xi1> to vector<1x128xi1>
    %234 = vector.broadcast %233 : vector<1x128xi1> to vector<8x128xi1>
    %235 = vector.shape_cast %201 : vector<8x1xf32> to vector<8x1xf32>
    %236 = vector.broadcast %235 : vector<8x1xf32> to vector<8x128xf32>
    %237 = arith.select %234, %236, %229 : vector<8x128xi1>, vector<8x128xf32>
    %c4 = arith.constant 4 : index
    %c0_61 = arith.constant 0 : index
    %c0_62 = arith.constant 0 : index
    %238 = vector.load %arg22[%c4, %c0_61, %c0_62] : memref<9x8x128xf32, #tpu.memory_space<vmem>>, vector<1x8x128xf32>
    %239 = vector.shape_cast %238 : vector<1x8x128xf32> to vector<8x128xf32>
    %240 = vector.shape_cast %237 : vector<8x128xf32> to vector<1x8x128xf32>
    tpu.vector_store %arg22[%c4, %c0_61, %c0_62], %240 {strides = array<i32>} : memref<9x8x128xf32, #tpu.memory_space<vmem>>, vector<1x8x128xf32>,
    %241 = vector.extract_strided_slice %6 {offsets = [32, 0], sizes = [8, 512], strides = [1, 1]} : vector<64x512xf32> to vector<8x512xf32>
    %242 = arith.truncf %229 : vector<8x128xf32> to vector<8x128xbf16>
    %c0_63 = arith.constant 0 : index
    %c0_64 = arith.constant 0 : index
    %243 = vector.load %arg5[%c0_63, %c0_64] : memref<128x512xbf16, #tpu.memory_space<vmem>>, vector<128x512xbf16>
    %cst_65 = arith.constant dense<0.000000e+00> : vector<8x512xf32>
    %244 = tpu.matmul %242, %243, %cst_65 {dimension_numbers = #tpu.dot_dimension_numbers<[1], [0], [0], [1], [0, 0, 1, 1], [], []>} : vector<8x128xbf16>, vector<128x512xbf16>, vector<8x512xf32> -> vector<8x512xf32>
    %245 = arith.addf %241, %244 : vector<8x512xf32>
    %246 = vector.broadcast %18 : vector<1x128xf32> to vector<8x128xf32>
    %247 = arith.mulf %232, %246 : vector<8x128xf32>
    %cst_66 = arith.constant dense<0.000000e+00> : vector<8xf32>
    %248 = vector.multi_reduction <add>, %247, %cst_66 [1] : vector<8x128xf32> to vector<8xf32>
    %249 = vector.shape_cast %248 : vector<8xf32> to vector<8x1xf32>
    %250 = vector.extract_strided_slice %245 {offsets = [0, 32], sizes = [8, 1], strides = [1, 1]} : vector<8x512xf32> to vector<8x1xf32>
    %251 = arith.addf %249, %250 : vector<8x1xf32>
    %c4_67 = arith.constant 4 : index
    %c0_68 = arith.constant 0 : index
    %c0_69 = arith.constant 0 : index
    %252 = vector.load %arg2[%c4_67, %c0_68, %c0_69] : memref<8x8x1xf32, #tpu.memory_space<vmem>>, vector<1x8x1xf32>
    %253 = vector.shape_cast %252 : vector<1x8x1xf32> to vector<8x1xf32>
    %254 = arith.cmpf oge, %253, %251 : vector<8x1xf32>
    %255 = arith.extui %254 : vector<8x1xi1> to vector<8x1xi32>
    %256 = arith.sitofp %255 : vector<8x1xi32> to vector<8x1xf32>
    %257 = vector.extract_strided_slice %245 {offsets = [0, 0], sizes = [8, 128], strides = [1, 1]} : vector<8x512xf32> to vector<8x128xf32>
    %258 = arith.negf %257 : vector<8x128xf32>
    %259 = math.exp %258 : vector<8x128xf32>
    %cst_70 = arith.constant 1.000000e+00 : f32
    %260 = vector.broadcast %cst_70 : f32 to vector<8x128xf32>
    %261 = arith.addf %260, %259 : vector<8x128xf32>
    %262 = arith.divf %260, %261 : vector<8x128xf32>
    %263 = vector.extract_strided_slice %245 {offsets = [0, 128], sizes = [8, 128], strides = [1, 1]} : vector<8x512xf32> to vector<8x128xf32>
    %264 = arith.negf %263 : vector<8x128xf32>
    %265 = math.exp %264 : vector<8x128xf32>
    %cst_71 = arith.constant 1.000000e+00 : f32
    %266 = vector.broadcast %cst_71 : f32 to vector<8x128xf32>
    %267 = arith.addf %266, %265 : vector<8x128xf32>
    %268 = arith.divf %266, %267 : vector<8x128xf32>
    %269 = vector.extract_strided_slice %245 {offsets = [0, 256], sizes = [8, 128], strides = [1, 1]} : vector<8x512xf32> to vector<8x128xf32>
    %270 = math.tanh %269 : vector<8x128xf32>
    %271 = vector.extract_strided_slice %245 {offsets = [0, 384], sizes = [8, 128], strides = [1, 1]} : vector<8x512xf32> to vector<8x128xf32>
    %272 = arith.negf %271 : vector<8x128xf32>
    %273 = math.exp %272 : vector<8x128xf32>
    %cst_72 = arith.constant 1.000000e+00 : f32
    %274 = vector.broadcast %cst_72 : f32 to vector<8x128xf32>
    %275 = arith.addf %274, %273 : vector<8x128xf32>
    %276 = arith.divf %274, %275 : vector<8x128xf32>
    %277 = arith.mulf %268, %232 : vector<8x128xf32>
    %278 = arith.mulf %262, %270 : vector<8x128xf32>
    %279 = arith.addf %277, %278 : vector<8x128xf32>
    %280 = math.tanh %279 : vector<8x128xf32>
    %281 = arith.mulf %276, %280 : vector<8x128xf32>
    %282 = vector.shape_cast %254 : vector<8x1xi1> to vector<8x1xi1>
    %283 = vector.broadcast %282 : vector<8x1xi1> to vector<8x128xi1>
    %284 = arith.select %283, %281, %229 : vector<8x128xi1>, vector<8x128xf32>
    %285 = vector.shape_cast %254 : vector<8x1xi1> to vector<8x1xi1>
    %286 = vector.broadcast %285 : vector<8x1xi1> to vector<8x128xi1>
    %287 = arith.select %286, %279, %232 : vector<8x128xi1>, vector<8x128xf32>
    %288 = vector.shape_cast %9 : vector<1x128xi1> to vector<1x128xi1>
    %289 = vector.broadcast %288 : vector<1x128xi1> to vector<8x128xi1>
    %290 = vector.shape_cast %256 : vector<8x1xf32> to vector<8x1xf32>
    %291 = vector.broadcast %290 : vector<8x1xf32> to vector<8x128xf32>
    %292 = arith.select %289, %291, %284 : vector<8x128xi1>, vector<8x128xf32>
    %c5 = arith.constant 5 : index
    %c0_73 = arith.constant 0 : index
    %c0_74 = arith.constant 0 : index
    %293 = vector.load %arg22[%c5, %c0_73, %c0_74] : memref<9x8x128xf32, #tpu.memory_space<vmem>>, vector<1x8x128xf32>
    %294 = vector.shape_cast %293 : vector<1x8x128xf32> to vector<8x128xf32>
    %295 = vector.shape_cast %292 : vector<8x128xf32> to vector<1x8x128xf32>
    tpu.vector_store %arg22[%c5, %c0_73, %c0_74], %295 {strides = array<i32>} : memref<9x8x128xf32, #tpu.memory_space<vmem>>, vector<1x8x128xf32>,
    %296 = vector.extract_strided_slice %6 {offsets = [40, 0], sizes = [8, 512], strides = [1, 1]} : vector<64x512xf32> to vector<8x512xf32>
    %297 = arith.truncf %284 : vector<8x128xf32> to vector<8x128xbf16>
    %c0_75 = arith.constant 0 : index
    %c0_76 = arith.constant 0 : index
    %298 = vector.load %arg5[%c0_75, %c0_76] : memref<128x512xbf16, #tpu.memory_space<vmem>>, vector<128x512xbf16>
    %cst_77 = arith.constant dense<0.000000e+00> : vector<8x512xf32>
    %299 = tpu.matmul %297, %298, %cst_77 {dimension_numbers = #tpu.dot_dimension_numbers<[1], [0], [0], [1], [0, 0, 1, 1], [], []>} : vector<8x128xbf16>, vector<128x512xbf16>, vector<8x512xf32> -> vector<8x512xf32>
    %300 = arith.addf %296, %299 : vector<8x512xf32>
    %301 = vector.broadcast %18 : vector<1x128xf32> to vector<8x128xf32>
    %302 = arith.mulf %287, %301 : vector<8x128xf32>
    %cst_78 = arith.constant dense<0.000000e+00> : vector<8xf32>
    %303 = vector.multi_reduction <add>, %302, %cst_78 [1] : vector<8x128xf32> to vector<8xf32>
    %304 = vector.shape_cast %303 : vector<8xf32> to vector<8x1xf32>
    %305 = vector.extract_strided_slice %300 {offsets = [0, 32], sizes = [8, 1], strides = [1, 1]} : vector<8x512xf32> to vector<8x1xf32>
    %306 = arith.addf %304, %305 : vector<8x1xf32>
    %c5_79 = arith.constant 5 : index
    %c0_80 = arith.constant 0 : index
    %c0_81 = arith.constant 0 : index
    %307 = vector.load %arg2[%c5_79, %c0_80, %c0_81] : memref<8x8x1xf32, #tpu.memory_space<vmem>>, vector<1x8x1xf32>
    %308 = vector.shape_cast %307 : vector<1x8x1xf32> to vector<8x1xf32>
    %309 = arith.cmpf oge, %308, %306 : vector<8x1xf32>
    %310 = arith.extui %309 : vector<8x1xi1> to vector<8x1xi32>
    %311 = arith.sitofp %310 : vector<8x1xi32> to vector<8x1xf32>
    %312 = vector.extract_strided_slice %300 {offsets = [0, 0], sizes = [8, 128], strides = [1, 1]} : vector<8x512xf32> to vector<8x128xf32>
    %313 = arith.negf %312 : vector<8x128xf32>
    %314 = math.exp %313 : vector<8x128xf32>
    %cst_82 = arith.constant 1.000000e+00 : f32
    %315 = vector.broadcast %cst_82 : f32 to vector<8x128xf32>
    %316 = arith.addf %315, %314 : vector<8x128xf32>
    %317 = arith.divf %315, %316 : vector<8x128xf32>
    %318 = vector.extract_strided_slice %300 {offsets = [0, 128], sizes = [8, 128], strides = [1, 1]} : vector<8x512xf32> to vector<8x128xf32>
    %319 = arith.negf %318 : vector<8x128xf32>
    %320 = math.exp %319 : vector<8x128xf32>
    %cst_83 = arith.constant 1.000000e+00 : f32
    %321 = vector.broadcast %cst_83 : f32 to vector<8x128xf32>
    %322 = arith.addf %321, %320 : vector<8x128xf32>
    %323 = arith.divf %321, %322 : vector<8x128xf32>
    %324 = vector.extract_strided_slice %300 {offsets = [0, 256], sizes = [8, 128], strides = [1, 1]} : vector<8x512xf32> to vector<8x128xf32>
    %325 = math.tanh %324 : vector<8x128xf32>
    %326 = vector.extract_strided_slice %300 {offsets = [0, 384], sizes = [8, 128], strides = [1, 1]} : vector<8x512xf32> to vector<8x128xf32>
    %327 = arith.negf %326 : vector<8x128xf32>
    %328 = math.exp %327 : vector<8x128xf32>
    %cst_84 = arith.constant 1.000000e+00 : f32
    %329 = vector.broadcast %cst_84 : f32 to vector<8x128xf32>
    %330 = arith.addf %329, %328 : vector<8x128xf32>
    %331 = arith.divf %329, %330 : vector<8x128xf32>
    %332 = arith.mulf %323, %287 : vector<8x128xf32>
    %333 = arith.mulf %317, %325 : vector<8x128xf32>
    %334 = arith.addf %332, %333 : vector<8x128xf32>
    %335 = math.tanh %334 : vector<8x128xf32>
    %336 = arith.mulf %331, %335 : vector<8x128xf32>
    %337 = vector.shape_cast %309 : vector<8x1xi1> to vector<8x1xi1>
    %338 = vector.broadcast %337 : vector<8x1xi1> to vector<8x128xi1>
    %339 = arith.select %338, %336, %284 : vector<8x128xi1>, vector<8x128xf32>
    %340 = vector.shape_cast %309 : vector<8x1xi1> to vector<8x1xi1>
    %341 = vector.broadcast %340 : vector<8x1xi1> to vector<8x128xi1>
    %342 = arith.select %341, %334, %287 : vector<8x128xi1>, vector<8x128xf32>
    %343 = vector.shape_cast %9 : vector<1x128xi1> to vector<1x128xi1>
    %344 = vector.broadcast %343 : vector<1x128xi1> to vector<8x128xi1>
    %345 = vector.shape_cast %311 : vector<8x1xf32> to vector<8x1xf32>
    %346 = vector.broadcast %345 : vector<8x1xf32> to vector<8x128xf32>
    %347 = arith.select %344, %346, %339 : vector<8x128xi1>, vector<8x128xf32>
    %c6 = arith.constant 6 : index
    %c0_85 = arith.constant 0 : index
    %c0_86 = arith.constant 0 : index
    %348 = vector.load %arg22[%c6, %c0_85, %c0_86] : memref<9x8x128xf32, #tpu.memory_space<vmem>>, vector<1x8x128xf32>
    %349 = vector.shape_cast %348 : vector<1x8x128xf32> to vector<8x128xf32>
    %350 = vector.shape_cast %347 : vector<8x128xf32> to vector<1x8x128xf32>
    tpu.vector_store %arg22[%c6, %c0_85, %c0_86], %350 {strides = array<i32>} : memref<9x8x128xf32, #tpu.memory_space<vmem>>, vector<1x8x128xf32>,
    %351 = vector.extract_strided_slice %6 {offsets = [48, 0], sizes = [8, 512], strides = [1, 1]} : vector<64x512xf32> to vector<8x512xf32>
    %352 = arith.truncf %339 : vector<8x128xf32> to vector<8x128xbf16>
    %c0_87 = arith.constant 0 : index
    %c0_88 = arith.constant 0 : index
    %353 = vector.load %arg5[%c0_87, %c0_88] : memref<128x512xbf16, #tpu.memory_space<vmem>>, vector<128x512xbf16>
    %cst_89 = arith.constant dense<0.000000e+00> : vector<8x512xf32>
    %354 = tpu.matmul %352, %353, %cst_89 {dimension_numbers = #tpu.dot_dimension_numbers<[1], [0], [0], [1], [0, 0, 1, 1], [], []>} : vector<8x128xbf16>, vector<128x512xbf16>, vector<8x512xf32> -> vector<8x512xf32>
    %355 = arith.addf %351, %354 : vector<8x512xf32>
    %356 = vector.broadcast %18 : vector<1x128xf32> to vector<8x128xf32>
    %357 = arith.mulf %342, %356 : vector<8x128xf32>
    %cst_90 = arith.constant dense<0.000000e+00> : vector<8xf32>
    %358 = vector.multi_reduction <add>, %357, %cst_90 [1] : vector<8x128xf32> to vector<8xf32>
    %359 = vector.shape_cast %358 : vector<8xf32> to vector<8x1xf32>
    %360 = vector.extract_strided_slice %355 {offsets = [0, 32], sizes = [8, 1], strides = [1, 1]} : vector<8x512xf32> to vector<8x1xf32>
    %361 = arith.addf %359, %360 : vector<8x1xf32>
    %c6_91 = arith.constant 6 : index
    %c0_92 = arith.constant 0 : index
    %c0_93 = arith.constant 0 : index
    %362 = vector.load %arg2[%c6_91, %c0_92, %c0_93] : memref<8x8x1xf32, #tpu.memory_space<vmem>>, vector<1x8x1xf32>
    %363 = vector.shape_cast %362 : vector<1x8x1xf32> to vector<8x1xf32>
    %364 = arith.cmpf oge, %363, %361 : vector<8x1xf32>
    %365 = arith.extui %364 : vector<8x1xi1> to vector<8x1xi32>
    %366 = arith.sitofp %365 : vector<8x1xi32> to vector<8x1xf32>
    %367 = vector.extract_strided_slice %355 {offsets = [0, 0], sizes = [8, 128], strides = [1, 1]} : vector<8x512xf32> to vector<8x128xf32>
    %368 = arith.negf %367 : vector<8x128xf32>
    %369 = math.exp %368 : vector<8x128xf32>
    %cst_94 = arith.constant 1.000000e+00 : f32
    %370 = vector.broadcast %cst_94 : f32 to vector<8x128xf32>
    %371 = arith.addf %370, %369 : vector<8x128xf32>
    %372 = arith.divf %370, %371 : vector<8x128xf32>
    %373 = vector.extract_strided_slice %355 {offsets = [0, 128], sizes = [8, 128], strides = [1, 1]} : vector<8x512xf32> to vector<8x128xf32>
    %374 = arith.negf %373 : vector<8x128xf32>
    %375 = math.exp %374 : vector<8x128xf32>
    %cst_95 = arith.constant 1.000000e+00 : f32
    %376 = vector.broadcast %cst_95 : f32 to vector<8x128xf32>
    %377 = arith.addf %376, %375 : vector<8x128xf32>
    %378 = arith.divf %376, %377 : vector<8x128xf32>
    %379 = vector.extract_strided_slice %355 {offsets = [0, 256], sizes = [8, 128], strides = [1, 1]} : vector<8x512xf32> to vector<8x128xf32>
    %380 = math.tanh %379 : vector<8x128xf32>
    %381 = vector.extract_strided_slice %355 {offsets = [0, 384], sizes = [8, 128], strides = [1, 1]} : vector<8x512xf32> to vector<8x128xf32>
    %382 = arith.negf %381 : vector<8x128xf32>
    %383 = math.exp %382 : vector<8x128xf32>
    %cst_96 = arith.constant 1.000000e+00 : f32
    %384 = vector.broadcast %cst_96 : f32 to vector<8x128xf32>
    %385 = arith.addf %384, %383 : vector<8x128xf32>
    %386 = arith.divf %384, %385 : vector<8x128xf32>
    %387 = arith.mulf %378, %342 : vector<8x128xf32>
    %388 = arith.mulf %372, %380 : vector<8x128xf32>
    %389 = arith.addf %387, %388 : vector<8x128xf32>
    %390 = math.tanh %389 : vector<8x128xf32>
    %391 = arith.mulf %386, %390 : vector<8x128xf32>
    %392 = vector.shape_cast %364 : vector<8x1xi1> to vector<8x1xi1>
    %393 = vector.broadcast %392 : vector<8x1xi1> to vector<8x128xi1>
    %394 = arith.select %393, %391, %339 : vector<8x128xi1>, vector<8x128xf32>
    %395 = vector.shape_cast %364 : vector<8x1xi1> to vector<8x1xi1>
    %396 = vector.broadcast %395 : vector<8x1xi1> to vector<8x128xi1>
    %397 = arith.select %396, %389, %342 : vector<8x128xi1>, vector<8x128xf32>
    %398 = vector.shape_cast %9 : vector<1x128xi1> to vector<1x128xi1>
    %399 = vector.broadcast %398 : vector<1x128xi1> to vector<8x128xi1>
    %400 = vector.shape_cast %366 : vector<8x1xf32> to vector<8x1xf32>
    %401 = vector.broadcast %400 : vector<8x1xf32> to vector<8x128xf32>
    %402 = arith.select %399, %401, %394 : vector<8x128xi1>, vector<8x128xf32>
    %c7 = arith.constant 7 : index
    %c0_97 = arith.constant 0 : index
    %c0_98 = arith.constant 0 : index
    %403 = vector.load %arg22[%c7, %c0_97, %c0_98] : memref<9x8x128xf32, #tpu.memory_space<vmem>>, vector<1x8x128xf32>
    %404 = vector.shape_cast %403 : vector<1x8x128xf32> to vector<8x128xf32>
    %405 = vector.shape_cast %402 : vector<8x128xf32> to vector<1x8x128xf32>
    tpu.vector_store %arg22[%c7, %c0_97, %c0_98], %405 {strides = array<i32>} : memref<9x8x128xf32, #tpu.memory_space<vmem>>, vector<1x8x128xf32>,
    %406 = vector.extract_strided_slice %6 {offsets = [56, 0], sizes = [8, 512], strides = [1, 1]} : vector<64x512xf32> to vector<8x512xf32>
    %407 = arith.truncf %394 : vector<8x128xf32> to vector<8x128xbf16>
    %c0_99 = arith.constant 0 : index
    %c0_100 = arith.constant 0 : index
    %408 = vector.load %arg5[%c0_99, %c0_100] : memref<128x512xbf16, #tpu.memory_space<vmem>>, vector<128x512xbf16>
    %cst_101 = arith.constant dense<0.000000e+00> : vector<8x512xf32>
    %409 = tpu.matmul %407, %408, %cst_101 {dimension_numbers = #tpu.dot_dimension_numbers<[1], [0], [0], [1], [0, 0, 1, 1], [], []>} : vector<8x128xbf16>, vector<128x512xbf16>, vector<8x512xf32> -> vector<8x512xf32>
    %410 = arith.addf %406, %409 : vector<8x512xf32>
    %411 = vector.broadcast %18 : vector<1x128xf32> to vector<8x128xf32>
    %412 = arith.mulf %397, %411 : vector<8x128xf32>
    %cst_102 = arith.constant dense<0.000000e+00> : vector<8xf32>
    %413 = vector.multi_reduction <add>, %412, %cst_102 [1] : vector<8x128xf32> to vector<8xf32>
    %414 = vector.shape_cast %413 : vector<8xf32> to vector<8x1xf32>
    %415 = vector.extract_strided_slice %410 {offsets = [0, 32], sizes = [8, 1], strides = [1, 1]} : vector<8x512xf32> to vector<8x1xf32>
    %416 = arith.addf %414, %415 : vector<8x1xf32>
    %c7_103 = arith.constant 7 : index
    %c0_104 = arith.constant 0 : index
    %c0_105 = arith.constant 0 : index
    %417 = vector.load %arg2[%c7_103, %c0_104, %c0_105] : memref<8x8x1xf32, #tpu.memory_space<vmem>>, vector<1x8x1xf32>
    %418 = vector.shape_cast %417 : vector<1x8x1xf32> to vector<8x1xf32>
    %419 = arith.cmpf oge, %418, %416 : vector<8x1xf32>
    %420 = arith.extui %419 : vector<8x1xi1> to vector<8x1xi32>
    %421 = arith.sitofp %420 : vector<8x1xi32> to vector<8x1xf32>
    %422 = vector.extract_strided_slice %410 {offsets = [0, 0], sizes = [8, 128], strides = [1, 1]} : vector<8x512xf32> to vector<8x128xf32>
    %423 = arith.negf %422 : vector<8x128xf32>
    %424 = math.exp %423 : vector<8x128xf32>
    %cst_106 = arith.constant 1.000000e+00 : f32
    %425 = vector.broadcast %cst_106 : f32 to vector<8x128xf32>
    %426 = arith.addf %425, %424 : vector<8x128xf32>
    %427 = arith.divf %425, %426 : vector<8x128xf32>
    %428 = vector.extract_strided_slice %410 {offsets = [0, 128], sizes = [8, 128], strides = [1, 1]} : vector<8x512xf32> to vector<8x128xf32>
    %429 = arith.negf %428 : vector<8x128xf32>
    %430 = math.exp %429 : vector<8x128xf32>
    %cst_107 = arith.constant 1.000000e+00 : f32
    %431 = vector.broadcast %cst_107 : f32 to vector<8x128xf32>
    %432 = arith.addf %431, %430 : vector<8x128xf32>
    %433 = arith.divf %431, %432 : vector<8x128xf32>
    %434 = vector.extract_strided_slice %410 {offsets = [0, 256], sizes = [8, 128], strides = [1, 1]} : vector<8x512xf32> to vector<8x128xf32>
    %435 = math.tanh %434 : vector<8x128xf32>
    %436 = vector.extract_strided_slice %410 {offsets = [0, 384], sizes = [8, 128], strides = [1, 1]} : vector<8x512xf32> to vector<8x128xf32>
    %437 = arith.negf %436 : vector<8x128xf32>
    %438 = math.exp %437 : vector<8x128xf32>
    %cst_108 = arith.constant 1.000000e+00 : f32
    %439 = vector.broadcast %cst_108 : f32 to vector<8x128xf32>
    %440 = arith.addf %439, %438 : vector<8x128xf32>
    %441 = arith.divf %439, %440 : vector<8x128xf32>
    %442 = arith.mulf %433, %397 : vector<8x128xf32>
    %443 = arith.mulf %427, %435 : vector<8x128xf32>
    %444 = arith.addf %442, %443 : vector<8x128xf32>
    %445 = math.tanh %444 : vector<8x128xf32>
    %446 = arith.mulf %441, %445 : vector<8x128xf32>
    %447 = vector.shape_cast %419 : vector<8x1xi1> to vector<8x1xi1>
    %448 = vector.broadcast %447 : vector<8x1xi1> to vector<8x128xi1>
    %449 = arith.select %448, %446, %394 : vector<8x128xi1>, vector<8x128xf32>
    %450 = vector.shape_cast %9 : vector<1x128xi1> to vector<1x128xi1>
    %451 = vector.broadcast %450 : vector<1x128xi1> to vector<8x128xi1>
    %452 = vector.shape_cast %421 : vector<8x1xf32> to vector<8x1xf32>
    %453 = vector.broadcast %452 : vector<8x1xf32> to vector<8x128xf32>
    %454 = arith.select %451, %453, %449 : vector<8x128xi1>, vector<8x128xf32>
    %c8 = arith.constant 8 : index
    %c0_109 = arith.constant 0 : index
    %c0_110 = arith.constant 0 : index
    %455 = vector.load %arg22[%c8, %c0_109, %c0_110] : memref<9x8x128xf32, #tpu.memory_space<vmem>>, vector<1x8x128xf32>
    %456 = vector.shape_cast %455 : vector<1x8x128xf32> to vector<8x128xf32>
    %457 = vector.shape_cast %454 : vector<8x128xf32> to vector<1x8x128xf32>
    tpu.vector_store %arg22[%c8, %c0_109, %c0_110], %457 {strides = array<i32>} : memref<9x8x128xf32, #tpu.memory_space<vmem>>, vector<1x8x128xf32>,
    %c0_111 = arith.constant 0 : index
    %c0_112 = arith.constant 0 : index
    %c0_113 = arith.constant 0 : index
    %458 = vector.load %arg22[%c0_111, %c0_112, %c0_113] : memref<9x8x128xf32, #tpu.memory_space<vmem>>, vector<9x8x128xf32>
    %459 = vector.shape_cast %458 : vector<9x8x128xf32> to vector<72x128xf32>
    %460 = vector.extract_strided_slice %458 {offsets = [0, 0, 32], sizes = [9, 8, 1], strides = [1, 1, 1]} : vector<9x8x128xf32> to vector<9x8x1xf32>
    %c0_114 = arith.constant 0 : index
    %c0_115 = arith.constant 0 : index
    %461 = vector.load %arg8[%c0_114, %c0_115] : memref<128x128xf32, #tpu.memory_space<vmem>>, vector<128x128xf32>
    %cst_116 = arith.constant dense<0.000000e+00> : vector<72x128xf32>
    %462 = tpu.matmul %459, %461, %cst_116 {dimension_numbers = #tpu.dot_dimension_numbers<[1], [0], [0], [1], [0, 0, 1, 1], [], []>} : vector<72x128xf32>, vector<128x128xf32>, vector<72x128xf32> -> vector<72x128xf32>
    %c0_117 = arith.constant 0 : index
    %c0_118 = arith.constant 0 : index
    %463 = vector.load %arg9[%c0_117, %c0_118] : memref<1x128xf32, #tpu.memory_space<vmem>>, vector<1x128xf32>
    %464 = vector.broadcast %463 : vector<1x128xf32> to vector<72x128xf32>
    %465 = arith.addf %462, %464 : vector<72x128xf32>
    %466 = math.tanh %465 : vector<72x128xf32>
    %c0_119 = arith.constant 0 : index
    %c0_120 = arith.constant 0 : index
    %467 = vector.load %arg12[%c0_119, %c0_120] : memref<128x1xf32, #tpu.memory_space<vmem>>, vector<128x1xf32>
    %cst_121 = arith.constant dense<0.000000e+00> : vector<72x1xf32>
    %468 = tpu.matmul %466, %467, %cst_121 {dimension_numbers = #tpu.dot_dimension_numbers<[1], [0], [0], [1], [0, 0, 1, 1], [], []>} : vector<72x128xf32>, vector<128x1xf32>, vector<72x1xf32> -> vector<72x1xf32>
    %469 = vector.shape_cast %468 : vector<72x1xf32> to vector<9x8x1xf32>
    %c0_122 = arith.constant 0 : index
    %c0_123 = arith.constant 0 : index
    %470 = vector.load %arg3[%c0_122, %c0_123] : memref<8x16xf32, #tpu.memory_space<vmem>>, vector<8x16xf32>
    %c0_124 = arith.constant 0 : index
    %c0_125 = arith.constant 0 : index
    %471 = vector.load %arg10[%c0_124, %c0_125] : memref<16x16xf32, #tpu.memory_space<vmem>>, vector<16x16xf32>
    %cst_126 = arith.constant dense<0.000000e+00> : vector<8x16xf32>
    %472 = tpu.matmul %470, %471, %cst_126 {dimension_numbers = #tpu.dot_dimension_numbers<[1], [0], [0], [1], [0, 0, 1, 1], [], []>} : vector<8x16xf32>, vector<16x16xf32>, vector<8x16xf32> -> vector<8x16xf32>
    %c0_127 = arith.constant 0 : index
    %c0_128 = arith.constant 0 : index
    %473 = vector.load %arg11[%c0_127, %c0_128] : memref<1x16xf32, #tpu.memory_space<vmem>>, vector<1x16xf32>
    %474 = vector.broadcast %473 : vector<1x16xf32> to vector<8x16xf32>
    %475 = arith.addf %472, %474 : vector<8x16xf32>
    %476 = math.tanh %475 : vector<8x16xf32>
    %c0_129 = arith.constant 0 : index
    %c0_130 = arith.constant 0 : index
    %477 = vector.load %arg13[%c0_129, %c0_130] : memref<16x1xf32, #tpu.memory_space<vmem>>, vector<16x1xf32>
    %cst_131 = arith.constant dense<0.000000e+00> : vector<8x1xf32>
    %478 = tpu.matmul %476, %477, %cst_131 {dimension_numbers = #tpu.dot_dimension_numbers<[1], [0], [0], [1], [0, 0, 1, 1], [], []>} : vector<8x16xf32>, vector<16x1xf32>, vector<8x1xf32> -> vector<8x1xf32>
    %c0_132 = arith.constant 0 : index
    %c0_133 = arith.constant 0 : index
    %479 = vector.load %arg14[%c0_132, %c0_133] : memref<1x1xf32, #tpu.memory_space<vmem>>, vector<1x1xf32>
    %480 = vector.broadcast %479 : vector<1x1xf32> to vector<8x1xf32>
    %481 = arith.addf %478, %480 : vector<8x1xf32>
    %cst_134 = arith.constant 5.000000e-01 : f32
    %482 = vector.broadcast %cst_134 : f32 to vector<9x8x1xf32>
    %483 = arith.cmpf ogt, %460, %482 : vector<9x8x1xf32>
    %484 = vector.shape_cast %481 : vector<8x1xf32> to vector<1x8x1xf32>
    %485 = vector.broadcast %484 : vector<1x8x1xf32> to vector<9x8x1xf32>
    %486 = arith.addf %469, %485 : vector<9x8x1xf32>
    %cst_135 = arith.constant -1.000000e+30 : f32
    %487 = vector.broadcast %cst_135 : f32 to vector<9x8x1xf32>
    %488 = arith.select %483, %486, %487 : vector<9x8x1xi1>, vector<9x8x1xf32>
    %cst_136 = arith.constant dense<0xFF800000> : vector<8x1xf32>
    %489 = vector.multi_reduction <maximumf>, %488, %cst_136 [0] : vector<9x8x1xf32> to vector<8x1xf32>
    %490 = vector.shape_cast %489 : vector<8x1xf32> to vector<1x8x1xf32>
    %491 = vector.broadcast %490 : vector<1x8x1xf32> to vector<9x8x1xf32>
    %492 = arith.subf %488, %491 : vector<9x8x1xf32>
    %493 = math.exp %492 : vector<9x8x1xf32>
    %494 = arith.mulf %493, %460 : vector<9x8x1xf32>
    %cst_137 = arith.constant dense<0.000000e+00> : vector<8x1xf32>
    %495 = vector.multi_reduction <add>, %494, %cst_137 [0] : vector<9x8x1xf32> to vector<8x1xf32>
    %496 = vector.shape_cast %495 : vector<8x1xf32> to vector<1x8x1xf32>
    %497 = vector.broadcast %496 : vector<1x8x1xf32> to vector<9x8x1xf32>
    %498 = arith.divf %494, %497 : vector<9x8x1xf32>
    %499 = vector.broadcast %498 : vector<9x8x1xf32> to vector<9x8x128xf32>
    %500 = arith.mulf %499, %458 : vector<9x8x128xf32>
    %cst_138 = arith.constant dense<0.000000e+00> : vector<8x128xf32>
    %501 = vector.multi_reduction <add>, %500, %cst_138 [0] : vector<9x8x128xf32> to vector<8x128xf32>
    %c0_139 = arith.constant 0 : index
    %c0_140 = arith.constant 0 : index
    %502 = vector.load %arg15[%c0_139, %c0_140] : memref<128x128xf32, #tpu.memory_space<vmem>>, vector<128x128xf32>
    %cst_141 = arith.constant dense<0.000000e+00> : vector<8x128xf32>
    %503 = tpu.matmul %501, %502, %cst_141 {dimension_numbers = #tpu.dot_dimension_numbers<[1], [0], [0], [1], [0, 0, 1, 1], [], []>} : vector<8x128xf32>, vector<128x128xf32>, vector<8x128xf32> -> vector<8x128xf32>
    %c0_142 = arith.constant 0 : index
    %c0_143 = arith.constant 0 : index
    %504 = vector.load %arg16[%c0_142, %c0_143] : memref<1x128xf32, #tpu.memory_space<vmem>>, vector<1x128xf32>
    %505 = vector.broadcast %504 : vector<1x128xf32> to vector<8x128xf32>
    %506 = arith.addf %503, %505 : vector<8x128xf32>
    %c0_144 = arith.constant 0 : index
    %c0_145 = arith.constant 0 : index
    %507 = vector.load %arg17[%c0_144, %c0_145] : memref<128x128xf32, #tpu.memory_space<vmem>>, vector<128x128xf32>
    %cst_146 = arith.constant dense<0.000000e+00> : vector<8x128xf32>
    %508 = tpu.matmul %449, %507, %cst_146 {dimension_numbers = #tpu.dot_dimension_numbers<[1], [0], [0], [1], [0, 0, 1, 1], [], []>} : vector<8x128xf32>, vector<128x128xf32>, vector<8x128xf32> -> vector<8x128xf32>
    %509 = arith.addf %506, %508 : vector<8x128xf32>
    %c0_147 = arith.constant 0 : index
    %c0_148 = arith.constant 0 : index
    %510 = vector.load %arg18[%c0_147, %c0_148] : memref<1x128xf32, #tpu.memory_space<vmem>>, vector<1x128xf32>
    %511 = vector.broadcast %510 : vector<1x128xf32> to vector<8x128xf32>
    %512 = arith.addf %509, %511 : vector<8x128xf32>
    %513 = math.tanh %512 : vector<8x128xf32>
    %c0_149 = arith.constant 0 : index
    %c0_150 = arith.constant 0 : index
    %514 = vector.load %arg19[%c0_149, %c0_150] : memref<128x128xf32, #tpu.memory_space<vmem>>, vector<128x128xf32>
    %cst_151 = arith.constant dense<0.000000e+00> : vector<8x128xf32>
    %515 = tpu.matmul %513, %514, %cst_151 {dimension_numbers = #tpu.dot_dimension_numbers<[1], [0], [0], [1], [0, 0, 1, 1], [], []>} : vector<8x128xf32>, vector<128x128xf32>, vector<8x128xf32> -> vector<8x128xf32>
    %c0_152 = arith.constant 0 : index
    %c0_153 = arith.constant 0 : index
    %516 = vector.load %arg20[%c0_152, %c0_153] : memref<1x128xf32, #tpu.memory_space<vmem>>, vector<1x128xf32>
    %517 = vector.broadcast %516 : vector<1x128xf32> to vector<8x128xf32>
    %518 = arith.addf %515, %517 : vector<8x128xf32>
    %cst_154 = arith.constant dense<0.000000e+00> : vector<8x1xf32>
    %519 = vector.multi_reduction <add>, %460, %cst_154 [0] : vector<9x8x1xf32> to vector<8x1xf32>
    %cst_155 = arith.constant 1.000000e+00 : f32
    %520 = vector.broadcast %cst_155 : f32 to vector<8x1xf32>
    %521 = arith.subf %519, %520 : vector<8x1xf32>
    %522 = tpu.iota {dimensions = array<i32: 1>} : vector<1x128xi32>
    %c4_i32 = arith.constant 4 : i32
    %523 = vector.broadcast %c4_i32 : i32 to vector<1x128xi32>
    %524 = arith.cmpi eq, %522, %523 : vector<1x128xi32>
    %525 = vector.shape_cast %524 : vector<1x128xi1> to vector<1x128xi1>
    %526 = vector.broadcast %525 : vector<1x128xi1> to vector<8x128xi1>
    %527 = vector.shape_cast %521 : vector<8x1xf32> to vector<8x1xf32>
    %528 = vector.broadcast %527 : vector<8x1xf32> to vector<8x128xf32>
    %529 = arith.select %526, %528, %518 : vector<8x128xi1>, vector<8x128xf32>
    %c0_156 = arith.constant 0 : index
    %c0_157 = arith.constant 0 : index
    %530 = vector.load %arg21[%c0_156, %c0_157] : memref<8x128xf32, #tpu.memory_space<vmem>>, vector<8x128xf32>
    tpu.vector_store %arg21[%c0_156, %c0_157], %529 {strides = array<i32>} : memref<8x128xf32, #tpu.memory_space<vmem>>, vector<8x128xf32>,
    return
  }
  func.func @transform_0(%arg0: i32) -> (i32, i32, i32) {
    %c0_i32 = arith.constant 0 : i32
    %c0_i32_0 = arith.constant 0 : i32
    %c0_i32_1 = arith.constant 0 : i32
    return %c0_i32, %arg0, %c0_i32_0 : i32, i32, i32
  }
  func.func @transform_1(%arg0: i32) -> (i32, i32, i32) {
    %c0_i32 = arith.constant 0 : i32
    %c0_i32_0 = arith.constant 0 : i32
    %c0_i32_1 = arith.constant 0 : i32
    return %c0_i32, %arg0, %c0_i32_0 : i32, i32, i32
  }
  func.func @transform_2(%arg0: i32) -> (i32, i32) {
    %c0_i32 = arith.constant 0 : i32
    %c0_i32_0 = arith.constant 0 : i32
    return %arg0, %c0_i32 : i32, i32
  }
  func.func @transform_3(%arg0: i32) -> (i32, i32) {
    %c0_i32 = arith.constant 0 : i32
    %c0_i32_0 = arith.constant 0 : i32
    %c0_i32_1 = arith.constant 0 : i32
    return %c0_i32, %c0_i32_0 : i32, i32
  }
  func.func @transform_4(%arg0: i32) -> (i32, i32) {
    %c0_i32 = arith.constant 0 : i32
    %c0_i32_0 = arith.constant 0 : i32
    %c0_i32_1 = arith.constant 0 : i32
    return %c0_i32, %c0_i32_0 : i32, i32
  }
  func.func @transform_5(%arg0: i32) -> (i32, i32) {
    %c0_i32 = arith.constant 0 : i32
    %c0_i32_0 = arith.constant 0 : i32
    %c0_i32_1 = arith.constant 0 : i32
    return %c0_i32, %c0_i32_0 : i32, i32
  }
  func.func @transform_6(%arg0: i32) -> (i32, i32) {
    %c0_i32 = arith.constant 0 : i32
    %c0_i32_0 = arith.constant 0 : i32
    %c0_i32_1 = arith.constant 0 : i32
    return %c0_i32, %c0_i32_0 : i32, i32
  }
  func.func @transform_7(%arg0: i32) -> (i32, i32) {
    %c0_i32 = arith.constant 0 : i32
    %c0_i32_0 = arith.constant 0 : i32
    %c0_i32_1 = arith.constant 0 : i32
    return %c0_i32, %c0_i32_0 : i32, i32
  }
  func.func @transform_8(%arg0: i32) -> (i32, i32) {
    %c0_i32 = arith.constant 0 : i32
    %c0_i32_0 = arith.constant 0 : i32
    %c0_i32_1 = arith.constant 0 : i32
    return %c0_i32, %c0_i32_0 : i32, i32
  }
  func.func @transform_9(%arg0: i32) -> (i32, i32) {
    %c0_i32 = arith.constant 0 : i32
    %c0_i32_0 = arith.constant 0 : i32
    %c0_i32_1 = arith.constant 0 : i32
    return %c0_i32, %c0_i32_0 : i32, i32
  }
  func.func @transform_10(%arg0: i32) -> (i32, i32) {
    %c0_i32 = arith.constant 0 : i32
    %c0_i32_0 = arith.constant 0 : i32
    %c0_i32_1 = arith.constant 0 : i32
    return %c0_i32, %c0_i32_0 : i32, i32
  }
  func.func @transform_11(%arg0: i32) -> (i32, i32) {
    %c0_i32 = arith.constant 0 : i32
    %c0_i32_0 = arith.constant 0 : i32
    %c0_i32_1 = arith.constant 0 : i32
    return %c0_i32, %c0_i32_0 : i32, i32
  }
  func.func @transform_12(%arg0: i32) -> (i32, i32) {
    %c0_i32 = arith.constant 0 : i32
    %c0_i32_0 = arith.constant 0 : i32
    %c0_i32_1 = arith.constant 0 : i32
    return %c0_i32, %c0_i32_0 : i32, i32
  }
  func.func @transform_13(%arg0: i32) -> (i32, i32) {
    %c0_i32 = arith.constant 0 : i32
    %c0_i32_0 = arith.constant 0 : i32
    %c0_i32_1 = arith.constant 0 : i32
    return %c0_i32, %c0_i32_0 : i32, i32
  }
  func.func @transform_14(%arg0: i32) -> (i32, i32) {
    %c0_i32 = arith.constant 0 : i32
    %c0_i32_0 = arith.constant 0 : i32
    %c0_i32_1 = arith.constant 0 : i32
    return %c0_i32, %c0_i32_0 : i32, i32
  }
  func.func @transform_15(%arg0: i32) -> (i32, i32) {
    %c0_i32 = arith.constant 0 : i32
    %c0_i32_0 = arith.constant 0 : i32
    %c0_i32_1 = arith.constant 0 : i32
    return %c0_i32, %c0_i32_0 : i32, i32
  }
  func.func @transform_16(%arg0: i32) -> (i32, i32) {
    %c0_i32 = arith.constant 0 : i32
    %c0_i32_0 = arith.constant 0 : i32
    %c0_i32_1 = arith.constant 0 : i32
    return %c0_i32, %c0_i32_0 : i32, i32
  }
  func.func @transform_17(%arg0: i32) -> (i32, i32) {
    %c0_i32 = arith.constant 0 : i32
    %c0_i32_0 = arith.constant 0 : i32
    %c0_i32_1 = arith.constant 0 : i32
    return %c0_i32, %c0_i32_0 : i32, i32
  }
  func.func @transform_18(%arg0: i32) -> (i32, i32) {
    %c0_i32 = arith.constant 0 : i32
    %c0_i32_0 = arith.constant 0 : i32
    %c0_i32_1 = arith.constant 0 : i32
    return %c0_i32, %c0_i32_0 : i32, i32
  }
  func.func @transform_19(%arg0: i32) -> (i32, i32) {
    %c0_i32 = arith.constant 0 : i32
    %c0_i32_0 = arith.constant 0 : i32
    %c0_i32_1 = arith.constant 0 : i32
    return %c0_i32, %c0_i32_0 : i32, i32
  }
  func.func @transform_20(%arg0: i32) -> (i32, i32) {
    %c0_i32 = arith.constant 0 : i32
    %c0_i32_0 = arith.constant 0 : i32
    return %arg0, %c0_i32 : i32, i32
  }
}

</mosaic_0001>

<bundles_post_ra>
// kernel: id_at_lstm_forward.1
= control target key start
LH: loop header
LB: loop body
LE: loop exit
PB: predicated region body
PF: predicated region fallthrough
CT: control target
= control target key end

     0   :  { %s6941_s0 = inlined_call_operand.vmem [shape: f32[8,8,16], index: 0, kind: input, shape index: {}]   ;;  %s6942_s1 = inlined_call_operand.vmem [shape: f32[8,8,1], index: 1, kind: input, shape index: {}]   ;;  %s6943_s2 = inlined_call_operand.vmem [shape: f32[8,16], index: 2, kind: input, shape index: {}]   ;;  %s6944_s3 = inlined_call_operand.vmem [shape: f32[16,512], index: 3, kind: input, shape index: {}]   ;;  %s6945_s4 = inlined_call_operand.vmem [shape: bf16[128,512], index: 4, kind: input, shape index: {}]   ;;  %s6946_s5 = inlined_call_operand.hbm [shape: f32[1,512], index: 5, kind: input, shape index: {}]   ;;  %s6947_s6 = inlined_call_operand.vmem [shape: f32[1,128], index: 6, kind: input, shape index: {}]   ;;  %s6948_s7 = inlined_call_operand.vmem [shape: f32[128,128], index: 7, kind: input, shape index: {}]   ;;  %s6949_s8 = inlined_call_operand.hbm [shape: f32[1,128], index: 8, kind: input, shape index: {}]   ;;  %s6950_s9 = inlined_call_operand.hbm [shape: f32[16,16], index: 9, kind: input, shape index: {}]   ;;  %s6951_s10 = inlined_call_operand.hbm [shape: f32[1,16], index: 10, kind: input, shape index: {}]   ;;  %s6952_s11 = inlined_call_operand.vmem [shape: f32[128,1], index: 11, kind: input, shape index: {}]   ;;  %s6953_s12 = inlined_call_operand.vmem [shape: f32[16,1], index: 12, kind: input, shape index: {}]   ;;  %s6954_s13 = inlined_call_operand.<no memory space> [shape: f32[1,1], index: 13, kind: input, shape index: {}]   ;;  %s6955_s14 = inlined_call_operand.hbm [shape: f32[128,128], index: 14, kind: input, shape index: {}]   ;;  %s6956_s15 = inlined_call_operand.hbm [shape: f32[1,128], index: 15, kind: input, shape index: {}]   ;;  %s6957_s16 = inlined_call_operand.hbm [shape: f32[128,128], index: 16, kind: input, shape index: {}]   ;;  %s6958_s17 = inlined_call_operand.hbm [shape: f32[1,128], index: 17, kind: input, shape index: {}]   ;;  %s6959_s18 = inlined_call_operand.hbm [shape: f32[128,128], index: 18, kind: input, shape index: {}]   ;;  %s6960_s19 = inlined_call_operand.hbm [shape: f32[1,128], index: 19, kind: input, shape index: {}]   ;;  %s6961_s20 = inlined_call_operand.vmem [shape: f32[8,128], index: 20, kind: output, shape index: {}]  }
   0x1   :  { %6978 = sst [smem:[#allocation45_spill]] %s6941_s0  ;;  %v25_v0 = vstv %s6954_s13 }
   0x2   :  { %6979 = sst [smem:[#allocation46_spill]] %s6942_s1  ;;  %26 = vst [vmem:[#allocation3] sm:$0x1] %v25_v0 }
   0x3   :  { %6980 = sst [smem:[#allocation47_spill]] %s6943_s2 }
   0x4   :  { %6981 = sst [smem:[#allocation48_spill]] %s6944_s3 }
   0x5   :  { %6982 = sst [smem:[#allocation49_spill]] %s6945_s4 }
   0x6   :  { %27 = vsyncpa [#allocation5], 0 }
   0x7   :  { %28 = vsyncpa [#allocation7], 0 }
   0x8   :  { %29 = vsyncpa [#allocation10], 0 }
   0x9   :  { %30 = vsyncpa [#allocation13], 0 }
   0xa   :  { %31 = vsyncpa [#allocation16], 0 }
   0xb   :  { %32 = vsyncpa [#allocation19], 0  ;;  %s5302_s23 = smov [#allocation6]   ;;  %s5303_s2 = smov [#allocation9]  }
   0xc   :  { %s63_s24 = sshll.u32 %s5302_s23, 4  ;;  %s85_s25 = sshll.u32 %s5303_s2, 4  ;;  %s64_s24 = int_to_ptr.vmem [resolvable:$true] %s63_s24  ;;  %s86_s25 = int_to_ptr.vmem [resolvable:$true] %s85_s25 }
   0xd   :  { %s5098_s3 = scalar_lea.vmem %s64_s24, 16  ;;  %s5102_s26 = scalar_lea.vmem %s64_s24, 32 }
   0xe   :  { %p5099_p0 = scmp.ne.s32.totalorder %s64_s24, %s5098_s3  ;;  %p5103_p1 = scmp.lt.s32.totalorder %s64_s24, %s64_s24 }
   0xf   :  { %p5104_p2 = scmp.lt.s32.totalorder %s5102_s26, %s5098_s3 }
  0x11   :  { %p5105_p3 = por %p5104_p2, %p5103_p1 }
  0x13   :  { %p5106_p4 = pnand %p5105_p3, %p5099_p0 }
  0x15   :  { %5109 = shalt.err (!%p5106_p4)
}
  0x16   :  { %66 = dma.hbm_to_vmem [thread:$0]  %s6949_s8, 16, %s64_s24, [#allocation7]  }
  0x17   :  { %s5118_s28 = scalar_lea.vmem %s86_s25, 16  ;;  %s5122_s4 = scalar_lea.vmem %s86_s25, 32 }
  0x18   :  { %p5119_p5 = scmp.ne.s32.totalorder %s86_s25, %s5118_s28  ;;  %p5123_p6 = scmp.lt.s32.totalorder %s86_s25, %s86_s25 }
  0x19   :  { %p5124_p7 = scmp.lt.s32.totalorder %s5122_s4, %s5118_s28 }
  0x1b   :  { %p5125_p8 = por %p5124_p7, %p5123_p6 }
  0x1d   :  { %p5126_p9 = pnand %p5125_p8, %p5119_p5 }
  0x1f   :  { %5129 = shalt.err (!%p5126_p9)
}
  0x20   :  { %88 = dma.hbm_to_vmem [thread:$0]  %s6951_s10, 16, %s86_s25, [#allocation10]  }
  0x21   :  { %s5304_s0 = smov [#allocation12]   ;;  %s5305_s1 = smov [#allocation15]  }
  0x22   :  { %s113_s21 = sshll.u32 %s5304_s0, 4  ;;  %s135_s22 = sshll.u32 %s5305_s1, 4  ;;  %s114_s21 = int_to_ptr.vmem [resolvable:$true] %s113_s21  ;;  %s136_s22 = int_to_ptr.vmem [resolvable:$true] %s135_s22 }
  0x23   :  { %s5138_s23 = scalar_lea.vmem %s114_s21, 16  ;;  %s5142_s8 = scalar_lea.vmem %s114_s21, 32 }
  0x24   :  { %p5139_p10 = scmp.ne.s32.totalorder %s114_s21, %s5138_s23  ;;  %p5143_p11 = scmp.lt.s32.totalorder %s114_s21, %s114_s21 }
  0x25   :  { %p5144_p12 = scmp.lt.s32.totalorder %s5142_s8, %s5138_s23 }
  0x27   :  { %p5145_p13 = por %p5144_p12, %p5143_p11 }
  0x29   :  { %p5146_p0 = pnand %p5145_p13, %p5139_p10 }
  0x2b   :  { %5149 = shalt.err (!%p5146_p0)
}
  0x2c   :  { %116 = dma.hbm_to_vmem [thread:$0]  %s6956_s15, 16, %s114_s21, [#allocation13]  }
  0x2d   :  { %s5158_s3 = scalar_lea.vmem %s136_s22, 16  ;;  %s5162_s10 = scalar_lea.vmem %s136_s22, 32 }
  0x2e   :  { %p5159_p1 = scmp.ne.s32.totalorder %s136_s22, %s5158_s3  ;;  %p5163_p2 = scmp.lt.s32.totalorder %s136_s22, %s136_s22 }
  0x2f   :  { %p5164_p3 = scmp.lt.s32.totalorder %s5162_s10, %s5158_s3 }
  0x31   :  { %p5165_p4 = por %p5164_p3, %p5163_p2 }
  0x33   :  { %p5166_p5 = pnand %p5165_p4, %p5159_p1 }
  0x35   :  { %5169 = shalt.err (!%p5166_p5)
}
  0x36   :  { %138 = dma.hbm_to_vmem [thread:$0]  %s6958_s17, 16, %s136_s22, [#allocation16]  }
  0x37   :  { %s5306_s13 = smov [#allocation4]   ;;  %s5307_s28 = smov [#allocation8]  }
  0x38   :  { %s49_s27 = sshll.u32 %s5306_s13, 4  ;;  %s72_s4 = sshll.u32 %s5307_s28, 4  ;;  %s50_s27 = int_to_ptr.vmem [resolvable:$true] %s49_s27  ;;  %s73_s4 = int_to_ptr.vmem [resolvable:$true] %s72_s4 }
  0x39   :  { %s5178_s29 = scalar_lea.vmem %s50_s27, 64  ;;  %p5183_p7 = scmp.lt.s32.totalorder %s50_s27, %s50_s27 }
  0x3a   :  { %p5179_p6 = scmp.ne.s32.totalorder %s50_s27, %s5178_s29  ;;  %p5184_p8 = scmp.lt.s32.totalorder %s5178_s29, %s5178_s29 }
  0x3c   :  { %p5185_p9 = por %p5184_p8, %p5183_p7 }
  0x3e   :  { %p5186_p10 = pnand %p5185_p9, %p5179_p6 }
  0x40   :  { %5189 = shalt.err (!%p5186_p10)
}
  0x41   :  { %52 = dma.hbm_to_vmem [thread:$0]  %s6946_s5, 64, %s50_s27, [#allocation5]  }
  0x42   :  { %s5198_s0 = scalar_lea.vmem %s73_s4, 256  ;;  %p5203_p12 = scmp.lt.s32.totalorder %s73_s4, %s73_s4 }
  0x43   :  { %p5199_p11 = scmp.ne.s32.totalorder %s73_s4, %s5198_s0  ;;  %p5204_p13 = scmp.lt.s32.totalorder %s5198_s0, %s5198_s0 }
  0x45   :  { %p5205_p0 = por %p5204_p13, %p5203_p12 }
  0x47   :  { %p5206_p1 = pnand %p5205_p0, %p5199_p11 }
  0x49   :  { %5209 = shalt.err (!%p5206_p1)
}
  0x4a   :  { %s5308_s17 = smov 128   ;;  %s5309_s21 = smov 8  }
  0x4b   :  { %78 = dma.hbm_to_vmem [thread:$0]  %s6950_s9, 256, %s73_s4, [#allocation7], %s5308_s17, %s5308_s17, %s5309_s21  }
  0x4c   :  { %s5310_s23 = smov [#allocation11]   ;;  %s5311_s24 = smov [#allocation14]  }
  0x4d   :  { %s100_s8 = sshll.u32 %s5310_s23, 4  ;;  %s122_s5 = sshll.u32 %s5311_s24, 4  ;;  %s101_s8 = int_to_ptr.vmem [resolvable:$true] %s100_s8  ;;  %s123_s5 = int_to_ptr.vmem [resolvable:$true] %s122_s5 }
  0x4e   :  { %s5218_s2 = scalar_lea.vmem %s101_s8, 2048  ;;  %p5223_p3 = scmp.lt.s32.totalorder %s101_s8, %s101_s8 }
  0x4f   :  { %p5219_p2 = scmp.ne.s32.totalorder %s101_s8, %s5218_s2  ;;  %p5224_p4 = scmp.lt.s32.totalorder %s5218_s2, %s5218_s2 }
  0x51   :  { %p5225_p5 = por %p5224_p4, %p5223_p3 }
  0x53   :  { %p5226_p6 = pnand %p5225_p5, %p5219_p2 }
  0x55   :  { %5229 = shalt.err (!%p5226_p6)
}
  0x56   :  { %106 = dma.hbm_to_vmem [thread:$0]  %s6955_s14, 2048, %s101_s8, [#allocation10], %s5308_s17, %s5308_s17, %s5309_s21  }
  0x57   :  { %s5238_s9 = scalar_lea.vmem %s123_s5, 2048  ;;  %p5243_p8 = scmp.lt.s32.totalorder %s123_s5, %s123_s5 }
  0x58   :  { %p5239_p7 = scmp.ne.s32.totalorder %s123_s5, %s5238_s9  ;;  %p5244_p9 = scmp.lt.s32.totalorder %s5238_s9, %s5238_s9 }
  0x5a   :  { %p5245_p10 = por %p5244_p9, %p5243_p8 }
  0x5c   :  { %p5246_p11 = pnand %p5245_p10, %p5239_p7 }
  0x5e   :  { %5249 = shalt.err (!%p5246_p11)
}
  0x5f   :  { %128 = dma.hbm_to_vmem [thread:$0]  %s6957_s16, 2048, %s123_s5, [#allocation13], %s5308_s17, %s5308_s17, %s5309_s21  }
  0x60   :  { %s5312_s13 = smov [#allocation17]   ;;  %s5313_s28 = smov [#allocation18]  }
  0x61   :  { %s144_s27 = sshll.u32 %s5312_s13, 4  ;;  %s157_s4 = sshll.u32 %s5313_s28, 4  ;;  %s145_s27 = int_to_ptr.vmem [resolvable:$true] %s144_s27  ;;  %s158_s4 = int_to_ptr.vmem [resolvable:$true] %s157_s4 }
  0x62   :  { %s5258_s14 = scalar_lea.vmem %s145_s27, 2048  ;;  %p5263_p13 = scmp.lt.s32.totalorder %s145_s27, %s145_s27 }
  0x63   :  { %p5259_p12 = scmp.ne.s32.totalorder %s145_s27, %s5258_s14  ;;  %p5264_p0 = scmp.lt.s32.totalorder %s5258_s14, %s5258_s14 }
  0x65   :  { %p5265_p1 = por %p5264_p0, %p5263_p13 }
  0x67   :  { %p5266_p2 = pnand %p5265_p1, %p5259_p12 }
  0x69   :  { %5269 = shalt.err (!%p5266_p2)
}
  0x6a   :  { %150 = dma.hbm_to_vmem [thread:$0]  %s6959_s18, 2048, %s145_s27, [#allocation16], %s5308_s17, %s5308_s17, %s5309_s21  }
  0x6b   :  { %s5278_s16 = scalar_lea.vmem %s158_s4, 16  ;;  %s5282_s30 = scalar_lea.vmem %s158_s4, 32 }
  0x6c   :  { %p5279_p3 = scmp.ne.s32.totalorder %s158_s4, %s5278_s16  ;;  %p5283_p4 = scmp.lt.s32.totalorder %s158_s4, %s158_s4 }
  0x6d   :  { %p5284_p5 = scmp.lt.s32.totalorder %s5282_s30, %s5278_s16 }
  0x6f   :  { %p5285_p6 = por %p5284_p5, %p5283_p4 }
  0x71   :  { %p5286_p7 = pnand %p5285_p6, %p5279_p3 }
  0x73   :  { %5289 = shalt.err (!%p5286_p7)
}
  0x74   :  { %160 = dma.hbm_to_vmem [thread:$0]  %s6960_s19, 16, %s158_s4, [#allocation19]  }
  0x75   :  { %5290 = dma.done.wait [#allocation5], 64  }
  0x76   :  { %5291 = vsyncadd [#allocation5], 4294967232 }
  0x77   :  { %5292 = dma.done.wait [#allocation7], 272  }
  0x78   :  { %5293 = vsyncadd [#allocation7], 4294967024 }
  0x79   :  { %5294 = dma.done.wait [#allocation10], 2064  }
  0x7a   :  { %5295 = vsyncadd [#allocation10], 4294965232 }
  0x7b   :  { %5296 = dma.done.wait [#allocation13], 2064  }
  0x7c   :  { %5297 = vsyncadd [#allocation13], 4294965232 }
  0x7d   :  { %5298 = dma.done.wait [#allocation16], 2064  }
  0x7e   :  { %5299 = vsyncadd [#allocation16], 4294965232 }
  0x7f   :  { %5300 = dma.done.wait [#allocation19], 16  }
  0x80   :  { %5301 = vsyncadd [#allocation19], 4294967280  ;;  %v6967_v1 = vmov 0.0   ;;  %v6969_v2 = vmov 0   ;;  %s6983_s17 = sld [smem:[#allocation48_spill]]  ;;  %vm230_vm0 = vcmask 130048   ;;  %v6966_v53 = vlaneseq }
  0x81   :  { %319 = vmatprep.mubr.f32.mxu0 %v6967_v1  ;;  %432 = vmatprep.mubr.f32.mxu1 %v6967_v1  ;;  %s6984_s10 = sld [smem:[#allocation45_spill]]  ;;  %v5686_v43 = vld [vmem:[%s6947_s6] ss:$0 sm:$0xff]  ;;  %v208_v56 = vld [vmem:[#allocation4] sm:$0xf]  ;;  %s5316_s21 = smov 96  }
  0x82   :  { %4792 = vset.pattern.permute.xlu1 %v6969_v2  ;;  %4793 = vset.pattern.permute.xlu0 %v6969_v2  ;;  %s6985_s26 = sld [smem:[#allocation49_spill]]  ;;  %v771_v49 = vmul.f32 0.0, %v5686_v43  ;;  %v211_v54 = vshrl.u32 %v6966_v53, 7 }
  0x83   :  { %s7000_s8 = sld [smem:[#allocation46_spill]] }
  0x84   :  { %772 = vadd.xlane.f32.xlu0 %v771_v49  ;;  %v216_v55 = vsub.s32 1, %v211_v54  ;;  %v212_v57 = vsub.s32 0, %v211_v54  ;;  %v220_v63 = vsub.s32 2, %v211_v54  ;;  %s7032_s13 = sld [smem:[#allocation47_spill]] }
  0x86   :  { %v205_v3 = vld [vmem:[%s6983_s17 + $0x28] sm:$0xff]  ;;  %v204_v4 = vld [vmem:[%s6983_s17 + $0x20] sm:$0xff]  ;;  %v207_v14 = vld [vmem:[%s6983_s17 + $0x38] sm:$0xff]  ;;  %v217_v58 = vrot.slane %v208_v56, %v216_v55  ;;  %v213_v61 = vrot.slane %v208_v56, %v212_v57 }
  0x87   :  { %v201_v5 = vld [vmem:[%s6983_s17 + $0x8] sm:$0xff]  ;;  %283 = vmatprep.subr.mxu0 %v205_v3  ;;  %v200_v6 = vld [vmem:[%s6983_s17] sm:$0xff]  ;;  %v206_v15 = vld [vmem:[%s6983_s17 + $0x30] sm:$0xff]  ;;  %396 = vmatprep.subr.mxu1 %v207_v14 }
  0x88   :  { %v192_v7 = vld [vmem:[%s6984_s10] sm:$0xff]  ;;  %284 = vmatpush1.msra.mxu0 %v204_v4  ;;  %v193_v11 = vld [vmem:[%s6984_s10 + $0x8] sm:$0xff]  ;;  %v203_v16 = vld [vmem:[%s6983_s17 + $0x18] sm:$0xff]  ;;  %397 = vmatpush1.msra.mxu1 %v206_v15  ;;  %v224_v4 = vsub.s32 3, %v211_v54 }
  0x89   :  { %v5493_v8 = vld [vmem:[%s6985_s26 + $0xe0] ss:$16 sps:$4 sm:$0xff]   ;;  %v5498_v9 = vld [vmem:[%s6985_s26 + $0xe4] ss:$16 sps:$4 sm:$0xff]   ;;  %285 = vmatprep.subr.mxu0 %v201_v5  ;;  %398 = vmatprep.subr.mxu1 %v203_v16  ;;  %v5555_v21 = vld [vmem:[%s6985_s26 + $0xec] ss:$16 sps:$4 sm:$0xff]  }
  0x8a   :  { %286 = vmatpush1.msra.mxu0 %v200_v6  ;;  %v5503_v10 = vld [vmem:[%s6985_s26 + $0xc4] ss:$16 sps:$4 sm:$0xff]   ;;  %v5515_v12 = vld [vmem:[%s6985_s26 + $0xc0] ss:$16 sps:$4 sm:$0xff]   ;;  %v195_v22 = vld [vmem:[%s6984_s10 + $0x18] sm:$0xff]  ;;  %v5802_v14 = vrot.slane %v208_v56, %v224_v4 }
  0x8b   :  { %4101 = vmatmul.mubr.msk.f32.vlgmr.msra.gmra.mxu0 %vm230_vm0, %v192_v7  ;;  %679 = vmatprep.subr.bf16.mxu0 %v5498_v9  ;;  %v5521_v13 = vld [vmem:[%s6985_s26 + $0xa4] ss:$16 sps:$4 sm:$0xff]   ;;  %v5541_v18 = vld [vmem:[%s6985_s26 + $0xa0] ss:$16 sps:$4 sm:$0xff]   ;;  %v5564_v23 = vld [vmem:[%s6985_s26 + $0xe8] ss:$16 sps:$4 sm:$0xff]  }
  0x8c   :  { %680 = vmatpush1.bf16.msra.mxu0 %v5493_v8  ;;  %325 = vmatprep.mubr.f32.mxu0 %v6967_v1  ;;  %v194_v17 = vld [vmem:[%s6984_s10 + $0x10] sm:$0xff]  ;;  %v5585_v26 = vld [vmem:[%s6985_s26 + $0xcc] ss:$16 sps:$4 sm:$0xff]   ;;  %v5592_v27 = vld [vmem:[%s6985_s26 + $0xc8] ss:$16 sps:$4 sm:$0xff]  }
  0x8d   :  { %681 = vmatprep.subr.bf16.mxu0 %v5503_v10  ;;  %v202_v19 = vld [vmem:[%s6983_s17 + $0x10] sm:$0xff]  ;;  %v196_v28 = vld [vmem:[%s6984_s10 + $0x20] sm:$0xff]  ;;  %v5616_v31 = vld [vmem:[%s6985_s26 + $0xac] ss:$16 sps:$4 sm:$0xff]  }
  0x8e   :  { %v5550_v20 = vld [vmem:[%s6985_s26 + $0x84] ss:$16 sps:$4 sm:$0xff]   ;;  %399 = vmatpush1.msra.mxu1 %v202_v19  ;;  %v5571_v24 = vld [vmem:[%s6985_s26 + $0x80] ss:$16 sps:$4 sm:$0xff]   ;;  %v5623_v32 = vld [vmem:[%s6985_s26 + $0xa8] ss:$16 sps:$4 sm:$0xff]  }
  0x8f   :  { %4102 = vmatmul.mubr.msk.f32.gmra.mxu0 %vm230_vm0, %v193_v11  ;;  %v5577_v25 = vld [vmem:[%s6985_s26 + $0x64] ss:$16 sps:$4 sm:$0xff]   ;;  %4109 = vmatmul.mubr.msk.f32.vlgmr.msra.gmra.mxu1 %vm230_vm0, %v192_v7  ;;  %v5602_v29 = vld [vmem:[%s6985_s26 + $0x60] ss:$16 sps:$4 sm:$0xff]   ;;  %v197_v33 = vld [vmem:[%s6984_s10 + $0x28] sm:$0xff]  ;;  %v5798_v7 = vrot.slane %v208_v56, %v220_v63 }
  0x90   :  { %682 = vmatpush1.bf16.msra.mxu0 %v5515_v12  ;;  %331 = vmatprep.mubr.f32.mxu0 %v6967_v1  ;;  %v5608_v30 = vld [vmem:[%s6985_s26 + $0x44] ss:$16 sps:$4 sm:$0xff]   ;;  %v5633_v34 = vld [vmem:[%s6985_s26 + $0x40] ss:$16 sps:$4 sm:$0xff]   ;;  %v5650_v37 = vld [vmem:[%s6985_s26 + $0x8c] ss:$16 sps:$4 sm:$0xff]  }
  0x91   :  { %683 = vmatprep.subr.bf16.mxu0 %v5521_v13  ;;  %720 = vmatprep.subr.bf16.mxu1 %v5555_v21  ;;  %v5639_v35 = vld [vmem:[%s6985_s26 + $0x24] ss:$16 sps:$4 sm:$0xff]   ;;  %v5657_v38 = vld [vmem:[%s6985_s26 + $0x88] ss:$16 sps:$4 sm:$0xff]   ;;  %v5664_v39 = vld [vmem:[%s6985_s26 + $0x20] ss:$16 sps:$4 sm:$0xff]  }
  0x92   :  { %438 = vmatprep.mubr.f32.mxu1 %v6967_v1  ;;  %721 = vmatpush1.bf16.msra.mxu1 %v5564_v23  ;;  %v198_v36 = vld [vmem:[%s6984_s10 + $0x30] sm:$0xff]  ;;  %v5674_v41 = vld [vmem:[%s6985_s26 + $0x6c] ss:$16 sps:$4 sm:$0xff]   ;;  %v5681_v42 = vld [vmem:[%s6985_s26 + $0x68] ss:$16 sps:$4 sm:$0xff]  }
  0x93   :  { %4103 = vmatmul.mubr.msk.f32.gmra.mxu0 %vm230_vm0, %v194_v17  ;;  %4110 = vmatmul.mubr.msk.f32.gmra.mxu1 %vm230_vm0, %v193_v11  ;;  %v5669_v40 = vld [vmem:[%s6985_s26 + $0x4] ss:$16 sps:$4 sm:$0xff]   ;;  %v199_v44 = vld [vmem:[%s6984_s10 + $0x38] sm:$0xff]  ;;  %v5694_v45 = vld [vmem:[%s6985_s26] ss:$16 sps:$4 sm:$0xff]  }
  0x94   :  { %684 = vmatpush1.bf16.msra.mxu0 %v5541_v18  ;;  %337 = vmatprep.mubr.f32.mxu0 %v6967_v1  ;;  %v5703_v46 = vld [vmem:[%s6985_s26 + $0x4c] ss:$16 sps:$4 sm:$0xff]   ;;  %v5712_v47 = vld [vmem:[%s6985_s26 + $0x48] ss:$16 sps:$4 sm:$0xff]  }
  0x95   :  { %685 = vmatprep.subr.bf16.mxu0 %v5550_v20  ;;  %722 = vmatprep.subr.bf16.mxu1 %v5585_v26  ;;  %v5719_v48 = vld [vmem:[%s6985_s26 + $0x2c] ss:$16 sps:$4 sm:$0xff]   ;;  %v5731_v50 = vld [vmem:[%s6985_s26 + $0x28] ss:$16 sps:$4 sm:$0xff]  }
  0x96   :  { %444 = vmatprep.mubr.f32.mxu1 %v6967_v1  ;;  %723 = vmatpush1.bf16.msra.mxu1 %v5592_v27  ;;  %v5737_v51 = vld [vmem:[%s6985_s26 + $0xc] ss:$16 sps:$4 sm:$0xff]   ;;  %v5747_v52 = vld [vmem:[%s6985_s26 + $0x8] ss:$16 sps:$4 sm:$0xff]  }
  0x97   :  { %4104 = vmatmul.mubr.msk.f32.gmra.mxu0 %vm230_vm0, %v195_v22  ;;  %4111 = vmatmul.mubr.msk.f32.gmra.mxu1 %vm230_vm0, %v194_v17 }
  0x98   :  { %686 = vmatpush1.bf16.msra.mxu0 %v5571_v24  ;;  %343 = vmatprep.mubr.f32.mxu0 %v6967_v1 }
  0x99   :  { %687 = vmatprep.subr.bf16.mxu0 %v5577_v25  ;;  %724 = vmatprep.subr.bf16.mxu1 %v5616_v31 }
  0x9a   :  { %450 = vmatprep.mubr.f32.mxu1 %v6967_v1  ;;  %725 = vmatpush1.bf16.msra.mxu1 %v5623_v32 }
  0x9b   :  { %4105 = vmatmul.mubr.msk.f32.gmra.mxu0 %vm230_vm0, %v196_v28  ;;  %4112 = vmatmul.mubr.msk.f32.gmra.mxu1 %vm230_vm0, %v195_v22 }
  0x9c   :  { %688 = vmatpush1.bf16.msra.mxu0 %v5602_v29  ;;  %349 = vmatprep.mubr.f32.mxu0 %v6967_v1 }
  0x9d   :  { %689 = vmatprep.subr.bf16.mxu0 %v5608_v30  ;;  %726 = vmatprep.subr.bf16.mxu1 %v5650_v37 }
  0x9e   :  { %456 = vmatprep.mubr.f32.mxu1 %v6967_v1  ;;  %727 = vmatpush1.bf16.msra.mxu1 %v5657_v38 }
  0x9f   :  { %4106 = vmatmul.mubr.msk.f32.gmra.mxu0 %vm230_vm0, %v197_v33  ;;  %4113 = vmatmul.mubr.msk.f32.gmra.mxu1 %vm230_vm0, %v196_v28 }
  0xa0   :  { %690 = vmatpush1.bf16.msra.mxu0 %v5633_v34  ;;  %355 = vmatprep.mubr.f32.mxu0 %v6967_v1 }
  0xa1   :  { %691 = vmatprep.subr.bf16.mxu0 %v5639_v35  ;;  %728 = vmatprep.subr.bf16.mxu1 %v5674_v41 }
  0xa2   :  { %462 = vmatprep.mubr.f32.mxu1 %v6967_v1  ;;  %729 = vmatpush1.bf16.msra.mxu1 %v5681_v42 }
  0xa3   :  { %4107 = vmatmul.mubr.msk.f32.gmra.mxu0 %vm230_vm0, %v198_v36  ;;  %4114 = vmatmul.mubr.msk.f32.gmra.mxu1 %vm230_vm0, %v197_v33 }
  0xa4   :  { %692 = vmatpush1.bf16.msra.mxu0 %v5664_v39  ;;  %361 = vmatprep.mubr.f32.mxu0 %v6967_v1 }
  0xa5   :  { %693 = vmatprep.subr.bf16.mxu0 %v5669_v40  ;;  %730 = vmatprep.subr.bf16.mxu1 %v5703_v46 }
  0xa6   :  { %468 = vmatprep.mubr.f32.mxu1 %v6967_v1  ;;  %731 = vmatpush1.bf16.msra.mxu1 %v5712_v47 }
  0xa7   :  { %4108 = vmatmul.mubr.msk.f32.gmra.mxu0 %vm230_vm0, %v199_v44  ;;  %732 = vmatprep.subr.bf16.mxu1 %v5719_v48 }
  0xa8   :  { %694 = vmatpush1.bf16.msra.mxu0 %v5694_v45  ;;  %711 = vmatprep.mubr.bf16.mxu0 %v6969_v2 }
  0xa9   :  { %1016 = vmatprep.subr.bf16.mxu0 %v5498_v9  ;;  %4115 = vmatmul.mubr.msk.f32.gmra.mxu1 %vm230_vm0, %v198_v36 }
  0xaa   :  { %474 = vmatprep.mubr.f32.mxu1 %v6967_v1  ;;  %733 = vmatpush1.bf16.msra.mxu1 %v5731_v50 }
  0xab   :  { %712 = vmatmul.mubr.bf16.vlgmr.msra.gmra.mxu0 %v6969_v2  ;;  %734 = vmatprep.subr.bf16.mxu1 %v5737_v51 }
  0xac   :  { %1017 = vmatpush1.bf16.msra.mxu0 %v5493_v8  ;;  %1048 = vmatprep.mubr.bf16.mxu0 %v6969_v2 }
  0xad   :  { %1018 = vmatprep.subr.bf16.mxu0 %v5503_v10  ;;  %4116 = vmatmul.mubr.msk.f32.gmra.mxu1 %vm230_vm0, %v199_v44 }
  0xae   :  { %752 = vmatprep.mubr.bf16.mxu1 %v6969_v2  ;;  %735 = vmatpush1.bf16.msra.mxu1 %v5747_v52 }
  0xaf   :  { %1057 = vmatprep.subr.bf16.mxu1 %v5555_v21 }
  0xb0   :  { %1019 = vmatpush1.bf16.msra.mxu0 %v5515_v12 }
  0xb1   :  { %1020 = vmatprep.subr.bf16.mxu0 %v5521_v13  ;;  %753 = vmatmul.mubr.bf16.vlgmr.msra.gmra.mxu1 %v6969_v2 }
  0xb2   :  { %1058 = vmatpush1.bf16.msra.mxu1 %v5564_v23  ;;  %1089 = vmatprep.mubr.bf16.mxu1 %v6969_v2 }
  0xb3   :  { %1059 = vmatprep.subr.bf16.mxu1 %v5585_v26 }
  0xb4   :  { %1021 = vmatpush1.bf16.msra.mxu0 %v5541_v18 }
  0xb5   :  { %1022 = vmatprep.subr.bf16.mxu0 %v5550_v20 }
  0xb6   :  { %1060 = vmatpush1.bf16.msra.mxu1 %v5592_v27 }
  0xb7   :  { %1061 = vmatprep.subr.bf16.mxu1 %v5616_v31 }
  0xb8   :  { %1023 = vmatpush1.bf16.msra.mxu0 %v5571_v24 }
  0xb9   :  { %1024 = vmatprep.subr.bf16.mxu0 %v5577_v25 }
  0xba   :  { %1062 = vmatpush1.bf16.msra.mxu1 %v5623_v32 }
  0xbb   :  { %1063 = vmatprep.subr.bf16.mxu1 %v5650_v37 }
  0xbc   :  { %1025 = vmatpush1.bf16.msra.mxu0 %v5602_v29 }
  0xbd   :  { %1026 = vmatprep.subr.bf16.mxu0 %v5608_v30 }
  0xbe   :  { %1064 = vmatpush1.bf16.msra.mxu1 %v5657_v38 }
  0xbf   :  { %1065 = vmatprep.subr.bf16.mxu1 %v5674_v41 }
  0xc0   :  { %1027 = vmatpush1.bf16.msra.mxu0 %v5633_v34 }
  0xc1   :  { %1028 = vmatprep.subr.bf16.mxu0 %v5639_v35 }
  0xc2   :  { %1066 = vmatpush1.bf16.msra.mxu1 %v5681_v42 }
  0xc3   :  { %1067 = vmatprep.subr.bf16.mxu1 %v5703_v46 }
  0xc4   :  { %1029 = vmatpush1.bf16.msra.mxu0 %v5664_v39 }
  0xc5   :  { %1030 = vmatprep.subr.bf16.mxu0 %v5669_v40 }
  0xc6   :  { %1068 = vmatpush1.bf16.msra.mxu1 %v5712_v47 }
  0xc7   :  { %1069 = vmatprep.subr.bf16.mxu1 %v5719_v48 }
  0xc8   :  { %1031 = vmatpush1.bf16.msra.mxu0 %v5694_v45 }
  0xc9   :  { %1346 = vmatprep.subr.bf16.mxu0 %v5498_v9 }
  0xca   :  { %1070 = vmatpush1.bf16.msra.mxu1 %v5731_v50 }
  0xcb   :  { %1071 = vmatprep.subr.bf16.mxu1 %v5737_v51 }
  0xce   :  { %1072 = vmatpush1.bf16.msra.mxu1 %v5747_v52 }
  0xcf   :  { %1387 = vmatprep.subr.bf16.mxu1 %v5555_v21 }
 0x14b   :  { %v321_v59 = vpop.f32.mrf.mxu0 }
 0x14d   :  { %v323_v60 = vpop.f32.mrf.mxu0 }
 0x14e   :  { %v5792_v62 = vadd.f32 %v323_v60, %v217_v58 }
 0x14f   :  { %v327_v0 = vpop.f32.mrf.mxu0  ;;  %v434_v16 = vpop.f32.mrf.mxu1 }
 0x150   :  { %v5794_v3 = vadd.f32 %v327_v0, %v213_v61  ;;  %v5807_v19 = vadd.f32 %v434_v16, %v5798_v7 }
 0x151   :  { %v329_v5 = vpop.f32.mrf.mxu0  ;;  %v436_v28 = vpop.f32.mrf.mxu1 }
 0x152   :  { %v5796_v6 = vadd.f32 %v329_v5, %v217_v58  ;;  %v5812_v36 = vadd.f32 %v436_v28, %v5802_v14 }
 0x153   :  { %v333_v9 = vpop.f32.mrf.mxu0  ;;  %v440_v49 = vpop.f32.mrf.mxu1 }
 0x154   :  { %v5800_v11 = vadd.f32 %v333_v9, %v213_v61  ;;  %v5817_v55 = vadd.f32 %v440_v49, %v5798_v7 }
 0x155   :  { %v335_v15 = vpop.f32.mrf.mxu0  ;;  %v442_v57 = vpop.f32.mrf.mxu1 }
 0x156   :  { %v5804_v17 = vadd.f32 %v335_v15, %v217_v58  ;;  %v5822_v63 = vadd.f32 %v442_v57, %v5802_v14 }
 0x157   :  { %v339_v22 = vpop.f32.mrf.mxu0  ;;  %v446_v4 = vpop.f32.mrf.mxu1 }
 0x158   :  { %v5809_v33 = vadd.f32 %v339_v22, %v213_v61  ;;  %v5827_v9 = vadd.f32 %v446_v4, %v5798_v7 }
 0x159   :  { %v341_v44 = vpop.f32.mrf.mxu0  ;;  %v448_v16 = vpop.f32.mrf.mxu1 }
 0x15a   :  { %v5814_v54 = vadd.f32 %v341_v44, %v217_v58  ;;  %v5832_v28 = vadd.f32 %v448_v16, %v5802_v14 }
 0x15b   :  { %v345_v56 = vpop.f32.mrf.mxu0  ;;  %v452_v49 = vpop.f32.mrf.mxu1 }
 0x15c   :  { %6986 = vst [vmem:[#allocation26_spill] sm:$0xff] %v5814_v54  ;;  %v5819_v60 = vadd.f32 %v345_v56, %v213_v61  ;;  %v5837_v57 = vadd.f32 %v452_v49, %v5798_v7 }
 0x15d   :  { %v347_v0 = vpop.f32.mrf.mxu0 }
 0x15e   :  { %6987 = vst [vmem:[#allocation27_spill] sm:$0xff] %v5819_v60  ;;  %v5824_v5 = vadd.f32 %v347_v0, %v217_v58  ;;  %6991 = vst [vmem:[#allocation31_spill] sm:$0xff] %v5837_v57  ;;  %v454_v0 = vpop.f32.mrf.mxu1 }
 0x15f   :  { %v351_v15 = vpop.f32.mrf.mxu0  ;;  %v5842_v4 = vadd.f32 %v454_v0, %v5802_v14  ;;  %v773_v0 = vpop.xlane.xlu0 %772 }
 0x160   :  { %6988 = vst [vmem:[#allocation28_spill] sm:$0xff] %v5824_v5  ;;  %v5829_v22 = vadd.f32 %v351_v15, %v213_v61  ;;  %v458_v15 = vpop.f32.mrf.mxu1 }
 0x161   :  { %v353_v44 = vpop.f32.mrf.mxu0  ;;  %6993 = vst [vmem:[#allocation33_spill] sm:$0xff] %v5842_v4  ;;  %v5847_v16 = vadd.f32 %v458_v15, %v5798_v7 }
 0x162   :  { %6989 = vst [vmem:[#allocation29_spill] sm:$0xff] %v5829_v22  ;;  %v5834_v56 = vadd.f32 %v353_v44, %v217_v58  ;;  %v460_v44 = vpop.f32.mrf.mxu1 }
 0x163   :  { %v357_v53 = vpop.f32.mrf.mxu0  ;;  %6995 = vst [vmem:[#allocation35_spill] sm:$0xff] %v5847_v16  ;;  %v5852_v49 = vadd.f32 %v460_v44, %v5802_v14 }
 0x164   :  { %6990 = vst [vmem:[#allocation30_spill] sm:$0xff] %v5834_v56  ;;  %v5839_v1 = vadd.f32 %v357_v53, %v213_v61  ;;  %v464_v53 = vpop.f32.mrf.mxu1 }
 0x165   :  { %v359_v2 = vpop.f32.mrf.mxu0  ;;  %6997 = vst [vmem:[#allocation37_spill] sm:$0xff] %v5852_v49  ;;  %v5857_v4 = vadd.f32 %v464_v53, %v5798_v7 }
 0x166   :  { %6992 = vst [vmem:[#allocation32_spill] sm:$0xff] %v5839_v1  ;;  %v5844_v22 = vadd.f32 %v359_v2, %v217_v58  ;;  %v322_v1 = vadd.f32 %v321_v59, %v213_v61 }
 0x167   :  { %v363_v5 = vpop.f32.mrf.mxu0 }
 0x168   :  { %6994 = vst [vmem:[#allocation34_spill] sm:$0xff] %v5844_v22  ;;  %v5849_v56 = vadd.f32 %v363_v5, %v213_v61  ;;  %v466_v22 = vpop.f32.mrf.mxu1 }
 0x169   :  { %v365_v60 = vpop.f32.mrf.mxu0  ;;  %v5860_v16 = vadd.f32 %v466_v22, %v5802_v14 }
 0x16a   :  { %6996 = vst [vmem:[#allocation36_spill] sm:$0xff] %v5849_v56  ;;  %v5854_v54 = vadd.f32 %v365_v60, %v217_v58  ;;  %v470_v56 = vpop.f32.mrf.mxu1 }
 0x16b   :  { %v713_v2 = vpop.f32.mrf.mxu0  ;;  %v5864_v59 = vadd.f32 %v470_v56, %v5798_v7 }
 0x16c   :  { %6998 = vst [vmem:[#allocation38_spill] sm:$0xff] %v5854_v54  ;;  %v761_v15 = vadd.f32 %v713_v2, %v322_v1  ;;  %v472_v61 = vpop.f32.mrf.mxu1 }
 0x16d   :  { %v715_v5 = vpop.f32.mrf.mxu0  ;;  %v5868_v1 = vadd.f32 %v472_v61, %v5802_v14 }
 0x16e   :  { %v4151_v57 = vmul.f32 -1.442695, %v761_v15  ;;  %v774_v44 = vadd.f32 %v773_v0, %v761_v15  ;;  %v762_v49 = vadd.f32 %v715_v5, %v5792_v62  ;;  %v476_v53 = vpop.f32.mrf.mxu1 }
 0x16f   :  { %v717_v58 = vpop.f32.mrf.mxu0  ;;  %v5871_v0 = vadd.f32 %v476_v53, %v5798_v7 }
 0x170   :  { %4919 = vpow2.f32 %v4151_v57  ;;  %v4152_v60 = vmul.f32 -1.442695, %v762_v49  ;;  %777 = vrot.lane.b32.xlu0 %v774_v44, %s5316_s21  ;;  %v478_v62 = vpop.f32.mrf.mxu1 }
 0x171   :  { %v718_v22 = vpop.f32.mrf.mxu0  ;;  %v5874_v56 = vadd.f32 %v478_v62, %v5802_v14 }
 0x172   :  { %4921 = vpow2.f32 %v4152_v60  ;;  %v754_v2 = vpop.f32.mrf.mxu1 }
 0x173   :  { %6999 = vst [vmem:[#allocation39_spill] sm:$0xff] %v5874_v56  ;;  %v763_v57 = vadd.f32 %v754_v2, %v5807_v19 }
 0x174   :  { %v756_v49 = vpop.f32.mrf.mxu1 }
 0x175   :  { %v764_v15 = vadd.f32 %v756_v49, %v5812_v36  ;;  %4923 = vtanh.f32 %v763_v57  ;;  %v5883_v57 = vld [vmem:[%s7000_s8] sm:$0xff] }
 0x176   :  { %v758_v5 = vpop.f32.mrf.mxu1 }
 0x177   :  { %v4153_v44 = vmul.f32 -1.442695, %v764_v15 }
 0x178   :  { %v759_v58 = vpop.f32.mrf.mxu1 }
 0x179   :  { %4925 = vpow2.f32 %v4153_v44  ;;  %v7001_v58 = vmov 0  }
 0x17d   :  { %v4920_v61 = vpop.eup %4919 }
 0x17e   :  { %v786_v22 = vadd.f32 1.0, %v4920_v61 }
 0x17f   :  { %v4922_v60 = vpop.eup %4921 }
 0x180   :  { %4927 = vrcp.f32 %v786_v22  ;;  %v792_v7 = vadd.f32 1.0, %v4922_v60 }
 0x182   :  { %4929 = vrcp.f32 %v792_v7  ;;  %v4924_v53 = vpop.eup %4923 }
 0x186   :  { %v4926_v14 = vpop.eup %4925 }
 0x187   :  { %v799_v56 = vadd.f32 1.0, %v4926_v14 }
 0x189   :  { %4931 = vrcp.f32 %v799_v56 }
 0x18d   :  { %v4928_v62 = vpop.eup %4927 }
 0x18e   :  { %v803_v54 = vmul.f32 %v4928_v62, %v4924_v53 }
 0x18f   :  { %v4930_v19 = vpop.eup %4929 }
 0x190   :  { %v802_v2 = vmul.f32 0.0, %v4930_v19 }
 0x192   :  { %v804_v36 = vadd.f32 %v803_v54, %v802_v2 }
 0x194   :  { %4933 = vtanh.f32 %v804_v36 }
 0x196   :  { %v4932_v49 = vpop.eup %4931 }
 0x1a1   :  { %v4934_v15 = vpop.eup %4933 }
 0x1a2   :  { %v5878_v5 = vmul.f32 %v4934_v15, %v4932_v49 }
 0x1a4   :  { %v4187_v61 = vpack.c.bf16 %v5878_v5, %v5878_v5 }
 0x1e2   :  { %v5885_v44 = vpop.permute.xlu0 %777 }
 0x1e3   :  { %vm780_vm1 = vcmp.ge.f32.partialorder %v5883_v57, %v5885_v44 }
 0x1e4   :  { %v781_v54 = vsel %vm780_vm1, 1, %v7001_v58 }
 0x1e5   :  { %808 = vperm.xlu1 %4792, %v781_v54  }
 0x260   :  { %v5893_v56 = vpop.permute.xlu1 %808 }
 0x261   :  { %vm810_vm2 = vcmp.eq.s32.totalorder %v5893_v56, 1 }
 0x262   :  { %v5900_v22 = vsel %vm810_vm2, %v804_v36, 0.0  ;;  %vm4186_vm3 = vmpackc.low %vm810_vm2, %vm810_vm2 }
 0x263   :  { %4188 = vmatmul.mubr.msk.bf16.vlgmr.msra.gmra.mxu0 %vm4186_vm3, %v4187_v61  ;;  %4191 = vmatmul.mubr.msk.bf16.vlgmr.msra.gmra.mxu1 %vm4186_vm3, %v4187_v61  ;;  %v1102_v60 = vmul.f32 %v5686_v43, %v5900_v22  ;;  %v5949_v61 = vld [vmem:[%s7000_s8 + $0x8] sm:$0xff] }
 0x264   :  { %1347 = vmatpush1.bf16.msra.mxu0 %v5493_v8  ;;  %1388 = vmatpush1.bf16.msra.mxu1 %v5564_v23  ;;  %7002 = vst [vmem:[#allocation40_spill] sm:$0xff] %v5949_v61 }
 0x265   :  { %1103 = vadd.xlane.f32.xlu1 %v1102_v60  ;;  %1348 = vmatprep.subr.bf16.mxu0 %v5503_v10 }
 0x266   :  { %1389 = vmatprep.subr.bf16.mxu1 %v5585_v26  ;;  %1378 = vmatprep.mubr.bf16.mxu0 %v7001_v58 }
 0x267   :  { %1419 = vmatprep.mubr.bf16.mxu1 %v7001_v58 }
 0x268   :  { %1349 = vmatpush1.bf16.msra.mxu0 %v5515_v12  ;;  %1390 = vmatpush1.bf16.msra.mxu1 %v5592_v27 }
 0x269   :  { %1350 = vmatprep.subr.bf16.mxu0 %v5521_v13  ;;  %1391 = vmatprep.subr.bf16.mxu1 %v5616_v31 }
 0x26c   :  { %1351 = vmatpush1.bf16.msra.mxu0 %v5541_v18  ;;  %1392 = vmatpush1.bf16.msra.mxu1 %v5623_v32 }
 0x26d   :  { %1352 = vmatprep.subr.bf16.mxu0 %v5550_v20  ;;  %1393 = vmatprep.subr.bf16.mxu1 %v5650_v37 }
 0x270   :  { %1353 = vmatpush1.bf16.msra.mxu0 %v5571_v24  ;;  %1394 = vmatpush1.bf16.msra.mxu1 %v5657_v38 }
 0x271   :  { %1354 = vmatprep.subr.bf16.mxu0 %v5577_v25  ;;  %1395 = vmatprep.subr.bf16.mxu1 %v5674_v41 }
 0x274   :  { %1355 = vmatpush1.bf16.msra.mxu0 %v5602_v29  ;;  %1396 = vmatpush1.bf16.msra.mxu1 %v5681_v42 }
 0x275   :  { %1356 = vmatprep.subr.bf16.mxu0 %v5608_v30  ;;  %1397 = vmatprep.subr.bf16.mxu1 %v5703_v46 }
 0x278   :  { %1357 = vmatpush1.bf16.msra.mxu0 %v5633_v34  ;;  %1398 = vmatpush1.bf16.msra.mxu1 %v5712_v47 }
 0x279   :  { %1358 = vmatprep.subr.bf16.mxu0 %v5639_v35  ;;  %1399 = vmatprep.subr.bf16.mxu1 %v5719_v48 }
 0x27c   :  { %1359 = vmatpush1.bf16.msra.mxu0 %v5664_v39  ;;  %1400 = vmatpush1.bf16.msra.mxu1 %v5731_v50 }
 0x27d   :  { %1360 = vmatprep.subr.bf16.mxu0 %v5669_v40  ;;  %1401 = vmatprep.subr.bf16.mxu1 %v5737_v51 }
 0x280   :  { %1361 = vmatpush1.bf16.msra.mxu0 %v5694_v45  ;;  %1402 = vmatpush1.bf16.msra.mxu1 %v5747_v52 }
 0x281   :  { %1717 = vmatprep.subr.bf16.mxu1 %v5555_v21 }
 0x2ee   :  { %v1104_v12 = vpop.xlane.xlu1 %1103 }
 0x323   :  { %v1050_v8 = vpop.f32.mrf.mxu0  ;;  %v1091_v10 = vpop.f32.mrf.mxu1 }
 0x324   :  { %v1098_v13 = vadd.f32 %v1050_v8, %v5794_v3  ;;  %v1100_v18 = vadd.f32 %v1091_v10, %v5817_v55 }
 0x325   :  { %v1052_v20 = vpop.f32.mrf.mxu0  ;;  %v1093_v24 = vpop.f32.mrf.mxu1 }
 0x326   :  { %v1105_v25 = vadd.f32 %v1104_v12, %v1098_v13  ;;  %v4194_v29 = vmul.f32 -1.442695, %v1098_v13  ;;  %v1099_v30 = vadd.f32 %v1052_v20, %v5796_v6  ;;  %v1101_v34 = vadd.f32 %v1093_v24, %v5822_v63 }
 0x327   :  { %v1054_v35 = vpop.f32.mrf.mxu0  ;;  %v1095_v39 = vpop.f32.mrf.mxu1  ;;  %v5962_v12 = vsel %vm810_vm2, %v5878_v5, 0.0  ;;  %vm5317_vm2 = vmmov 0  }
 0x328   :  { %4935 = vpow2.f32 %v4194_v29  ;;  %v4195_v40 = vmul.f32 -1.442695, %v1099_v30  ;;  %1109 = vrot.lane.b32.xlu0 %v1105_v25, %s5316_s21  ;;  %v4196_v51 = vmul.f32 -1.442695, %v1101_v34  ;;  %7004 = vst [vmem:[#allocation42_spill] sm:$0xff] %v5962_v12 }
 0x329   :  { %v1055_v21 = vpop.f32.mrf.mxu0  ;;  %v1096_v45 = vpop.f32.mrf.mxu1  ;;  %v6050_v39 = vld [vmem:[%s6985_s26 + $0x60] ss:$16 sps:$4 sm:$0xff]  }
 0x32a   :  { %4937 = vpow2.f32 %v4195_v40  ;;  %v6056_v40 = vld [vmem:[%s6985_s26 + $0x44] ss:$16 sps:$4 sm:$0xff]   ;;  %v6062_v21 = vld [vmem:[%s6985_s26 + $0x40] ss:$16 sps:$4 sm:$0xff]  }
 0x32b   :  { %4939 = vtanh.f32 %v1100_v18  ;;  %v6068_v45 = vld [vmem:[%s6985_s26 + $0x24] ss:$16 sps:$4 sm:$0xff]  }
 0x32c   :  { %4941 = vpow2.f32 %v4196_v51 }
 0x335   :  { %v4936_v52 = vpop.eup %4935 }
 0x336   :  { %v1118_v3 = vadd.f32 1.0, %v4936_v52  ;;  %v6074_v52 = vld [vmem:[%s6985_s26 + $0x20] ss:$16 sps:$4 sm:$0xff]  }
 0x337   :  { %v4938_v55 = vpop.eup %4937 }
 0x338   :  { %4943 = vrcp.f32 %v1118_v3  ;;  %v1124_v7 = vadd.f32 1.0, %v4938_v55  ;;  %v4940_v6 = vpop.eup %4939 }
 0x339   :  { %v4942_v63 = vpop.eup %4941 }
 0x33a   :  { %4945 = vrcp.f32 %v1124_v7  ;;  %v1131_v19 = vadd.f32 1.0, %v4942_v63 }
 0x33c   :  { %4947 = vrcp.f32 %v1131_v19 }
 0x345   :  { %v4944_v53 = vpop.eup %4943 }
 0x346   :  { %v1135_v14 = vmul.f32 %v4944_v53, %v4940_v6 }
 0x347   :  { %v4946_v62 = vpop.eup %4945 }
 0x348   :  { %v1134_v2 = vmul.f32 %v4946_v62, %v5900_v22 }
 0x349   :  { %v4948_v49 = vpop.eup %4947 }
 0x34a   :  { %v1136_v36 = vadd.f32 %v1135_v14, %v1134_v2 }
 0x34c   :  { %4949 = vtanh.f32 %v1136_v36 }
 0x359   :  { %v4950_v15 = vpop.eup %4949 }
 0x35a   :  { %v1138_v54 = vmul.f32 %v4950_v15, %v4948_v49 }
 0x39a   :  { %v5951_v60 = vpop.permute.xlu0 %1109 }
 0x39b   :  { %7003 = vst [vmem:[#allocation41_spill] sm:$0xff] %v5951_v60  ;;  %vm1112_vm4 = vcmp.ge.f32.partialorder %v5949_v61, %v5951_v60 }
 0x39c   :  { %v1113_v8 = vsel %vm1112_vm4, 1, %v7001_v58 }
 0x39d   :  { %1140 = vperm.xlu0 %4793, %v1113_v8  }
 0x418   :  { %v1141_v10 = vpop.permute.xlu0 %1140 }
 0x419   :  { %vm1142_vm5 = vcmp.eq.s32.totalorder %v1141_v10, 1  ;;  %v6082_v10 = vld [vmem:[%s7000_s8 + $0x10] sm:$0xff] }
 0x41a   :  { %v5965_v13 = vsel %vm1142_vm5, %v1138_v54, %v5962_v12  ;;  %v5968_v18 = vsel %vm1142_vm5, %v1136_v36, %v5900_v22  ;;  %vm3638_vm5 = vcmask 269568  }
 0x41b   :  { %7005 = vst [vmem:[#allocation43_spill] sm:$0xff] %v5965_v13  ;;  %v1153_v20 = vpack.c.bf16 %v5965_v13, %v5965_v13  ;;  %v1432_v24 = vmul.f32 %v5686_v43, %v5968_v18 }
 0x41d   :  { %1433 = vadd.xlane.f32.xlu0 %v1432_v24  ;;  %1379 = vmatmul.mubr.bf16.vlgmr.msra.gmra.mxu0 %v1153_v20  ;;  %v6092_v24 = vld [vmem:[%s6985_s26 + $0xc] ss:$16 sps:$4 sm:$0xff]  }
 0x41e   :  { %1420 = vmatmul.mubr.bf16.vlgmr.msra.gmra.mxu1 %v1153_v20  ;;  %1708 = vmatprep.mubr.bf16.mxu0 %v7001_v58  ;;  %v6087_v20 = vld [vmem:[%s6985_s26 + $0x4] ss:$16 sps:$4 sm:$0xff]  }
 0x41f   :  { %1718 = vmatpush1.bf16.msra.mxu1 %v5564_v23  ;;  %1749 = vmatprep.mubr.bf16.mxu1 %v7001_v58  ;;  %v5992_v23 = vld [vmem:[%s6985_s26 + $0xe0] ss:$16 sps:$4 sm:$0xff]  }
 0x420   :  { %1719 = vmatprep.subr.bf16.mxu1 %v5585_v26  ;;  %v5997_v26 = vld [vmem:[%s6985_s26 + $0xe4] ss:$16 sps:$4 sm:$0xff]  }
 0x421   :  { %1676 = vmatprep.subr.bf16.mxu0 %v5997_v26 }
 0x422   :  { %1677 = vmatpush1.bf16.msra.mxu0 %v5992_v23 }
 0x423   :  { %1720 = vmatpush1.bf16.msra.mxu1 %v5592_v27  ;;  %v6002_v27 = vld [vmem:[%s6985_s26 + $0xc4] ss:$16 sps:$4 sm:$0xff]  }
 0x424   :  { %1721 = vmatprep.subr.bf16.mxu1 %v5616_v31  ;;  %v6009_v31 = vld [vmem:[%s6985_s26 + $0xc0] ss:$16 sps:$4 sm:$0xff]   ;;  %1678 = vmatprep.subr.bf16.mxu0 %v6002_v27 }
 0x426   :  { %1679 = vmatpush1.bf16.msra.mxu0 %v6009_v31 }
 0x427   :  { %1722 = vmatpush1.bf16.msra.mxu1 %v5623_v32  ;;  %v6015_v32 = vld [vmem:[%s6985_s26 + $0xa4] ss:$16 sps:$4 sm:$0xff]  }
 0x428   :  { %1723 = vmatprep.subr.bf16.mxu1 %v5650_v37  ;;  %1680 = vmatprep.subr.bf16.mxu0 %v6015_v32 }
 0x42b   :  { %1724 = vmatpush1.bf16.msra.mxu1 %v5657_v38 }
 0x42c   :  { %1725 = vmatprep.subr.bf16.mxu1 %v5674_v41 }
 0x42f   :  { %1726 = vmatpush1.bf16.msra.mxu1 %v5681_v42  ;;  %v6022_v42 = vld [vmem:[%s6985_s26 + $0xa0] ss:$16 sps:$4 sm:$0xff]  }
 0x430   :  { %1727 = vmatprep.subr.bf16.mxu1 %v5703_v46  ;;  %1681 = vmatpush1.bf16.msra.mxu0 %v6022_v42 }
 0x433   :  { %1728 = vmatpush1.bf16.msra.mxu1 %v5712_v47 }
 0x434   :  { %1729 = vmatprep.subr.bf16.mxu1 %v5719_v48 }
 0x437   :  { %1730 = vmatpush1.bf16.msra.mxu1 %v5731_v50  ;;  %v6029_v50 = vld [vmem:[%s6985_s26 + $0x84] ss:$16 sps:$4 sm:$0xff]  }
 0x438   :  { %1682 = vmatprep.subr.bf16.mxu0 %v6029_v50  ;;  %1731 = vmatprep.subr.bf16.mxu1 %v6092_v24 }
 0x4a6   :  { %v1434_v46 = vpop.xlane.xlu0 %1433 }
 0x4dd   :  { %v1380_v37 = vpop.f32.mrf.mxu0 }
 0x4de   :  { %v1428_v38 = vadd.f32 %v1380_v37, %v5800_v11  ;;  %v1421_v41 = vpop.f32.mrf.mxu1  ;;  %v6097_v37 = vld [vmem:[%s6985_s26] ss:$16 sps:$4 sm:$0xff]  }
 0x4df   :  { %v1430_v47 = vadd.f32 %v1421_v41, %v5827_v9  ;;  %v1382_v48 = vpop.f32.mrf.mxu0  ;;  %v6038_v9 = vld [vmem:[%s6985_s26 + $0x80] ss:$16 sps:$4 sm:$0xff]  }
 0x4e0   :  { %v1435_v11 = vadd.f32 %v1434_v46, %v1428_v38  ;;  %v4231_v5 = vmul.f32 -1.442695, %v1428_v38  ;;  %v1429_v56 = vadd.f32 %v1382_v48, %v5804_v17  ;;  %v1423_v22 = vpop.f32.mrf.mxu1  ;;  %v6044_v17 = vld [vmem:[%s6985_s26 + $0x64] ss:$16 sps:$4 sm:$0xff]   ;;  %1683 = vmatpush1.bf16.msra.mxu0 %v6038_v9  ;;  %v6102_v38 = vld [vmem:[%s6985_s26 + $0x8] ss:$16 sps:$4 sm:$0xff]  }
 0x4e1   :  { %v1431_v25 = vadd.f32 %v1423_v22, %v5832_v28  ;;  %v1384_v29 = vpop.f32.mrf.mxu0  ;;  %1684 = vmatprep.subr.bf16.mxu0 %v6044_v17  ;;  %1732 = vmatpush1.bf16.msra.mxu1 %v6102_v38  ;;  %v6158_v22 = vld [vmem:[%s6985_s26 + $0xcc] ss:$16 sps:$4 sm:$0xff]  }
 0x4e2   :  { %4951 = vpow2.f32 %v4231_v5  ;;  %v4232_v30 = vmul.f32 -1.442695, %v1429_v56  ;;  %v1425_v34 = vpop.f32.mrf.mxu1  ;;  %1439 = vrot.lane.b32.xlu1 %v1435_v11, %s5316_s21  ;;  %v6171_v29 = vld [vmem:[%s6985_s26 + $0xac] ss:$16 sps:$4 sm:$0xff]  }
 0x4e3   :  { %v1385_v35 = vpop.f32.mrf.mxu0  ;;  %v4233_v51 = vmul.f32 -1.442695, %v1431_v25  ;;  %v6165_v25 = vld [vmem:[%s6985_s26 + $0xc8] ss:$16 sps:$4 sm:$0xff]  }
 0x4e4   :  { %4953 = vpow2.f32 %v4232_v30  ;;  %v1426_v28 = vpop.f32.mrf.mxu1  ;;  %1685 = vmatpush1.bf16.msra.mxu0 %v6050_v39 }
 0x4e5   :  { %1686 = vmatprep.subr.bf16.mxu0 %v6056_v40  ;;  %4955 = vtanh.f32 %v1430_v47  ;;  %v6178_v28 = vld [vmem:[%s6985_s26 + $0xa8] ss:$16 sps:$4 sm:$0xff]  }
 0x4e6   :  { %4957 = vpow2.f32 %v4233_v51 }
 0x4e8   :  { %1687 = vmatpush1.bf16.msra.mxu0 %v6062_v21 }
 0x4e9   :  { %1688 = vmatprep.subr.bf16.mxu0 %v6068_v45 }
 0x4ec   :  { %1689 = vmatpush1.bf16.msra.mxu0 %v6074_v52 }
 0x4ed   :  { %1690 = vmatprep.subr.bf16.mxu0 %v6087_v20 }
 0x4ef   :  { %v4952_v3 = vpop.eup %4951 }
 0x4f0   :  { %v1448_v55 = vadd.f32 1.0, %v4952_v3  ;;  %1691 = vmatpush1.bf16.msra.mxu0 %v6097_v37  ;;  %v7007_v3 = vld [vmem:[#allocation31_spill] sm:$0xff] }
 0x4f1   :  { %v4954_v7 = vpop.eup %4953  ;;  %2006 = vmatprep.subr.bf16.mxu0 %v5997_v26 }
 0x4f2   :  { %4959 = vrcp.f32 %v1448_v55  ;;  %v1454_v6 = vadd.f32 1.0, %v4954_v7  ;;  %v4956_v63 = vpop.eup %4955 }
 0x4f3   :  { %v4958_v53 = vpop.eup %4957 }
 0x4f4   :  { %4961 = vrcp.f32 %v1454_v6  ;;  %v1461_v2 = vadd.f32 1.0, %v4958_v53  ;;  %v6185_v6 = vld [vmem:[%s6985_s26 + $0x8c] ss:$16 sps:$4 sm:$0xff]  }
 0x4f5   :  { %v7008_v53 = vld [vmem:[#allocation26_spill] sm:$0xff] }
 0x4f6   :  { %4963 = vrcp.f32 %v1461_v2 }
 0x4ff   :  { %v4960_v14 = vpop.eup %4959 }
 0x500   :  { %v1465_v62 = vmul.f32 %v4960_v14, %v4956_v63 }
 0x501   :  { %v4962_v19 = vpop.eup %4961 }
 0x502   :  { %v1464_v36 = vmul.f32 %v4962_v19, %v5968_v18  ;;  %v7009_v19 = vld [vmem:[#allocation33_spill] sm:$0xff] }
 0x503   :  { %v4964_v15 = vpop.eup %4963 }
 0x504   :  { %v1466_v49 = vadd.f32 %v1465_v62, %v1464_v36 }
 0x506   :  { %4965 = vtanh.f32 %v1466_v49 }
 0x513   :  { %v4966_v54 = vpop.eup %4965 }
 0x514   :  { %v1468_v8 = vmul.f32 %v4966_v54, %v4964_v15  ;;  %v6194_v54 = vld [vmem:[%s6985_s26 + $0x88] ss:$16 sps:$4 sm:$0xff]  }
 0x554   :  { %v6104_v41 = vpop.permute.xlu1 %1439 }
 0x555   :  { %vm1442_vm6 = vcmp.ge.f32.partialorder %v6082_v10, %v6104_v41  ;;  %v3153_v10 = vld [vmem:[%s6948_s7 + $0x60] sm:$0xff]  ;;  %v3152_v41 = vld [vmem:[%s6948_s7 + $0x58] sm:$0xff] }
 0x556   :  { %v1443_v46 = vsel %vm1442_vm6, 1, %v7001_v58 }
 0x557   :  { %1470 = vperm.xlu1 %4792, %v1443_v46   ;;  %v6200_v46 = vld [vmem:[%s6985_s26 + $0x6c] ss:$16 sps:$4 sm:$0xff]  }
 0x5d2   :  { %v1471_v47 = vpop.permute.xlu1 %1470 }
 0x5d3   :  { %vm1472_vm7 = vcmp.eq.s32.totalorder %v1471_v47, 1 }
 0x5d4   :  { %v6118_v48 = vsel %vm1472_vm7, %v1468_v8, %v5965_v13  ;;  %v6121_v11 = vsel %vm1472_vm7, %v1466_v49, %v5968_v18  ;;  %v6153_v18 = vld [vmem:[%s6985_s26 + $0xec] ss:$16 sps:$4 sm:$0xff]  }
 0x5d5   :  { %7006 = vst [vmem:[#allocation44_spill] sm:$0xff] %v6118_v48  ;;  %v1483_v5 = vpack.c.bf16 %v6118_v48, %v6118_v48  ;;  %v1762_v56 = vmul.f32 %v5686_v43, %v6121_v11  ;;  %v6148_v43 = vld [vmem:[%s6985_s26 + $0xe8] ss:$16 sps:$4 sm:$0xff]   ;;  %2047 = vmatprep.subr.bf16.mxu1 %v6153_v18 }
 0x5d6   :  { %v7015_v13 = vld [vmem:[#allocation37_spill] sm:$0xff] }
 0x5d7   :  { %1763 = vadd.xlane.f32.xlu1 %v1762_v56  ;;  %1709 = vmatmul.mubr.bf16.vlgmr.msra.gmra.mxu0 %v1483_v5  ;;  %v6212_v56 = vld [vmem:[%s6985_s26 + $0x4c] ss:$16 sps:$4 sm:$0xff]  }
 0x5d8   :  { %1750 = vmatmul.mubr.bf16.vlgmr.msra.gmra.mxu1 %v1483_v5  ;;  %2007 = vmatpush1.bf16.msra.mxu0 %v5992_v23  ;;  %v6206_v5 = vld [vmem:[%s6985_s26 + $0x68] ss:$16 sps:$4 sm:$0xff]  }
 0x5d9   :  { %2008 = vmatprep.subr.bf16.mxu0 %v6002_v27  ;;  %2038 = vmatprep.mubr.bf16.mxu0 %v7001_v58 }
 0x5da   :  { %2079 = vmatprep.mubr.bf16.mxu1 %v7001_v58  ;;  %2048 = vmatpush1.bf16.msra.mxu1 %v6148_v43 }
 0x5db   :  { %2049 = vmatprep.subr.bf16.mxu1 %v6158_v22 }
 0x5dc   :  { %2009 = vmatpush1.bf16.msra.mxu0 %v6009_v31 }
 0x5dd   :  { %2010 = vmatprep.subr.bf16.mxu0 %v6015_v32 }
 0x5de   :  { %2050 = vmatpush1.bf16.msra.mxu1 %v6165_v25 }
 0x5df   :  { %2051 = vmatprep.subr.bf16.mxu1 %v6171_v29 }
 0x5e0   :  { %2011 = vmatpush1.bf16.msra.mxu0 %v6022_v42 }
 0x5e1   :  { %2012 = vmatprep.subr.bf16.mxu0 %v6029_v50 }
 0x5e2   :  { %2052 = vmatpush1.bf16.msra.mxu1 %v6178_v28 }
 0x5e3   :  { %2053 = vmatprep.subr.bf16.mxu1 %v6185_v6 }
 0x5e4   :  { %2013 = vmatpush1.bf16.msra.mxu0 %v6038_v9 }
 0x5e5   :  { %2014 = vmatprep.subr.bf16.mxu0 %v6044_v17 }
 0x5e6   :  { %2054 = vmatpush1.bf16.msra.mxu1 %v6194_v54 }
 0x5e7   :  { %2055 = vmatprep.subr.bf16.mxu1 %v6200_v46 }
 0x5e8   :  { %2015 = vmatpush1.bf16.msra.mxu0 %v6050_v39 }
 0x5e9   :  { %2016 = vmatprep.subr.bf16.mxu0 %v6056_v40 }
 0x5ea   :  { %2056 = vmatpush1.bf16.msra.mxu1 %v6206_v5 }
 0x5eb   :  { %2057 = vmatprep.subr.bf16.mxu1 %v6212_v56 }
 0x5ec   :  { %2017 = vmatpush1.bf16.msra.mxu0 %v6062_v21 }
 0x5ed   :  { %2018 = vmatprep.subr.bf16.mxu0 %v6068_v45 }
 0x5f0   :  { %2019 = vmatpush1.bf16.msra.mxu0 %v6074_v52 }
 0x5f1   :  { %2020 = vmatprep.subr.bf16.mxu0 %v6087_v20 }
 0x5f4   :  { %2021 = vmatpush1.bf16.msra.mxu0 %v6097_v37 }
 0x5f5   :  { %2336 = vmatprep.subr.bf16.mxu0 %v5997_v26 }
 0x660   :  { %v1764_v51 = vpop.xlane.xlu1 %1763 }
 0x697   :  { %v1710_v30 = vpop.f32.mrf.mxu0 }
 0x698   :  { %v1758_v34 = vadd.f32 %v1710_v30, %v5809_v33  ;;  %v1751_v35 = vpop.f32.mrf.mxu1  ;;  %v6218_v30 = vld [vmem:[%s6985_s26 + $0x48] ss:$16 sps:$4 sm:$0xff]  }
 0x699   :  { %v1760_v55 = vadd.f32 %v1751_v35, %v7007_v3  ;;  %v1712_v7 = vpop.f32.mrf.mxu0  ;;  %2058 = vmatpush1.bf16.msra.mxu1 %v6218_v30 }
 0x69a   :  { %v1765_v33 = vadd.f32 %v1764_v51, %v1758_v34  ;;  %v4268_v63 = vmul.f32 -1.442695, %v1758_v34  ;;  %v1759_v14 = vadd.f32 %v1712_v7, %v7008_v53  ;;  %v1753_v62 = vpop.f32.mrf.mxu1  ;;  %v6224_v34 = vld [vmem:[%s6985_s26 + $0x2c] ss:$16 sps:$4 sm:$0xff]   ;;  %v6230_v51 = vld [vmem:[%s6985_s26 + $0x28] ss:$16 sps:$4 sm:$0xff]  }
 0x69b   :  { %v1761_v2 = vadd.f32 %v1753_v62, %v7009_v19  ;;  %v1714_v36 = vpop.f32.mrf.mxu0  ;;  %2059 = vmatprep.subr.bf16.mxu1 %v6224_v34 }
 0x69c   :  { %4967 = vpow2.f32 %v4268_v63  ;;  %v4269_v49 = vmul.f32 -1.442695, %v1759_v14  ;;  %v1755_v15 = vpop.f32.mrf.mxu1  ;;  %1769 = vrot.lane.b32.xlu0 %v1765_v33, %s5316_s21 }
 0x69d   :  { %v1715_v8 = vpop.f32.mrf.mxu0  ;;  %v4270_v35 = vmul.f32 -1.442695, %v1761_v2  ;;  %2060 = vmatpush1.bf16.msra.mxu1 %v6230_v51 }
 0x69e   :  { %4969 = vpow2.f32 %v4269_v49  ;;  %v1756_v47 = vpop.f32.mrf.mxu1  ;;  %2061 = vmatprep.subr.bf16.mxu1 %v6092_v24 }
 0x69f   :  { %4971 = vtanh.f32 %v1760_v55 }
 0x6a0   :  { %4973 = vpow2.f32 %v4270_v35  ;;  %v6241_v35 = vld [vmem:[%s7000_s8 + $0x18] sm:$0xff] }
 0x6a1   :  { %2062 = vmatpush1.bf16.msra.mxu1 %v6102_v38  ;;  %7010 = vst [vmem:[#allocation31_spill] sm:$0xff] %v6241_v35 }
 0x6a2   :  { %2377 = vmatprep.subr.bf16.mxu1 %v6153_v18 }
 0x6a9   :  { %v4968_v3 = vpop.eup %4967 }
 0x6aa   :  { %v1778_v7 = vadd.f32 1.0, %v4968_v3 }
 0x6ab   :  { %v4970_v33 = vpop.eup %4969 }
 0x6ac   :  { %4975 = vrcp.f32 %v1778_v7  ;;  %v1784_v63 = vadd.f32 1.0, %v4970_v33  ;;  %v4972_v53 = vpop.eup %4971 }
 0x6ad   :  { %v4974_v14 = vpop.eup %4973 }
 0x6ae   :  { %4977 = vrcp.f32 %v1784_v63  ;;  %v1791_v36 = vadd.f32 1.0, %v4974_v14 }
 0x6b0   :  { %4979 = vrcp.f32 %v1791_v36 }
 0x6b9   :  { %v4976_v62 = vpop.eup %4975 }
 0x6ba   :  { %v1795_v19 = vmul.f32 %v4976_v62, %v4972_v53  ;;  %v6262_v62 = vld [vmem:[%s6947_s6] ss:$0 sm:$0xff] }
 0x6bb   :  { %v4978_v2 = vpop.eup %4977 }
 0x6bc   :  { %v1794_v55 = vmul.f32 %v4978_v2, %v6121_v11  ;;  %v7012_v2 = vld [vmem:[#allocation27_spill] sm:$0xff] }
 0x6bd   :  { %v4980_v15 = vpop.eup %4979 }
 0x6be   :  { %v1796_v49 = vadd.f32 %v1795_v19, %v1794_v55 }
 0x6c0   :  { %4981 = vtanh.f32 %v1796_v49 }
 0x6cd   :  { %v4982_v8 = vpop.eup %4981 }
 0x6ce   :  { %v1798_v47 = vmul.f32 %v4982_v8, %v4980_v15  ;;  %v7013_v15 = vld [vmem:[#allocation35_spill] sm:$0xff] }
 0x70e   :  { %v6243_v3 = vpop.permute.xlu0 %1769 }
 0x70f   :  { %7011 = vst [vmem:[#allocation26_spill] sm:$0xff] %v6243_v3  ;;  %vm1772_vm8 = vcmp.ge.f32.partialorder %v6241_v35, %v6243_v3 }
 0x710   :  { %v1773_v7 = vsel %vm1772_vm8, 1, %v7001_v58 }
 0x711   :  { %1800 = vperm.xlu0 %4793, %v1773_v7  }
 0x78c   :  { %v1801_v33 = vpop.permute.xlu0 %1800 }
 0x78d   :  { %vm1802_vm9 = vcmp.eq.s32.totalorder %v1801_v33, 1 }
 0x78e   :  { %v6252_v63 = vsel %vm1802_vm9, %v1798_v47, %v6118_v48  ;;  %v6255_v53 = vsel %vm1802_vm9, %v1796_v49, %v6121_v11 }
 0x78f   :  { %v1813_v14 = vpack.c.bf16 %v6252_v63, %v6252_v63  ;;  %v2092_v19 = vmul.f32 %v6262_v62, %v6255_v53 }
 0x791   :  { %2093 = vadd.xlane.f32.xlu0 %v2092_v19  ;;  %2039 = vmatmul.mubr.bf16.vlgmr.msra.gmra.mxu0 %v1813_v14 }
 0x792   :  { %2080 = vmatmul.mubr.bf16.vlgmr.msra.gmra.mxu1 %v1813_v14  ;;  %2337 = vmatpush1.bf16.msra.mxu0 %v5992_v23  ;;  %v7014_v14 = vld [vmem:[#allocation28_spill] sm:$0xff] }
 0x793   :  { %2378 = vmatpush1.bf16.msra.mxu1 %v6148_v43  ;;  %2338 = vmatprep.subr.bf16.mxu0 %v6002_v27 }
 0x794   :  { %2379 = vmatprep.subr.bf16.mxu1 %v6158_v22  ;;  %2368 = vmatprep.mubr.bf16.mxu0 %v7001_v58 }
 0x795   :  { %2409 = vmatprep.mubr.bf16.mxu1 %v7001_v58 }
 0x796   :  { %2339 = vmatpush1.bf16.msra.mxu0 %v6009_v31 }
 0x797   :  { %2380 = vmatpush1.bf16.msra.mxu1 %v6165_v25  ;;  %2340 = vmatprep.subr.bf16.mxu0 %v6015_v32 }
 0x798   :  { %2381 = vmatprep.subr.bf16.mxu1 %v6171_v29 }
 0x79a   :  { %2341 = vmatpush1.bf16.msra.mxu0 %v6022_v42 }
 0x79b   :  { %2382 = vmatpush1.bf16.msra.mxu1 %v6178_v28  ;;  %2342 = vmatprep.subr.bf16.mxu0 %v6029_v50 }
 0x79c   :  { %2383 = vmatprep.subr.bf16.mxu1 %v6185_v6 }
 0x79e   :  { %2343 = vmatpush1.bf16.msra.mxu0 %v6038_v9 }
 0x79f   :  { %2384 = vmatpush1.bf16.msra.mxu1 %v6194_v54  ;;  %2344 = vmatprep.subr.bf16.mxu0 %v6044_v17 }
 0x7a0   :  { %2385 = vmatprep.subr.bf16.mxu1 %v6200_v46 }
 0x7a2   :  { %2345 = vmatpush1.bf16.msra.mxu0 %v6050_v39 }
 0x7a3   :  { %2386 = vmatpush1.bf16.msra.mxu1 %v6206_v5  ;;  %2346 = vmatprep.subr.bf16.mxu0 %v6056_v40 }
 0x7a4   :  { %2387 = vmatprep.subr.bf16.mxu1 %v6212_v56 }
 0x7a6   :  { %2347 = vmatpush1.bf16.msra.mxu0 %v6062_v21 }
 0x7a7   :  { %2388 = vmatpush1.bf16.msra.mxu1 %v6218_v30  ;;  %2348 = vmatprep.subr.bf16.mxu0 %v6068_v45 }
 0x7a8   :  { %2389 = vmatprep.subr.bf16.mxu1 %v6224_v34 }
 0x7aa   :  { %2349 = vmatpush1.bf16.msra.mxu0 %v6074_v52 }
 0x7ab   :  { %2390 = vmatpush1.bf16.msra.mxu1 %v6230_v51  ;;  %2350 = vmatprep.subr.bf16.mxu0 %v6087_v20 }
 0x7ac   :  { %2391 = vmatprep.subr.bf16.mxu1 %v6092_v24 }
 0x7ae   :  { %2351 = vmatpush1.bf16.msra.mxu0 %v6097_v37 }
 0x7af   :  { %2392 = vmatpush1.bf16.msra.mxu1 %v6102_v38  ;;  %2666 = vmatprep.subr.bf16.mxu0 %v5997_v26 }
 0x7b0   :  { %2707 = vmatprep.subr.bf16.mxu1 %v6153_v18 }
 0x81a   :  { %v2094_v49 = vpop.xlane.xlu0 %2093 }
 0x851   :  { %v2040_v11 = vpop.f32.mrf.mxu0 }
 0x852   :  { %v2088_v36 = vadd.f32 %v2040_v11, %v7012_v2  ;;  %v2081_v55 = vpop.f32.mrf.mxu1 }
 0x853   :  { %v2090_v8 = vadd.f32 %v2081_v55, %v7013_v15  ;;  %v2042_v47 = vpop.f32.mrf.mxu0 }
 0x854   :  { %v2095_v7 = vadd.f32 %v2094_v49, %v2088_v36  ;;  %v4305_v33 = vmul.f32 -1.442695, %v2088_v36  ;;  %v2089_v19 = vadd.f32 %v2042_v47, %v7014_v14  ;;  %v2083_v48 = vpop.f32.mrf.mxu1 }
 0x855   :  { %v2091_v12 = vadd.f32 %v2083_v48, %v7015_v13  ;;  %v2044_v3 = vpop.f32.mrf.mxu0 }
 0x856   :  { %4983 = vpow2.f32 %v4305_v33  ;;  %v4306_v26 = vmul.f32 -1.442695, %v2089_v19  ;;  %v2085_v35 = vpop.f32.mrf.mxu1  ;;  %2099 = vrot.lane.b32.xlu1 %v2095_v7, %s5316_s21 }
 0x857   :  { %v2045_v60 = vpop.f32.mrf.mxu0  ;;  %v4307_v2 = vmul.f32 -1.442695, %v2091_v12 }
 0x858   :  { %4985 = vpow2.f32 %v4306_v26  ;;  %v2086_v11 = vpop.f32.mrf.mxu1 }
 0x859   :  { %4987 = vtanh.f32 %v2090_v8  ;;  %v6309_v8 = vld [vmem:[%s7000_s8 + $0x20] sm:$0xff] }
 0x85a   :  { %4989 = vpow2.f32 %v4307_v2 }
 0x863   :  { %v4984_v61 = vpop.eup %4983 }
 0x864   :  { %v2108_v55 = vadd.f32 1.0, %v4984_v61 }
 0x865   :  { %v4986_v49 = vpop.eup %4985 }
 0x866   :  { %4991 = vrcp.f32 %v2108_v55  ;;  %v2114_v36 = vadd.f32 1.0, %v4986_v49  ;;  %v4988_v15 = vpop.eup %4987 }
 0x867   :  { %v4990_v13 = vpop.eup %4989 }
 0x868   :  { %4993 = vrcp.f32 %v2114_v36  ;;  %v2121_v35 = vadd.f32 1.0, %v4990_v13 }
 0x86a   :  { %4995 = vrcp.f32 %v2121_v35 }
 0x873   :  { %v4992_v48 = vpop.eup %4991 }
 0x874   :  { %v2125_v3 = vmul.f32 %v4992_v48, %v4988_v15 }
 0x875   :  { %v4994_v47 = vpop.eup %4993 }
 0x876   :  { %v2124_v7 = vmul.f32 %v4994_v47, %v6255_v53 }
 0x877   :  { %v4996_v12 = vpop.eup %4995 }
 0x878   :  { %v2126_v60 = vadd.f32 %v2125_v3, %v2124_v7 }
 0x87a   :  { %4997 = vtanh.f32 %v2126_v60 }
 0x887   :  { %v4998_v33 = vpop.eup %4997 }
 0x888   :  { %v2128_v61 = vmul.f32 %v4998_v33, %v4996_v12 }
 0x8c8   :  { %v6311_v14 = vpop.permute.xlu1 %2099 }
 0x8c9   :  { %vm2102_vm10 = vcmp.ge.f32.partialorder %v6309_v8, %v6311_v14 }
 0x8ca   :  { %v2103_v19 = vsel %vm2102_vm10, 1, %v7001_v58 }
 0x8cb   :  { %2130 = vperm.xlu1 %4792, %v2103_v19  }
 0x946   :  { %v2131_v26 = vpop.permute.xlu1 %2130 }
 0x947   :  { %vm2132_vm11 = vcmp.eq.s32.totalorder %v2131_v26, 1  ;;  %v6371_v26 = vld [vmem:[%s7000_s8 + $0x28] sm:$0xff] }
 0x948   :  { %v6320_v11 = vsel %vm2132_vm11, %v2128_v61, %v6252_v63  ;;  %v6323_v2 = vsel %vm2132_vm11, %v2126_v60, %v6255_v53 }
 0x949   :  { %v2143_v55 = vpack.c.bf16 %v6320_v11, %v6320_v11  ;;  %v2422_v49 = vmul.f32 %v6262_v62, %v6323_v2 }
 0x94b   :  { %2423 = vadd.xlane.f32.xlu1 %v2422_v49  ;;  %2369 = vmatmul.mubr.bf16.vlgmr.msra.gmra.mxu0 %v2143_v55 }
 0x94c   :  { %2410 = vmatmul.mubr.bf16.vlgmr.msra.gmra.mxu1 %v2143_v55  ;;  %2667 = vmatpush1.bf16.msra.mxu0 %v5992_v23 }
 0x94d   :  { %2708 = vmatpush1.bf16.msra.mxu1 %v6148_v43  ;;  %2668 = vmatprep.subr.bf16.mxu0 %v6002_v27  ;;  %v7016_v27 = vld [vmem:[#allocation29_spill] sm:$0xff] }
 0x94e   :  { %2709 = vmatprep.subr.bf16.mxu1 %v6158_v22  ;;  %2698 = vmatprep.mubr.bf16.mxu0 %v7001_v58 }
 0x94f   :  { %2739 = vmatprep.mubr.bf16.mxu1 %v7001_v58 }
 0x950   :  { %2669 = vmatpush1.bf16.msra.mxu0 %v6009_v31 }
 0x951   :  { %2710 = vmatpush1.bf16.msra.mxu1 %v6165_v25  ;;  %2670 = vmatprep.subr.bf16.mxu0 %v6015_v32 }
 0x952   :  { %2711 = vmatprep.subr.bf16.mxu1 %v6171_v29 }
 0x954   :  { %2671 = vmatpush1.bf16.msra.mxu0 %v6022_v42 }
 0x955   :  { %2712 = vmatpush1.bf16.msra.mxu1 %v6178_v28  ;;  %2672 = vmatprep.subr.bf16.mxu0 %v6029_v50 }
 0x956   :  { %2713 = vmatprep.subr.bf16.mxu1 %v6185_v6 }
 0x958   :  { %2673 = vmatpush1.bf16.msra.mxu0 %v6038_v9 }
 0x959   :  { %2714 = vmatpush1.bf16.msra.mxu1 %v6194_v54  ;;  %2674 = vmatprep.subr.bf16.mxu0 %v6044_v17 }
 0x95a   :  { %2715 = vmatprep.subr.bf16.mxu1 %v6200_v46 }
 0x95c   :  { %2675 = vmatpush1.bf16.msra.mxu0 %v6050_v39 }
 0x95d   :  { %2716 = vmatpush1.bf16.msra.mxu1 %v6206_v5  ;;  %2676 = vmatprep.subr.bf16.mxu0 %v6056_v40  ;;  %v7017_v40 = vld [vmem:[#allocation30_spill] sm:$0xff] }
 0x95e   :  { %2717 = vmatprep.subr.bf16.mxu1 %v6212_v56 }
 0x960   :  { %2677 = vmatpush1.bf16.msra.mxu0 %v6062_v21 }
 0x961   :  { %2718 = vmatpush1.bf16.msra.mxu1 %v6218_v30  ;;  %2678 = vmatprep.subr.bf16.mxu0 %v6068_v45 }
 0x962   :  { %2719 = vmatprep.subr.bf16.mxu1 %v6224_v34 }
 0x964   :  { %2679 = vmatpush1.bf16.msra.mxu0 %v6074_v52 }
 0x965   :  { %2720 = vmatpush1.bf16.msra.mxu1 %v6230_v51  ;;  %2680 = vmatprep.subr.bf16.mxu0 %v6087_v20 }
 0x966   :  { %2721 = vmatprep.subr.bf16.mxu1 %v6092_v24 }
 0x968   :  { %2681 = vmatpush1.bf16.msra.mxu0 %v6097_v37 }
 0x969   :  { %2722 = vmatpush1.bf16.msra.mxu1 %v6102_v38 }
 0x96a   :  { %3037 = vmatprep.subr.bf16.mxu1 %v6153_v18 }
 0x9d4   :  { %v2424_v42 = vpop.xlane.xlu1 %2423 }
 0xa0b   :  { %v2370_v23 = vpop.f32.mrf.mxu0 }
 0xa0c   :  { %v2418_v31 = vadd.f32 %v2370_v23, %v7016_v27  ;;  %v2411_v32 = vpop.f32.mrf.mxu1 }
 0xa0d   :  { %v2420_v50 = vadd.f32 %v2411_v32, %v5857_v4  ;;  %v2372_v9 = vpop.f32.mrf.mxu0 }
 0xa0e   :  { %v2425_v17 = vadd.f32 %v2424_v42, %v2418_v31  ;;  %v4342_v39 = vmul.f32 -1.442695, %v2418_v31  ;;  %v2419_v21 = vadd.f32 %v2372_v9, %v7017_v40  ;;  %v2413_v45 = vpop.f32.mrf.mxu1 }
 0xa0f   :  { %v2421_v52 = vadd.f32 %v2413_v45, %v5860_v16  ;;  %v2374_v20 = vpop.f32.mrf.mxu0 }
 0xa10   :  { %4999 = vpow2.f32 %v4342_v39  ;;  %v4343_v24 = vmul.f32 -1.442695, %v2419_v21  ;;  %v2415_v37 = vpop.f32.mrf.mxu1  ;;  %2429 = vrot.lane.b32.xlu0 %v2425_v17, %s5316_s21  ;;  %v7019_v17 = vld [vmem:[#allocation34_spill] sm:$0xff] }
 0xa11   :  { %v2375_v38 = vpop.f32.mrf.mxu0  ;;  %v4344_v53 = vmul.f32 -1.442695, %v2421_v52  ;;  %v4906_v37 = vld [vmem:[%s6985_s26 + $0x64] ss:$16 sps:$4 sm:$0xff]  }
 0xa12   :  { %5001 = vpow2.f32 %v4343_v24  ;;  %v2416_v18 = vpop.f32.mrf.mxu1 }
 0xa13   :  { %5003 = vtanh.f32 %v2420_v50  ;;  %v4909_v18 = vld [vmem:[%s6985_s26 + $0x44] ss:$16 sps:$4 sm:$0xff]  }
 0xa14   :  { %5005 = vpow2.f32 %v4344_v53  ;;  %v4907_v53 = vld [vmem:[%s6985_s26 + $0x40] ss:$16 sps:$4 sm:$0xff]  }
 0xa1d   :  { %v5000_v36 = vpop.eup %4999 }
 0xa1e   :  { %v2438_v4 = vadd.f32 1.0, %v5000_v36  ;;  %v4912_v36 = vld [vmem:[%s6985_s26 + $0x24] ss:$16 sps:$4 sm:$0xff]  }
 0xa1f   :  { %v5002_v15 = vpop.eup %5001 }
 0xa20   :  { %5007 = vrcp.f32 %v2438_v4  ;;  %v2444_v13 = vadd.f32 1.0, %v5002_v15  ;;  %v5004_v48 = vpop.eup %5003  ;;  %v4910_v15 = vld [vmem:[%s6985_s26 + $0x20] ss:$16 sps:$4 sm:$0xff]  }
 0xa21   :  { %v5006_v16 = vpop.eup %5005 }
 0xa22   :  { %5009 = vrcp.f32 %v2444_v13  ;;  %v2451_v7 = vadd.f32 1.0, %v5006_v16 }
 0xa24   :  { %5011 = vrcp.f32 %v2451_v7 }
 0xa2d   :  { %v5008_v3 = vpop.eup %5007 }
 0xa2e   :  { %v2455_v47 = vmul.f32 %v5008_v3, %v5004_v48 }
 0xa2f   :  { %v5010_v35 = vpop.eup %5009 }
 0xa30   :  { %v2454_v60 = vmul.f32 %v5010_v35, %v6323_v2 }
 0xa31   :  { %v5012_v33 = vpop.eup %5011 }
 0xa32   :  { %v2456_v12 = vadd.f32 %v2455_v47, %v2454_v60 }
 0xa34   :  { %5013 = vtanh.f32 %v2456_v12 }
 0xa41   :  { %v5014_v61 = vpop.eup %5013 }
 0xa42   :  { %v2458_v19 = vmul.f32 %v5014_v61, %v5012_v33 }
 0xa82   :  { %v6373_v55 = vpop.permute.xlu0 %2429 }
 0xa83   :  { %vm2432_vm12 = vcmp.ge.f32.partialorder %v6371_v26, %v6373_v55 }
 0xa84   :  { %v2433_v49 = vsel %vm2432_vm12, 1, %v7001_v58 }
 0xa85   :  { %2460 = vperm.xlu0 %4793, %v2433_v49  }
 0xb00   :  { %v2461_v23 = vpop.permute.xlu0 %2460 }
 0xb01   :  { %vm2462_vm13 = vcmp.eq.s32.totalorder %v2461_v23, 1 }
 0xb02   :  { %v6382_v27 = vsel %vm2462_vm13, %v2458_v19, %v6320_v11  ;;  %v6385_v31 = vsel %vm2462_vm13, %v2456_v12, %v6323_v2  ;;  %v4903_v2 = vld [vmem:[%s6985_s26 + $0x84] ss:$16 sps:$4 sm:$0xff]  }
 0xb03   :  { %v2473_v32 = vpack.c.bf16 %v6382_v27, %v6382_v27  ;;  %v2752_v42 = vmul.f32 %v6262_v62, %v6385_v31 }
 0xb05   :  { %2753 = vadd.xlane.f32.xlu0 %v2752_v42  ;;  %2699 = vmatmul.mubr.bf16.vlgmr.msra.gmra.mxu0 %v2473_v32  ;;  %v6457_v42 = vld [vmem:[%s7000_s8 + $0x30] sm:$0xff] }
 0xb06   :  { %2740 = vmatmul.mubr.bf16.vlgmr.msra.gmra.mxu1 %v2473_v32  ;;  %3028 = vmatprep.mubr.bf16.mxu0 %v7001_v58 }
 0xb07   :  { %3038 = vmatpush1.bf16.msra.mxu1 %v6148_v43  ;;  %3069 = vmatprep.mubr.bf16.mxu1 %v7001_v58  ;;  %v4892_v43 = vld [vmem:[%s6985_s26 + $0xe0] ss:$16 sps:$4 sm:$0xff]  }
 0xb08   :  { %3039 = vmatprep.subr.bf16.mxu1 %v6158_v22  ;;  %v4894_v22 = vld [vmem:[%s6985_s26 + $0xe4] ss:$16 sps:$4 sm:$0xff]  }
 0xb09   :  { %2996 = vmatprep.subr.bf16.mxu0 %v4894_v22  ;;  %v4918_v22 = vld [vmem:[%s6985_s26 + $0xc] ss:$16 sps:$4 sm:$0xff]  }
 0xb0a   :  { %2997 = vmatpush1.bf16.msra.mxu0 %v4892_v43  ;;  %v4915_v43 = vld [vmem:[%s6985_s26 + $0x4] ss:$16 sps:$4 sm:$0xff]  }
 0xb0b   :  { %3040 = vmatpush1.bf16.msra.mxu1 %v6165_v25  ;;  %v4897_v25 = vld [vmem:[%s6985_s26 + $0xc4] ss:$16 sps:$4 sm:$0xff]  }
 0xb0c   :  { %3041 = vmatprep.subr.bf16.mxu1 %v6171_v29  ;;  %v4895_v29 = vld [vmem:[%s6985_s26 + $0xc0] ss:$16 sps:$4 sm:$0xff]   ;;  %2998 = vmatprep.subr.bf16.mxu0 %v4897_v25 }
 0xb0d   :  { %v4913_v25 = vld [vmem:[%s6985_s26] ss:$16 sps:$4 sm:$0xff]  }
 0xb0e   :  { %2999 = vmatpush1.bf16.msra.mxu0 %v4895_v29  ;;  %v4916_v29 = vld [vmem:[%s6985_s26 + $0x8] ss:$16 sps:$4 sm:$0xff]  }
 0xb0f   :  { %3042 = vmatpush1.bf16.msra.mxu1 %v6178_v28  ;;  %v4900_v28 = vld [vmem:[%s6985_s26 + $0xa4] ss:$16 sps:$4 sm:$0xff]  }
 0xb10   :  { %3043 = vmatprep.subr.bf16.mxu1 %v6185_v6  ;;  %3000 = vmatprep.subr.bf16.mxu0 %v4900_v28 }
 0xb13   :  { %3044 = vmatpush1.bf16.msra.mxu1 %v6194_v54  ;;  %v7018_v54 = vld [vmem:[#allocation32_spill] sm:$0xff] }
 0xb14   :  { %3045 = vmatprep.subr.bf16.mxu1 %v6200_v46 }
 0xb17   :  { %3046 = vmatpush1.bf16.msra.mxu1 %v6206_v5 }
 0xb18   :  { %3047 = vmatprep.subr.bf16.mxu1 %v6212_v56  ;;  %v4898_v56 = vld [vmem:[%s6985_s26 + $0xa0] ss:$16 sps:$4 sm:$0xff]  }
 0xb19   :  { %3001 = vmatpush1.bf16.msra.mxu0 %v4898_v56 }
 0xb1a   :  { %3002 = vmatprep.subr.bf16.mxu0 %v4903_v2  ;;  %v3155_v2 = vld [vmem:[%s6948_s7 + $0x70] sm:$0xff] }
 0xb1b   :  { %3048 = vmatpush1.bf16.msra.mxu1 %v6218_v30 }
 0xb1c   :  { %3049 = vmatprep.subr.bf16.mxu1 %v6224_v34 }
 0xb1f   :  { %3050 = vmatpush1.bf16.msra.mxu1 %v6230_v51 }
 0xb20   :  { %3051 = vmatprep.subr.bf16.mxu1 %v4918_v22 }
 0xb23   :  { %3052 = vmatpush1.bf16.msra.mxu1 %v4916_v29  ;;  %v3283_v29 = vld [vmem:[%s6952_s11] sm:$0xff] }
 0xb8e   :  { %v2754_v30 = vpop.xlane.xlu0 %2753 }
 0xbc5   :  { %v2700_v6 = vpop.f32.mrf.mxu0 }
 0xbc6   :  { %v2748_v46 = vadd.f32 %v2700_v6, %v7018_v54  ;;  %v2741_v5 = vpop.f32.mrf.mxu1  ;;  %v7020_v54 = vmov 0.0  }
 0xbc7   :  { %v2750_v34 = vadd.f32 %v2741_v5, %v5864_v59  ;;  %v2702_v51 = vpop.f32.mrf.mxu0  ;;  %v4901_v59 = vld [vmem:[%s6985_s26 + $0x80] ss:$16 sps:$4 sm:$0xff]   ;;  %4595 = vmatprep.subr.mxu1 %v7020_v54  ;;  %v4193_v22 = vsel %vm1112_vm4, 1.0, %v7020_v54  ;;  %v4304_v57 = vsel %vm2102_vm10, 1.0, %v7020_v54 }
 0xbc8   :  { %v2755_v50 = vadd.f32 %v2754_v30, %v2748_v46  ;;  %v4379_v9 = vmul.f32 -1.442695, %v2748_v46  ;;  %v2749_v39 = vadd.f32 %v2702_v51, %v7019_v17  ;;  %v2743_v40 = vpop.f32.mrf.mxu1  ;;  %3003 = vmatpush1.bf16.msra.mxu0 %v4901_v59  ;;  %v4230_v51 = vsel %vm1442_vm6, 1.0, %v7020_v54  ;;  %v3149_v17 = vld [vmem:[%s6948_s7 + $0x40] sm:$0xff]  ;;  %v3142_v59 = vld [vmem:[%s6948_s7 + $0x8] sm:$0xff] }
 0xbc9   :  { %v2751_v21 = vadd.f32 %v2743_v40, %v5868_v1  ;;  %v2704_v45 = vpop.f32.mrf.mxu0  ;;  %v4904_v1 = vld [vmem:[%s6985_s26 + $0x60] ss:$16 sps:$4 sm:$0xff]   ;;  %3004 = vmatprep.subr.bf16.mxu0 %v4906_v37 }
 0xbca   :  { %5015 = vpow2.f32 %v4379_v9  ;;  %v4380_v52 = vmul.f32 -1.442695, %v2749_v39  ;;  %v2745_v20 = vpop.f32.mrf.mxu1  ;;  %2759 = vrot.lane.b32.xlu1 %v2755_v50, %s5316_s21  ;;  %v3151_v50 = vld [vmem:[%s6948_s7 + $0x50] sm:$0xff]  ;;  %v3150_v9 = vld [vmem:[%s6948_s7 + $0x48] sm:$0xff]  ;;  %v3148_v39 = vld [vmem:[%s6948_s7 + $0x38] sm:$0xff] }
 0xbcb   :  { %v2705_v24 = vpop.f32.mrf.mxu0  ;;  %v4381_v4 = vmul.f32 -1.442695, %v2751_v21  ;;  %v3147_v40 = vld [vmem:[%s6948_s7 + $0x30] sm:$0xff]  ;;  %v3146_v21 = vld [vmem:[%s6948_s7 + $0x28] sm:$0xff]  ;;  %v3145_v45 = vld [vmem:[%s6948_s7 + $0x20] sm:$0xff] }
 0xbcc   :  { %5017 = vpow2.f32 %v4380_v52  ;;  %v2746_v38 = vpop.f32.mrf.mxu1  ;;  %3005 = vmatpush1.bf16.msra.mxu0 %v4904_v1  ;;  %v3144_v52 = vld [vmem:[%s6948_s7 + $0x18] sm:$0xff]  ;;  %v3143_v20 = vld [vmem:[%s6948_s7 + $0x10] sm:$0xff]  ;;  %v7021_v24 = vlaneseq }
 0xbcd   :  { %3006 = vmatprep.subr.bf16.mxu0 %v4909_v18  ;;  %5019 = vtanh.f32 %v2750_v34  ;;  %v3141_v38 = vld [vmem:[%s6948_s7] sm:$0xff]  ;;  %v7022_v18 = vld [vmem:[#allocation36_spill] sm:$0xff] }
 0xbce   :  { %5021 = vpow2.f32 %v4381_v4  ;;  %v6558_v37 = vand.u32 127, %v7021_v24 }
 0xbd0   :  { %3007 = vmatpush1.bf16.msra.mxu0 %v4907_v53  ;;  %vm483_vm3 = vcmp.eq.s32.totalorder %v6558_v37, 32 }
 0xbd1   :  { %3008 = vmatprep.subr.bf16.mxu0 %v4912_v36 }
 0xbd4   :  { %3009 = vmatpush1.bf16.msra.mxu0 %v4910_v15 }
 0xbd5   :  { %3010 = vmatprep.subr.bf16.mxu0 %v4915_v43  ;;  %v3286_v43 = vld [vmem:[%s6952_s11 + $0x18] sm:$0xff] }
 0xbd7   :  { %v5016_v13 = vpop.eup %5015 }
 0xbd8   :  { %v2768_v48 = vadd.f32 1.0, %v5016_v13  ;;  %3011 = vmatpush1.bf16.msra.mxu0 %v4913_v25  ;;  %v3284_v25 = vld [vmem:[%s6952_s11 + $0x8] sm:$0xff] }
 0xbd9   :  { %v5018_v16 = vpop.eup %5017  ;;  %4536 = vmatprep.subr.mxu0 %v7020_v54 }
 0xbda   :  { %5023 = vrcp.f32 %v2768_v48  ;;  %v2774_v3 = vadd.f32 1.0, %v5018_v16  ;;  %v5020_v47 = vpop.eup %5019 }
 0xbdb   :  { %v5022_v35 = vpop.eup %5021 }
 0xbdc   :  { %5025 = vrcp.f32 %v2774_v3  ;;  %v2781_v33 = vadd.f32 1.0, %v5022_v35  ;;  %v7023_v3 = vld [vmem:[#allocation38_spill] sm:$0xff] }
 0xbde   :  { %5027 = vrcp.f32 %v2781_v33 }
 0xbe7   :  { %v5024_v7 = vpop.eup %5023 }
 0xbe8   :  { %v2785_v60 = vmul.f32 %v5024_v7, %v5020_v47  ;;  %v5318_v7 = vmov 1.0  }
 0xbe9   :  { %v5026_v12 = vpop.eup %5025 }
 0xbea   :  { %v2784_v61 = vmul.f32 %v5026_v12, %v6385_v31 }
 0xbeb   :  { %v5028_v49 = vpop.eup %5027 }
 0xbec   :  { %v2786_v19 = vadd.f32 %v2785_v60, %v2784_v61  ;;  %v7024_v60 = vld [vmem:[#allocation39_spill] sm:$0xff] }
 0xbee   :  { %5029 = vtanh.f32 %v2786_v19 }
 0xbfb   :  { %v5030_v23 = vpop.eup %5029 }
 0xbfc   :  { %v2788_v32 = vmul.f32 %v5030_v23, %v5028_v49  ;;  %v4150_v23 = vsel %vm780_vm1, 1.0, %v7020_v54 }
 0xc3c   :  { %v6471_v28 = vpop.permute.xlu1 %2759 }
 0xc3d   :  { %vm2762_vm14 = vcmp.ge.f32.partialorder %v6457_v42, %v6471_v28  ;;  %v4414_v42 = vld [vmem:[%s7000_s8 + $0x38] sm:$0xff] }
 0xc3e   :  { %v2763_v6 = vsel %vm2762_vm14, 1, %v7001_v58 }
 0xc3f   :  { %2790 = vperm.xlu1 %4792, %v2763_v6   ;;  %v4267_v6 = vsel %vm1772_vm8, 1.0, %v7020_v54 }
 0xcba   :  { %v2791_v46 = vpop.permute.xlu1 %2790 }
 0xcbb   :  { %vm2792_vm15 = vcmp.eq.s32.totalorder %v2791_v46, 1 }
 0xcbc   :  { %v6482_v5 = vsel %vm2792_vm15, %v2788_v32, %v6382_v27  ;;  %v6485_v56 = vsel %vm2792_vm15, %v2786_v19, %v6385_v31  ;;  %v3156_v31 = vld [vmem:[%s6948_s7 + $0x78] sm:$0xff]  ;;  %v3287_v32 = vld [vmem:[%s6952_s11 + $0x20] sm:$0xff] }
 0xcbd   :  { %v2803_v30 = vpack.c.bf16 %v6482_v5, %v6482_v5  ;;  %v3082_v34 = vmul.f32 %v6262_v62, %v6485_v56  ;;  %v3154_v62 = vld [vmem:[%s6948_s7 + $0x68] sm:$0xff] }
 0xcbf   :  { %3083 = vadd.xlane.f32.xlu1 %v3082_v34  ;;  %3029 = vmatmul.mubr.bf16.vlgmr.msra.gmra.mxu0 %v2803_v30 }
 0xcc0   :  { %3070 = vmatmul.mubr.bf16.vlgmr.msra.gmra.mxu1 %v2803_v30  ;;  %4537 = vmatpush3.msra.mxu0 %v3156_v31  ;;  %v4341_v31 = vsel %vm2432_vm12, 1.0, %v7020_v54 }
 0xcc1   :  { %4538 = vmatprep.subr.mxu0 %v7020_v54  ;;  %4568 = vmatprep.mubr.msk.f32.mxu0 %vm5317_vm2, %v7020_v54 }
 0xcc2   :  { %4539 = vmatpush3.msra.mxu0 %v3155_v2  ;;  %4627 = vmatprep.mubr.msk.f32.mxu1 %vm5317_vm2, %v7020_v54  ;;  %v4378_v2 = vsel %vm2762_vm14, 1.0, %v7020_v54  ;;  %vm4081_vm14 = vcmp.eq.s32.totalorder %v6558_v37, 4 }
 0xcc3   :  { %4540 = vmatprep.subr.mxu0 %v7020_v54 }
 0xcc4   :  { %4541 = vmatpush3.msra.mxu0 %v3154_v62 }
 0xcc5   :  { %4542 = vmatprep.subr.mxu0 %v7020_v54 }
 0xcc6   :  { %4543 = vmatpush3.msra.mxu0 %v3153_v10 }
 0xcc7   :  { %4544 = vmatprep.subr.mxu0 %v7020_v54 }
 0xcc8   :  { %4545 = vmatpush3.msra.mxu0 %v3152_v41 }
 0xcc9   :  { %4546 = vmatprep.subr.mxu0 %v7020_v54 }
 0xcca   :  { %4547 = vmatpush3.msra.mxu0 %v3151_v50 }
 0xccb   :  { %4548 = vmatprep.subr.mxu0 %v7020_v54 }
 0xccc   :  { %4549 = vmatpush3.msra.mxu0 %v3150_v9 }
 0xccd   :  { %4550 = vmatprep.subr.mxu0 %v7020_v54 }
 0xcce   :  { %4551 = vmatpush3.msra.mxu0 %v3149_v17 }
 0xccf   :  { %4552 = vmatprep.subr.mxu0 %v7020_v54 }
 0xcd0   :  { %1477 = vperm.xlu1 %4792, %v4230_v51   ;;  %4553 = vmatpush3.msra.mxu0 %v3148_v39 }
 0xcd1   :  { %4554 = vmatprep.subr.mxu0 %v7020_v54 }
 0xcd2   :  { %4555 = vmatpush3.msra.mxu0 %v3147_v40 }
 0xcd3   :  { %4556 = vmatprep.subr.mxu0 %v7020_v54 }
 0xcd4   :  { %4557 = vmatpush3.msra.mxu0 %v3146_v21 }
 0xcd5   :  { %4558 = vmatprep.subr.mxu0 %v7020_v54 }
 0xcd6   :  { %4559 = vmatpush3.msra.mxu0 %v3145_v45  ;;  %v3297_v45 = vld [vmem:[%s6952_s11 + $0x70] sm:$0xff] }
 0xcd7   :  { %4560 = vmatprep.subr.mxu0 %v7020_v54 }
 0xcd8   :  { %4561 = vmatpush3.msra.mxu0 %v3144_v52  ;;  %v3296_v52 = vld [vmem:[%s6952_s11 + $0x68] sm:$0xff] }
 0xcd9   :  { %4562 = vmatprep.subr.mxu0 %v7020_v54 }
 0xcda   :  { %4563 = vmatpush3.msra.mxu0 %v3143_v20  ;;  %v3294_v20 = vld [vmem:[%s6952_s11 + $0x58] sm:$0xff] }
 0xcdb   :  { %4564 = vmatprep.subr.mxu0 %v7020_v54 }
 0xcdc   :  { %4565 = vmatpush3.msra.mxu0 %v3142_v59  ;;  %v3293_v59 = vld [vmem:[%s6952_s11 + $0x50] sm:$0xff] }
 0xcdd   :  { %4566 = vmatprep.subr.mxu0 %v7020_v54 }
 0xcde   :  { %4567 = vmatpush3.msra.mxu0 %v3141_v38  ;;  %v3292_v38 = vld [vmem:[%s6952_s11 + $0x48] sm:$0xff] }
 0xcdf   :  { %4569 = vmatmul.mubr.msk.f32.vlgmr.msra.gmra.mxu0 %vm483_vm3, %v5318_v7  ;;  %4668 = vmatprep.subr.mxu0 %v7020_v54 }
 0xce0   :  { %4571 = vmatprep.mubr.msk.f32.mxu0 %vm5317_vm2, %v7020_v54 }
 0xd48   :  { %v3084_v4 = vpop.xlane.xlu1 %3083 }
 0xd7f   :  { %v3030_v1 = vpop.f32.mrf.mxu0 }
 0xd80   :  { %v3078_v53 = vadd.f32 %v3030_v1, %v7022_v18  ;;  %v3071_v36 = vpop.f32.mrf.mxu1  ;;  %v7029_v1 = vld [vmem:[#allocation42_spill] sm:$0xff] }
 0xd81   :  { %v3080_v15 = vadd.f32 %v3071_v36, %v5871_v0  ;;  %v3032_v13 = vpop.f32.mrf.mxu0 }
 0xd82   :  { %v3085_v48 = vadd.f32 %v3084_v4, %v3078_v53  ;;  %v4416_v16 = vmul.f32 -1.442695, %v3078_v53  ;;  %v3079_v47 = vadd.f32 %v3032_v13, %v7023_v3  ;;  %v3073_v35 = vpop.f32.mrf.mxu1  ;;  %v3291_v53 = vld [vmem:[%s6952_s11 + $0x40] sm:$0xff]  ;;  %v3290_v4 = vld [vmem:[%s6952_s11 + $0x38] sm:$0xff]  ;;  %v7031_v3 = vld [vmem:[#allocation44_spill] sm:$0xff] }
 0xd83   :  { %v3081_v12 = vadd.f32 %v3073_v35, %v7024_v60  ;;  %v3034_v33 = vpop.f32.mrf.mxu0 }
 0xd84   :  { %5031 = vpow2.f32 %v4416_v16  ;;  %v4417_v0 = vmul.f32 -1.442695, %v3079_v47  ;;  %v3075_v61 = vpop.f32.mrf.mxu1  ;;  %3089 = vrot.lane.b32.xlu0 %v3085_v48, %s5316_s21  ;;  %v1478_v48 = vpop.permute.xlu1 %1477 }
 0xd85   :  { %v3035_v19 = vpop.f32.mrf.mxu0  ;;  %v4418_v46 = vmul.f32 -1.442695, %v3081_v12  ;;  %v6663_v47 = vsel %vm483_vm3, %v1478_v48, %v7031_v3 }
 0xd86   :  { %5033 = vpow2.f32 %v4417_v0  ;;  %v3076_v49 = vpop.f32.mrf.mxu1  ;;  %v6700_v0 = vld [vmem:[#allocation6] ss:$0 sm:$0xff]  ;;  %vm3578_vm8 = vcmp.gt.f32.partialorder %v6663_v47, 0.5 }
 0xd87   :  { %5035 = vtanh.f32 %v3080_v15  ;;  %v7030_v15 = vld [vmem:[#allocation43_spill] sm:$0xff]  ;;  %v3289_v49 = vld [vmem:[%s6952_s11 + $0x30] sm:$0xff] }
 0xd88   :  { %817 = vperm.xlu0 %4793, %v4150_v23   ;;  %5037 = vpow2.f32 %v4418_v46  ;;  %v3288_v23 = vld [vmem:[%s6952_s11 + $0x28] sm:$0xff] }
 0xd89   :  { %v3411_v46 = vld [vmem:[#allocation8 + $0x8] sm:$0xff] }
 0xd8c   :  { %1147 = vperm.xlu0 %4793, %v4193_v22   ;;  %v3285_v22 = vld [vmem:[%s6952_s11 + $0x10] sm:$0xff] }
 0xd90   :  { %1807 = vperm.xlu0 %4793, %v4267_v6  }
 0xd91   :  { %v5032_v30 = vpop.eup %5031 }
 0xd92   :  { %v3098_v34 = vadd.f32 1.0, %v5032_v30 }
 0xd93   :  { %v5034_v51 = vpop.eup %5033 }
 0xd94   :  { %5039 = vrcp.f32 %v3098_v34  ;;  %v3104_v44 = vadd.f32 1.0, %v5034_v51  ;;  %2137 = vperm.xlu0 %4793, %v4304_v57   ;;  %v5036_v62 = vpop.eup %5035 }
 0xd95   :  { %v5038_v8 = vpop.eup %5037 }
 0xd96   :  { %5041 = vrcp.f32 %v3104_v44  ;;  %v3111_v50 = vadd.f32 1.0, %v5038_v8  ;;  %v3410_v44 = vld [vmem:[#allocation8] sm:$0xff] }
 0xd98   :  { %2467 = vperm.xlu0 %4793, %v4341_v31   ;;  %5043 = vrcp.f32 %v3111_v50 }
 0xd9c   :  { %2797 = vperm.xlu0 %4793, %v4378_v2  }
 0xda1   :  { %v5040_v14 = vpop.eup %5039 }
 0xda2   :  { %v3115_v10 = vmul.f32 %v5040_v14, %v5036_v62 }
 0xda3   :  { %v5042_v41 = vpop.eup %5041 }
 0xda4   :  { %v3114_v9 = vmul.f32 %v5042_v41, %v6485_v56  ;;  %v3298_v56 = vld [vmem:[%s6952_s11 + $0x78] sm:$0xff] }
 0xda5   :  { %v5044_v26 = vpop.eup %5043  ;;  %4596 = vmatpush3.msra.mxu1 %v3298_v56 }
 0xda6   :  { %v3116_v17 = vadd.f32 %v3115_v10, %v3114_v9  ;;  %4597 = vmatprep.subr.mxu1 %v7020_v54 }
 0xda7   :  { %4598 = vmatpush3.msra.mxu1 %v3297_v45 }
 0xda8   :  { %5045 = vtanh.f32 %v3116_v17  ;;  %4599 = vmatprep.subr.mxu1 %v7020_v54 }
 0xda9   :  { %4600 = vmatpush3.msra.mxu1 %v3296_v52 }
 0xdaa   :  { %4601 = vmatprep.subr.mxu1 %v7020_v54 }
 0xdb5   :  { %v5046_v55 = vpop.eup %5045 }
 0xdb6   :  { %v6601_v39 = vmul.f32 %v5046_v55, %v5044_v26 }
 0xdf6   :  { %v3090_v28 = vpop.permute.xlu0 %3089 }
 0xdf7   :  { %vm3092_vm1 = vcmp.ge.f32.partialorder %v4414_v42, %v3090_v28 }
 0xdf8   :  { %v3093_v40 = vsel %vm3092_vm1, 1, %v7001_v58  ;;  %v4415_v21 = vsel %vm3092_vm1, 1.0, %v7020_v54  ;;  %v3295_v58 = vld [vmem:[%s6952_s11 + $0x60] sm:$0xff] }
 0xdf9   :  { %3126 = vperm.xlu0 %4793, %v4415_v21   ;;  %3120 = vperm.xlu1 %4792, %v3093_v40  }
 0xdfa   :  { %4602 = vmatpush3.msra.mxu1 %v3295_v58 }
 0xdfb   :  { %4603 = vmatprep.subr.mxu1 %v7020_v54 }
 0xdfc   :  { %4604 = vmatpush3.msra.mxu1 %v3294_v20 }
 0xdfd   :  { %4605 = vmatprep.subr.mxu1 %v7020_v54 }
 0xdfe   :  { %4606 = vmatpush3.msra.mxu1 %v3293_v59 }
 0xdff   :  { %4607 = vmatprep.subr.mxu1 %v7020_v54 }
 0xe00   :  { %4608 = vmatpush3.msra.mxu1 %v3292_v38 }
 0xe01   :  { %4609 = vmatprep.subr.mxu1 %v7020_v54 }
 0xe02   :  { %4610 = vmatpush3.msra.mxu1 %v3291_v53 }
 0xe03   :  { %v818_v24 = vpop.permute.xlu0 %817  ;;  %4611 = vmatprep.subr.mxu1 %v7020_v54 }
 0xe04   :  { %v6637_v18 = vsel %vm483_vm3, %v818_v24, %v7029_v1  ;;  %4612 = vmatpush3.msra.mxu1 %v3290_v4 }
 0xe05   :  { %4572 = vmatmul.mubr.f32.gmra.mxu0 %v6637_v18  ;;  %4613 = vmatprep.subr.mxu1 %v7020_v54  ;;  %vm3576_vm7 = vcmp.gt.f32.partialorder %v6637_v18, 0.5 }
 0xe06   :  { %4574 = vmatprep.mubr.msk.f32.mxu0 %vm5317_vm2, %v7020_v54  ;;  %4614 = vmatpush3.msra.mxu1 %v3289_v49 }
 0xe07   :  { %v1148_v36 = vpop.permute.xlu0 %1147  ;;  %4615 = vmatprep.subr.mxu1 %v7020_v54 }
 0xe08   :  { %v6653_v13 = vsel %vm483_vm3, %v1148_v36, %v7030_v15  ;;  %4616 = vmatpush3.msra.mxu1 %v3288_v23 }
 0xe09   :  { %4575 = vmatmul.mubr.f32.gmra.mxu0 %v6653_v13  ;;  %4617 = vmatprep.subr.mxu1 %v7020_v54  ;;  %vm3577_vm9 = vcmp.gt.f32.partialorder %v6653_v13, 0.5 }
 0xe0a   :  { %4577 = vmatprep.mubr.msk.f32.mxu0 %vm5317_vm2, %v7020_v54  ;;  %4618 = vmatpush3.msra.mxu1 %v3287_v32 }
 0xe0b   :  { %v1808_v16 = vpop.permute.xlu0 %1807  ;;  %4619 = vmatprep.subr.mxu1 %v7020_v54 }
 0xe0c   :  { %v6671_v7 = vsel %vm483_vm3, %v1808_v16, %v6252_v63  ;;  %4620 = vmatpush3.msra.mxu1 %v3286_v43 }
 0xe0d   :  { %4578 = vmatmul.mubr.f32.gmra.mxu0 %v6663_v47  ;;  %4621 = vmatprep.subr.mxu1 %v7020_v54  ;;  %vm3579_vm6 = vcmp.gt.f32.partialorder %v6671_v7, 0.5 }
 0xe0e   :  { %4580 = vmatprep.mubr.msk.f32.mxu0 %vm5317_vm2, %v7020_v54  ;;  %4622 = vmatpush3.msra.mxu1 %v3285_v22 }
 0xe0f   :  { %v2138_v35 = vpop.permute.xlu0 %2137  ;;  %4623 = vmatprep.subr.mxu1 %v7020_v54 }
 0xe10   :  { %v6679_v12 = vsel %vm483_vm3, %v2138_v35, %v6320_v11  ;;  %4624 = vmatpush3.msra.mxu1 %v3284_v25  ;;  %v3409_v35 = vld [vmem:[%s7032_s13] sm:$0xff] }
 0xe11   :  { %4581 = vmatmul.mubr.f32.gmra.mxu0 %v6671_v7  ;;  %4625 = vmatprep.subr.mxu1 %v7020_v54  ;;  %vm3580_vm10 = vcmp.gt.f32.partialorder %v6679_v12, 0.5 }
 0xe12   :  { %4583 = vmatprep.mubr.msk.f32.mxu0 %vm5317_vm2, %v7020_v54  ;;  %4626 = vmatpush3.msra.mxu1 %v3283_v29 }
 0xe13   :  { %v2468_v60 = vpop.permute.xlu0 %2467  ;;  %4654 = vmatprep.subr.mxu1 %v7020_v54 }
 0xe14   :  { %v6687_v63 = vsel %vm483_vm3, %v2468_v60, %v6382_v27  ;;  %v3230_v27 = vpop.f32.mrf.mxu0  ;;  %v3494_v60 = vld [vmem:[%s6953_s12 + $0x8] sm:$0xff] }
 0xe15   :  { %4584 = vmatmul.mubr.f32.gmra.mxu0 %v6679_v12  ;;  %v3231_v61 = vadd.f32 %v6700_v0, %v3230_v27  ;;  %vm3581_vm12 = vcmp.gt.f32.partialorder %v6687_v63, 0.5 }
 0xe16   :  { %4586 = vmatprep.mubr.msk.f32.mxu0 %vm5317_vm2, %v7020_v54  ;;  %v4570_v19 = vpop.f32.mrf.mxu0 }
 0xe17   :  { %v2798_v33 = vpop.permute.xlu0 %2797  ;;  %5047 = vtanh.f32 %v3231_v61 }
 0xe18   :  { %v6695_v11 = vsel %vm483_vm3, %v2798_v33, %v6482_v5  ;;  %v3493_v33 = vld [vmem:[%s6953_s12] sm:$0xff]  ;;  %s5319_s12 = smov 32  }
 0xe19   :  { %4587 = vmatmul.mubr.f32.gmra.mxu0 %v6687_v63  ;;  %vm3582_vm11 = vcmp.gt.f32.partialorder %v6695_v11, 0.5 }
 0xe1a   :  { %4589 = vmatprep.mubr.msk.f32.mxu0 %vm5317_vm2, %v7020_v54 }
 0xe1d   :  { %4590 = vmatmul.mubr.f32.gmra.mxu0 %v6695_v11 }
 0xe1e   :  { %4592 = vmatprep.mubr.msk.f32.mxu0 %vm5317_vm2, %v7020_v54 }
 0xe24   :  { %v5048_v6 = vpop.eup %5047 }
 0xe25   :  { %4628 = vmatmul.mubr.f32.vlgmr.msra.gmra.mxu1 %v5048_v6 }
 0xe26   :  { %4630 = vmatprep.mubr.msk.f32.mxu1 %vm5317_vm2, %v7020_v54  ;;  %4655 = vmatpush3.msra.mxu1 %v3411_v46 }
 0xe27   :  { %4656 = vmatprep.subr.mxu1 %v7020_v54 }
 0xe28   :  { %4657 = vmatpush3.msra.mxu1 %v3410_v44 }
 0xe29   :  { %4661 = vmatprep.subr.mxu1 %v7020_v54 }
 0xe74   :  { %v3121_v30 = vpop.permute.xlu1 %3120  ;;  %v3127_v51 = vpop.permute.xlu0 %3126 }
 0xe75   :  { %vm3122_vm4 = vcmp.eq.s32.totalorder %v3121_v30, 1 }
 0xe76   :  { %v6736_v34 = vsel %vm3122_vm4, %v6601_v39, %v6482_v5 }
 0xe77   :  { %v6741_v57 = vsel %vm483_vm3, %v3127_v51, %v6736_v34 }
 0xe78   :  { %4593 = vmatmul.mubr.f32.gmra.mxu0 %v6741_v57  ;;  %vm3583_vm13 = vcmp.gt.f32.partialorder %v6741_v57, 0.5 }
 0xe79   :  { %4700 = vmatprep.mubr.msk.f32.mxu0 %vm5317_vm2, %v7020_v54 }
 0xec5   :  { %v3235_v31 = vpop.f32.mrf.mxu0 }
 0xec6   :  { %v3236_v2 = vadd.f32 %v6700_v0, %v3235_v31  ;;  %v4420_v31 = vld [vmem:[#allocation9] ss:$0 sm:$0xff] }
 0xec7   :  { %v4573_v5 = vpop.f32.mrf.mxu0 }
 0xec8   :  { %5049 = vtanh.f32 %v3236_v2 }
 0xec9   :  { %v3240_v62 = vpop.f32.mrf.mxu0 }
 0xeca   :  { %v3241_v8 = vadd.f32 %v6700_v0, %v3240_v62 }
 0xecb   :  { %v4576_v14 = vpop.f32.mrf.mxu0 }
 0xecc   :  { %5051 = vtanh.f32 %v3241_v8  ;;  %v3889_v8 = vld [vmem:[#allocation14 + $0x78] sm:$0xff] }
 0xecd   :  { %v3245_v10 = vpop.f32.mrf.mxu0 }
 0xece   :  { %v3246_v41 = vadd.f32 %v6700_v0, %v3245_v10  ;;  %v3888_v10 = vld [vmem:[#allocation14 + $0x70] sm:$0xff] }
 0xecf   :  { %v4579_v50 = vpop.f32.mrf.mxu0 }
 0xed0   :  { %5053 = vtanh.f32 %v3246_v41  ;;  %v3887_v41 = vld [vmem:[#allocation14 + $0x68] sm:$0xff]  ;;  %v3886_v50 = vld [vmem:[#allocation14 + $0x60] sm:$0xff] }
 0xed1   :  { %v3250_v9 = vpop.f32.mrf.mxu0 }
 0xed2   :  { %v3251_v17 = vadd.f32 %v6700_v0, %v3250_v9  ;;  %v3885_v9 = vld [vmem:[#allocation14 + $0x58] sm:$0xff] }
 0xed3   :  { %v4582_v26 = vpop.f32.mrf.mxu0 }
 0xed4   :  { %5055 = vtanh.f32 %v3251_v17  ;;  %v3884_v17 = vld [vmem:[#allocation14 + $0x50] sm:$0xff]  ;;  %v3883_v26 = vld [vmem:[#allocation14 + $0x48] sm:$0xff] }
 0xed5   :  { %v5050_v55 = vpop.eup %5049  ;;  %v3255_v39 = vpop.f32.mrf.mxu0 }
 0xed6   :  { %v3256_v42 = vadd.f32 %v6700_v0, %v3255_v39  ;;  %4631 = vmatmul.mubr.f32.gmra.mxu1 %v5050_v55  ;;  %v3882_v55 = vld [vmem:[#allocation14 + $0x40] sm:$0xff]  ;;  %v3881_v39 = vld [vmem:[#allocation14 + $0x38] sm:$0xff] }
 0xed7   :  { %v4585_v28 = vpop.f32.mrf.mxu0  ;;  %4633 = vmatprep.mubr.msk.f32.mxu1 %vm5317_vm2, %v7020_v54 }
 0xed8   :  { %5057 = vtanh.f32 %v3256_v42  ;;  %v3880_v42 = vld [vmem:[#allocation14 + $0x30] sm:$0xff]  ;;  %v3879_v28 = vld [vmem:[#allocation14 + $0x28] sm:$0xff] }
 0xed9   :  { %v5052_v40 = vpop.eup %5051  ;;  %v3260_v21 = vpop.f32.mrf.mxu0 }
 0xeda   :  { %v3261_v56 = vadd.f32 %v6700_v0, %v3260_v21  ;;  %4634 = vmatmul.mubr.f32.gmra.mxu1 %v5052_v40  ;;  %v3878_v40 = vld [vmem:[#allocation14 + $0x20] sm:$0xff]  ;;  %v3877_v21 = vld [vmem:[#allocation14 + $0x18] sm:$0xff] }
 0xedb   :  { %v4588_v45 = vpop.f32.mrf.mxu0  ;;  %4636 = vmatprep.mubr.msk.f32.mxu1 %vm5317_vm2, %v7020_v54 }
 0xedc   :  { %5059 = vtanh.f32 %v3261_v56  ;;  %v3876_v56 = vld [vmem:[#allocation14 + $0x10] sm:$0xff]  ;;  %v3875_v45 = vld [vmem:[#allocation14 + $0x8] sm:$0xff] }
 0xedd   :  { %v5054_v52 = vpop.eup %5053  ;;  %v3265_v58 = vpop.f32.mrf.mxu0 }
 0xede   :  { %v3266_v20 = vadd.f32 %v6700_v0, %v3265_v58  ;;  %4637 = vmatmul.mubr.f32.gmra.mxu1 %v5054_v52  ;;  %v3874_v52 = vld [vmem:[#allocation14] sm:$0xff] }
 0xedf   :  { %v4591_v59 = vpop.f32.mrf.mxu0  ;;  %4639 = vmatprep.mubr.msk.f32.mxu1 %vm5317_vm2, %v7020_v54  ;;  %v4422_v58 = vld [vmem:[#allocation3] ss:$0 sm:$0xff] }
 0xee0   :  { %5061 = vtanh.f32 %v3266_v20 }
 0xee1   :  { %v5056_v24 = vpop.eup %5055 }
 0xee2   :  { %4640 = vmatmul.mubr.f32.gmra.mxu1 %v5056_v24 }
 0xee3   :  { %4642 = vmatprep.mubr.msk.f32.mxu1 %vm5317_vm2, %v7020_v54 }
 0xee5   :  { %v5058_v38 = vpop.eup %5057  ;;  %v6768_v36 = vpop.f32.mrf.mxu1 }
 0xee6   :  { %4643 = vmatmul.mubr.f32.gmra.mxu1 %v5058_v38 }
 0xee7   :  { %4645 = vmatprep.mubr.msk.f32.mxu1 %vm5317_vm2, %v7020_v54  ;;  %v4629_v4 = vpop.f32.mrf.mxu1 }
 0xee9   :  { %v5060_v1 = vpop.eup %5059 }
 0xeea   :  { %4646 = vmatmul.mubr.f32.gmra.mxu1 %v5060_v1 }
 0xeeb   :  { %4648 = vmatprep.mubr.msk.f32.mxu1 %vm5317_vm2, %v7020_v54 }
 0xeed   :  { %v5062_v53 = vpop.eup %5061 }
 0xeee   :  { %4649 = vmatmul.mubr.f32.gmra.mxu1 %v5062_v53 }
 0xeef   :  { %4651 = vmatprep.mubr.msk.f32.mxu1 %vm5317_vm2, %v7020_v54 }
 0xf38   :  { %v3270_v15 = vpop.f32.mrf.mxu0 }
 0xf39   :  { %v3271_v48 = vadd.f32 %v6700_v0, %v3270_v15 }
 0xf3a   :  { %v4594_v16 = vpop.f32.mrf.mxu0 }
 0xf3b   :  { %5063 = vtanh.f32 %v3271_v48 }
 0xf48   :  { %v5064_v3 = vpop.eup %5063 }
 0xf49   :  { %4652 = vmatmul.mubr.f32.gmra.mxu1 %v5064_v3 }
 0xf4a   :  { %4658 = vmatprep.mubr.msk.f32.mxu1 %vm5317_vm2, %v7020_v54 }
 0xf4d   :  { %4659 = vmatmul.mubr.msk.f32.vlgmr.msra.gmra.mxu1 %vm230_vm0, %v3409_v35 }
 0xf4e   :  { %4665 = vmatprep.mubr.msk.f32.mxu1 %vm5317_vm2, %v7020_v54  ;;  %4662 = vmatpush3.msra.mxu1 %v3494_v60  ;;  %v5320_v60 = vmov 32  }
 0xf4f   :  { %4663 = vmatprep.subr.mxu1 %v7020_v54  ;;  %4794 = vset.pattern.permute.xlu0 %v5320_v60 }
 0xf50   :  { %4664 = vmatpush3.msra.mxu1 %v3493_v33  ;;  %4795 = vset.pattern.permute.xlu1 %v5320_v60  ;;  %v3796_v33 = vld [vmem:[#allocation11 + $0x78] sm:$0xff] }
 0xf51   :  { %4703 = vmatprep.subr.mxu1 %v7020_v54  ;;  %4669 = vmatpush3.msra.mxu0 %v3796_v33 }
 0xf52   :  { %4670 = vmatprep.subr.mxu0 %v7020_v54 }
 0xf96   :  { %v6787_v0 = vpop.f32.mrf.mxu1 }
 0xf98   :  { %v4632_v27 = vpop.f32.mrf.mxu1 }
 0xf99   :  { %v3794_v27 = vld [vmem:[#allocation11 + $0x68] sm:$0xff] }
 0xf9a   :  { %v6789_v61 = vpop.f32.mrf.mxu1 }
 0xf9c   :  { %v4635_v19 = vpop.f32.mrf.mxu1 }
 0xf9d   :  { %v3792_v19 = vld [vmem:[#allocation11 + $0x58] sm:$0xff] }
 0xf9e   :  { %v6791_v49 = vpop.f32.mrf.mxu1 }
 0xfa0   :  { %v4638_v23 = vpop.f32.mrf.mxu1 }
 0xfa1   :  { %v3790_v23 = vld [vmem:[#allocation11 + $0x48] sm:$0xff] }
 0xfa2   :  { %v6793_v32 = vpop.f32.mrf.mxu1 }
 0xfa4   :  { %v4641_v43 = vpop.f32.mrf.mxu1 }
 0xfa6   :  { %v6795_v22 = vpop.f32.mrf.mxu1 }
 0xfa8   :  { %v4644_v25 = vpop.f32.mrf.mxu1 }
 0xfaa   :  { %v6797_v29 = vpop.f32.mrf.mxu1 }
 0xfac   :  { %v4647_v6 = vpop.f32.mrf.mxu1 }
 0xfae   :  { %v6799_v46 = vpop.f32.mrf.mxu1 }
 0xfb0   :  { %v4650_v30 = vpop.f32.mrf.mxu1 }
0x1009   :  { %v6801_v51 = vpop.f32.mrf.mxu1 }
0x100b   :  { %v4653_v44 = vpop.f32.mrf.mxu1 }
0x100d   :  { %v3488_v2 = vpop.f32.mrf.mxu1 }
0x100e   :  { %v3489_v5 = vadd.f32 %v4420_v31, %v3488_v2 }
0x100f   :  { %v4660_v62 = vpop.f32.mrf.mxu1 }
0x1010   :  { %5065 = vtanh.f32 %v3489_v5 }
0x101d   :  { %v5066_v14 = vpop.eup %5065 }
0x101e   :  { %4666 = vmatmul.mubr.msk.f32.vlgmr.msra.gmra.mxu1 %vm230_vm0, %v5066_v14 }
0x101f   :  { %4704 = vmatpush3.msra.mxu1 %v3889_v8  ;;  %4735 = vmatprep.mubr.msk.f32.mxu1 %vm5317_vm2, %v7020_v54 }
0x1020   :  { %4705 = vmatprep.subr.mxu1 %v7020_v54 }
0x1021   :  { %4706 = vmatpush3.msra.mxu1 %v3888_v10 }
0x1022   :  { %4707 = vmatprep.subr.mxu1 %v7020_v54 }
0x1023   :  { %4708 = vmatpush3.msra.mxu1 %v3887_v41 }
0x1024   :  { %4709 = vmatprep.subr.mxu1 %v7020_v54 }
0x1025   :  { %4710 = vmatpush3.msra.mxu1 %v3886_v50 }
0x1026   :  { %4711 = vmatprep.subr.mxu1 %v7020_v54 }
0x1027   :  { %4712 = vmatpush3.msra.mxu1 %v3885_v9 }
0x1028   :  { %4713 = vmatprep.subr.mxu1 %v7020_v54 }
0x1029   :  { %4714 = vmatpush3.msra.mxu1 %v3884_v17 }
0x102a   :  { %4715 = vmatprep.subr.mxu1 %v7020_v54 }
0x102b   :  { %4716 = vmatpush3.msra.mxu1 %v3883_v26 }
0x102c   :  { %4717 = vmatprep.subr.mxu1 %v7020_v54 }
0x102d   :  { %4718 = vmatpush3.msra.mxu1 %v3882_v55 }
0x102e   :  { %4719 = vmatprep.subr.mxu1 %v7020_v54 }
0x102f   :  { %4720 = vmatpush3.msra.mxu1 %v3881_v39 }
0x1030   :  { %4721 = vmatprep.subr.mxu1 %v7020_v54 }
0x1031   :  { %4722 = vmatpush3.msra.mxu1 %v3880_v42 }
0x1032   :  { %4723 = vmatprep.subr.mxu1 %v7020_v54 }
0x1033   :  { %4724 = vmatpush3.msra.mxu1 %v3879_v28 }
0x1034   :  { %4725 = vmatprep.subr.mxu1 %v7020_v54 }
0x1035   :  { %4726 = vmatpush3.msra.mxu1 %v3878_v40 }
0x1036   :  { %4727 = vmatprep.subr.mxu1 %v7020_v54 }
0x1037   :  { %4728 = vmatpush3.msra.mxu1 %v3877_v21 }
0x1038   :  { %4729 = vmatprep.subr.mxu1 %v7020_v54 }
0x1039   :  { %4730 = vmatpush3.msra.mxu1 %v3876_v56 }
0x103a   :  { %4731 = vmatprep.subr.mxu1 %v7020_v54 }
0x103b   :  { %4732 = vmatpush3.msra.mxu1 %v3875_v45 }
0x103c   :  { %4733 = vmatprep.subr.mxu1 %v7020_v54 }
0x103d   :  { %4734 = vmatpush3.msra.mxu1 %v3874_v52 }
0x103e   :  { %4736 = vmatmul.mubr.f32.vlgmr.msra.gmra.mxu1 %v6736_v34 }
0x10de   :  { %v3571_v20 = vpop.f32.mrf.mxu1 }
0x10df   :  { %v3572_v59 = vadd.f32 %v4422_v58, %v3571_v20 }
0x10e0   :  { %v4667_v24 = vpop.f32.mrf.mxu1 }
0x10e1   :  { %v3588_v38 = vadd.f32 %v3572_v59, %v6793_v32  ;;  %v3584_v1 = vadd.f32 %v3572_v59, %v6768_v36  ;;  %v3586_v53 = vadd.f32 %v3572_v59, %v6789_v61  ;;  %v3585_v4 = vadd.f32 %v3572_v59, %v6787_v0  ;;  %v3795_v0 = vld [vmem:[#allocation11 + $0x70] sm:$0xff]  ;;  %v3793_v61 = vld [vmem:[#allocation11 + $0x60] sm:$0xff] }
0x10e2   :  { %v3589_v15 = vadd.f32 %v3572_v59, %v6795_v22  ;;  %v3587_v34 = vadd.f32 %v3572_v59, %v6791_v49  ;;  %v3591_v48 = vadd.f32 %v3572_v59, %v6799_v46  ;;  %v3590_v16 = vadd.f32 %v3572_v59, %v6797_v29  ;;  %4671 = vmatpush3.msra.mxu0 %v3795_v0  ;;  %v3791_v49 = vld [vmem:[#allocation11 + $0x50] sm:$0xff] }
0x10e3   :  { %3610 = vrot.lane.b32.xlu0 %v3588_v38, %s5319_s12  ;;  %3602 = vrot.lane.b32.xlu1 %v3584_v1, %s5319_s12  ;;  %v3592_v36 = vadd.f32 %v3572_v59, %v6801_v51  ;;  %v6843_v29 = vsel %vm483_vm3, 1.0, %v7020_v54 }
0x10e4   :  { %4672 = vmatprep.subr.mxu0 %v7020_v54  ;;  %vm3575_vm0 = vcmp.gt.f32.partialorder %v6843_v29, 0.5 }
0x10e5   :  { %4673 = vmatpush3.msra.mxu0 %v3794_v27 }
0x10e6   :  { %4674 = vmatprep.subr.mxu0 %v7020_v54 }
0x10e7   :  { %3606 = vrot.lane.b32.xlu0 %v3586_v53, %s5319_s12  ;;  %3604 = vrot.lane.b32.xlu1 %v3585_v4, %s5319_s12 }
0x10e8   :  { %4675 = vmatpush3.msra.mxu0 %v3793_v61 }
0x10e9   :  { %4676 = vmatprep.subr.mxu0 %v7020_v54 }
0x10ea   :  { %4677 = vmatpush3.msra.mxu0 %v3792_v19 }
0x10eb   :  { %3612 = vrot.lane.b32.xlu0 %v3589_v15, %s5319_s12  ;;  %3608 = vrot.lane.b32.xlu1 %v3587_v34, %s5319_s12 }
0x10ec   :  { %4678 = vmatprep.subr.mxu0 %v7020_v54 }
0x10ed   :  { %4679 = vmatpush3.msra.mxu0 %v3791_v49 }
0x10ee   :  { %4680 = vmatprep.subr.mxu0 %v7020_v54 }
0x10ef   :  { %3616 = vrot.lane.b32.xlu0 %v3591_v48, %s5319_s12  ;;  %3614 = vrot.lane.b32.xlu1 %v3590_v16, %s5319_s12 }
0x10f0   :  { %4681 = vmatpush3.msra.mxu0 %v3790_v23 }
0x10f1   :  { %4682 = vmatprep.subr.mxu0 %v7020_v54 }
0x10f3   :  { %3618 = vrot.lane.b32.xlu1 %v3592_v36, %s5319_s12 }
0x10fe   :  { %v6831_v3 = vpop.f32.mrf.mxu1 }
0x1100   :  { %v4737_v35 = vpop.f32.mrf.mxu1 }
0x1155   :  { %v3611_v32 = vpop.permute.xlu0 %3610  ;;  %v3603_v43 = vpop.permute.xlu1 %3602 }
0x1156   :  { %v3633_v30 = vsel %vm3579_vm6, %v3611_v32, -1e+30  ;;  %v3629_v51 = vsel %vm3575_vm0, %v3603_v43, -1e+30 }
0x1157   :  { %v3643_v10 = vsel %vm3638_vm5, %v3633_v30, -inf  ;;  %v3639_v41 = vsel %vm3638_vm5, %v3629_v51, -inf }
0x1158   :  { %v3644_v28 = vmax.f32 %v3639_v41, %v3643_v10 }
0x1159   :  { %v3607_v22 = vpop.permute.xlu0 %3606  ;;  %v3605_v25 = vpop.permute.xlu1 %3604 }
0x115a   :  { %v3631_v44 = vsel %vm3577_vm9, %v3607_v22, -1e+30  ;;  %v3630_v17 = vsel %vm3576_vm7, %v3605_v25, -1e+30 }
0x115b   :  { %v3641_v26 = vsel %vm3638_vm5, %v3631_v44, -inf  ;;  %v3640_v45 = vsel %vm3638_vm5, %v3630_v17, -inf }
0x115d   :  { %v3613_v6 = vpop.permute.xlu0 %3612  ;;  %v3609_v46 = vpop.permute.xlu1 %3608 }
0x115e   :  { %v3634_v31 = vsel %vm3580_vm10, %v3613_v6, -1e+30  ;;  %v3632_v62 = vsel %vm3578_vm8, %v3609_v46, -1e+30 }
0x115f   :  { %v3645_v55 = vsel %vm3638_vm5, %v3634_v31, -inf  ;;  %v3642_v39 = vsel %vm3638_vm5, %v3632_v62, -inf }
0x1160   :  { %v3646_v58 = vmax.f32 %v3640_v45, %v3645_v55 }
0x1161   :  { %v3617_v2 = vpop.permute.xlu0 %3616  ;;  %v3615_v5 = vpop.permute.xlu1 %3614 }
0x1162   :  { %v3636_v8 = vsel %vm3582_vm11, %v3617_v2, -1e+30  ;;  %v3635_v14 = vsel %vm3581_vm12, %v3615_v5, -1e+30 }
0x1163   :  { %v3649_v50 = vsel %vm3638_vm5, %v3636_v8, -inf  ;;  %v3647_v9 = vsel %vm3638_vm5, %v3635_v14, -inf }
0x1164   :  { %v3650_v40 = vmax.f32 %v3642_v39, %v3649_v50  ;;  %v3648_v21 = vmax.f32 %v3641_v26, %v3647_v9 }
0x1165   :  { %v3619_v42 = vpop.permute.xlu1 %3618 }
0x1166   :  { %v3637_v56 = vsel %vm3583_vm13, %v3619_v42, -1e+30  ;;  %v3654_v59 = vmax.f32 %v3648_v21, %v3650_v40 }
0x1167   :  { %v3651_v52 = vsel %vm3638_vm5, %v3637_v56, -inf }
0x1168   :  { %v3652_v20 = vmax.f32 %v3644_v28, %v3651_v52 }
0x116a   :  { %v3653_v24 = vmax.f32 %v3652_v20, %v3646_v58 }
0x116c   :  { %v3655_v38 = vmax.f32 %v3653_v24, %v3654_v59 }
0x116e   :  { %v3656_v1 = vsub.f32 %v3629_v51, %v3655_v38  ;;  %v3657_v53 = vsub.f32 %v3630_v17, %v3655_v38  ;;  %v3658_v4 = vsub.f32 %v3631_v44, %v3655_v38  ;;  %v3659_v15 = vsub.f32 %v3632_v62, %v3655_v38 }
0x116f   :  { %v3660_v34 = vsub.f32 %v3633_v30, %v3655_v38  ;;  %v3661_v48 = vsub.f32 %v3634_v31, %v3655_v38  ;;  %v3662_v60 = vsub.f32 %v3635_v14, %v3655_v38  ;;  %v3663_v27 = vsub.f32 %v3636_v8, %v3655_v38 }
0x1170   :  { %v3665_v16 = vmul.f32 1.442695, %v3656_v1  ;;  %v3667_v36 = vmul.f32 1.442695, %v3657_v53  ;;  %v3669_v35 = vmul.f32 1.442695, %v3658_v4  ;;  %v3664_v19 = vsub.f32 %v3637_v56, %v3655_v38 }
0x1171   :  { %v3671_v33 = vmul.f32 1.442695, %v3659_v15  ;;  %v3673_v0 = vmul.f32 1.442695, %v3660_v34  ;;  %v3675_v61 = vmul.f32 1.442695, %v3661_v48 }
0x1172   :  { %5067 = vpow2.f32 %v3665_v16  ;;  %v3677_v49 = vmul.f32 1.442695, %v3662_v60  ;;  %v3679_v23 = vmul.f32 1.442695, %v3663_v27  ;;  %v3681_v32 = vmul.f32 1.442695, %v3664_v19 }
0x1173   :  { %5069 = vpow2.f32 %v3667_v36  ;;  %v4064_v53 = vsel %vm3638_vm5, %v6637_v18, 0.0  ;;  %v4063_v4 = vsel %vm3638_vm5, %v6843_v29, 0.0  ;;  %v4066_v15 = vsel %vm3638_vm5, %v6653_v13, 0.0 }
0x1174   :  { %5071 = vpow2.f32 %v3669_v35  ;;  %v4065_v34 = vadd.f32 %v4064_v53, %v4063_v4  ;;  %v4068_v36 = vsel %vm3638_vm5, %v6663_v47, 0.0  ;;  %v4070_v27 = vsel %vm3638_vm5, %v6671_v7, 0.0 }
0x1175   :  { %5073 = vpow2.f32 %v3671_v33  ;;  %v4072_v19 = vsel %vm3638_vm5, %v6679_v12, 0.0 }
0x1176   :  { %5075 = vpow2.f32 %v3673_v0  ;;  %v4067_v48 = vadd.f32 %v4066_v15, %v4065_v34  ;;  %v3789_v0 = vld [vmem:[#allocation11 + $0x40] sm:$0xff] }
0x1177   :  { %5077 = vpow2.f32 %v3675_v61  ;;  %4683 = vmatpush3.msra.mxu0 %v3789_v0  ;;  %v3788_v61 = vld [vmem:[#allocation11 + $0x38] sm:$0xff] }
0x1178   :  { %5079 = vpow2.f32 %v3677_v49  ;;  %v4069_v33 = vadd.f32 %v4068_v36, %v4067_v48  ;;  %4684 = vmatprep.subr.mxu0 %v7020_v54  ;;  %v3977_v0 = vld [vmem:[#allocation17 + $0x38] sm:$0xff] }
0x1179   :  { %5081 = vpow2.f32 %v3679_v23  ;;  %4685 = vmatpush3.msra.mxu0 %v3788_v61  ;;  %v3975_v61 = vld [vmem:[#allocation17 + $0x28] sm:$0xff] }
0x117a   :  { %5083 = vpow2.f32 %v3681_v32  ;;  %v4071_v32 = vadd.f32 %v4070_v27, %v4069_v33  ;;  %4686 = vmatprep.subr.mxu0 %v7020_v54  ;;  %v3978_v33 = vld [vmem:[#allocation17 + $0x40] sm:$0xff]  ;;  %v3976_v27 = vld [vmem:[#allocation17 + $0x30] sm:$0xff] }
0x117f   :  { %v5068_v43 = vpop.eup %5067 }
0x1180   :  { %v5070_v22 = vpop.eup %5069  ;;  %v3683_v25 = vmul.f32 %v5068_v43, %v6843_v29  ;;  %v4074_v43 = vsel %vm3638_vm5, %v6687_v63, 0.0 }
0x1181   :  { %v5072_v6 = vpop.eup %5071  ;;  %v3684_v46 = vmul.f32 %v5070_v22, %v6637_v18  ;;  %v4073_v22 = vadd.f32 %v4072_v19, %v4071_v32  ;;  %v3974_v19 = vld [vmem:[#allocation17 + $0x20] sm:$0xff]  ;;  %v3971_v32 = vld [vmem:[#allocation17 + $0x8] sm:$0xff] }
0x1182   :  { %v5074_v30 = vpop.eup %5073  ;;  %v3685_v51 = vmul.f32 %v5072_v6, %v6653_v13  ;;  %v3692_v44 = vsel %vm3638_vm5, %v3683_v25, 0.0  ;;  %v4076_v6 = vsel %vm3638_vm5, %v6695_v11, 0.0 }
0x1183   :  { %v5076_v31 = vpop.eup %5075  ;;  %v3686_v2 = vmul.f32 %v5074_v30, %v6663_v47  ;;  %v3693_v5 = vsel %vm3638_vm5, %v3684_v46, 0.0 }
0x1184   :  { %v5078_v62 = vpop.eup %5077  ;;  %v3694_v8 = vadd.f32 %v3693_v5, %v3692_v44  ;;  %v3687_v14 = vmul.f32 %v5076_v31, %v6671_v7  ;;  %v3695_v10 = vsel %vm3638_vm5, %v3685_v51, 0.0  ;;  %v4075_v44 = vadd.f32 %v4074_v43, %v4073_v22  ;;  %v3785_v5 = vld [vmem:[#allocation11 + $0x20] sm:$0xff] }
0x1185   :  { %v5080_v41 = vpop.eup %5079  ;;  %v3688_v9 = vmul.f32 %v5078_v62, %v6679_v12  ;;  %v3697_v17 = vsel %vm3638_vm5, %v3686_v2, 0.0  ;;  %v3970_v43 = vld [vmem:[#allocation17] sm:$0xff]  ;;  %v4424_v22 = vld [vmem:[#allocation12] ss:$0 sm:$0xff] }
0x1186   :  { %v3696_v50 = vadd.f32 %v3695_v10, %v3694_v8  ;;  %v5082_v26 = vpop.eup %5081  ;;  %v3689_v39 = vmul.f32 %v5080_v41, %v6687_v63  ;;  %v3699_v42 = vsel %vm3638_vm5, %v3687_v14, 0.0  ;;  %v4077_v31 = vadd.f32 %v4076_v6, %v4075_v44 }
0x1187   :  { %v5084_v28 = vpop.eup %5083  ;;  %v3690_v21 = vmul.f32 %v5082_v26, %v6695_v11  ;;  %v3701_v56 = vsel %vm3638_vm5, %v3688_v9, 0.0  ;;  %v3781_v26 = vld [vmem:[#allocation11] sm:$0xff] }
0x1188   :  { %v3698_v55 = vadd.f32 %v3697_v17, %v3696_v50  ;;  %v3691_v52 = vmul.f32 %v5084_v28, %v6741_v57  ;;  %v3703_v58 = vsel %vm3638_vm5, %v3689_v39, 0.0  ;;  %v3782_v17 = vld [vmem:[#allocation11 + $0x8] sm:$0xff] }
0x1189   :  { %v3705_v59 = vsel %vm3638_vm5, %v3690_v21, 0.0 }
0x118a   :  { %v3700_v40 = vadd.f32 %v3699_v42, %v3698_v55  ;;  %v3707_v38 = vsel %vm3638_vm5, %v3691_v52, 0.0 }
0x118c   :  { %v3702_v45 = vadd.f32 %v3701_v56, %v3700_v40 }
0x118e   :  { %v3704_v20 = vadd.f32 %v3703_v58, %v3702_v45 }
0x1190   :  { %v3706_v24 = vadd.f32 %v3705_v59, %v3704_v20 }
0x1192   :  { %v3708_v1 = vadd.f32 %v3707_v38, %v3706_v24 }
0x1194   :  { %5085 = vrcp.f32 %v3708_v1 }
0x11a1   :  { %v5086_v16 = vpop.eup %5085 }
0x11a2   :  { %v3711_v35 = vmul.f32 %v5086_v16, %v3684_v46  ;;  %v3710_v60 = vmul.f32 %v5086_v16, %v3683_v25  ;;  %v3712_v49 = vmul.f32 %v5086_v16, %v3685_v51  ;;  %v3713_v23 = vmul.f32 %v5086_v16, %v3686_v2  ;;  %v3787_v25 = vld [vmem:[#allocation11 + $0x30] sm:$0xff]  ;;  %v3786_v2 = vld [vmem:[#allocation11 + $0x28] sm:$0xff] }
0x11a3   :  { %4687 = vmatpush3.msra.mxu0 %v3787_v25  ;;  %v3714_v46 = vmul.f32 %v5086_v16, %v3687_v14  ;;  %v3715_v30 = vmul.f32 %v5086_v16, %v3688_v9  ;;  %v4078_v51 = vsel %vm3638_vm5, %v6741_v57, 0.0  ;;  %v3716_v62 = vmul.f32 %v5086_v16, %v3689_v39  ;;  %v3784_v14 = vld [vmem:[#allocation11 + $0x18] sm:$0xff]  ;;  %v3783_v9 = vld [vmem:[#allocation11 + $0x10] sm:$0xff] }
0x11a4   :  { %3726 = vperm.xlu1 %4795, %v3711_v35   ;;  %3721 = vperm.xlu0 %4794, %v3710_v60   ;;  %v3717_v8 = vmul.f32 %v5086_v16, %v3690_v21  ;;  %v4079_v10 = vadd.f32 %v4078_v51, %v4077_v31  ;;  %v3718_v41 = vmul.f32 %v5086_v16, %v3691_v52  ;;  %v3985_v35 = vld [vmem:[#allocation17 + $0x78] sm:$0xff]  ;;  %v3984_v60 = vld [vmem:[#allocation17 + $0x70] sm:$0xff] }
0x11a5   :  { %4688 = vmatprep.subr.mxu0 %v7020_v54 }
0x11a6   :  { %4689 = vmatpush3.msra.mxu0 %v3786_v2  ;;  %v4427_v50 = vadd.f32 -1.0, %v4079_v10  ;;  %v4426_v2 = vld [vmem:[#allocation18] ss:$0 sm:$0xff] }
0x11a7   :  { %4690 = vmatprep.subr.mxu0 %v7020_v54 }
0x11a8   :  { %3731 = vperm.xlu1 %4795, %v3712_v49   ;;  %3736 = vperm.xlu0 %4794, %v3713_v23   ;;  %v3973_v49 = vld [vmem:[#allocation17 + $0x18] sm:$0xff]  ;;  %v3972_v23 = vld [vmem:[#allocation17 + $0x10] sm:$0xff] }
0x11a9   :  { %4691 = vmatpush3.msra.mxu0 %v3785_v5 }
0x11aa   :  { %4692 = vmatprep.subr.mxu0 %v7020_v54 }
0x11ab   :  { %4693 = vmatpush3.msra.mxu0 %v3784_v14 }
0x11ac   :  { %3741 = vperm.xlu1 %4795, %v3714_v46   ;;  %3746 = vperm.xlu0 %4794, %v3715_v30   ;;  %v4425_v46 = vld [vmem:[#allocation15] ss:$0 sm:$0xff] }
0x11ad   :  { %4694 = vmatprep.subr.mxu0 %v7020_v54 }
0x11ae   :  { %4695 = vmatpush3.msra.mxu0 %v3783_v9 }
0x11af   :  { %4696 = vmatprep.subr.mxu0 %v7020_v54 }
0x11b0   :  { %3751 = vperm.xlu1 %4795, %v3716_v62   ;;  %3756 = vperm.xlu0 %4794, %v3717_v8  }
0x11b1   :  { %4697 = vmatpush3.msra.mxu0 %v3782_v17 }
0x11b2   :  { %4698 = vmatprep.subr.mxu0 %v7020_v54 }
0x11b3   :  { %4699 = vmatpush3.msra.mxu0 %v3781_v26 }
0x11b4   :  { %3761 = vperm.xlu1 %4795, %v3718_v41   ;;  %4086 = vperm.xlu0 %4794, %v4427_v50  }
0x11b5   :  { %4738 = vmatprep.subr.mxu0 %v7020_v54 }
0x121f   :  { %v3727_v55 = vpop.permute.xlu1 %3726  ;;  %v3722_v39 = vpop.permute.xlu0 %3721 }
0x1220   :  { %v3765_v42 = vmul.f32 %v3727_v55, %v6637_v18  ;;  %v3764_v28 = vmul.f32 %v3722_v39, %v6843_v29 }
0x1222   :  { %v3773_v56 = vadd.f32 %v3765_v42, %v3764_v28 }
0x1223   :  { %v3732_v40 = vpop.permute.xlu1 %3731  ;;  %v3737_v21 = vpop.permute.xlu0 %3736 }
0x1224   :  { %v3766_v45 = vmul.f32 %v3732_v40, %v6653_v13  ;;  %v3767_v58 = vmul.f32 %v3737_v21, %v6663_v47 }
0x1226   :  { %v3774_v52 = vadd.f32 %v3773_v56, %v3766_v45 }
0x1227   :  { %v3742_v20 = vpop.permute.xlu1 %3741  ;;  %v3747_v59 = vpop.permute.xlu0 %3746 }
0x1228   :  { %v3775_v24 = vadd.f32 %v3774_v52, %v3767_v58  ;;  %v3768_v38 = vmul.f32 %v3742_v20, %v6671_v7  ;;  %v3769_v53 = vmul.f32 %v3747_v59, %v6679_v12  ;;  %v3983_v7 = vld [vmem:[#allocation17 + $0x68] sm:$0xff]  ;;  %v3982_v12 = vld [vmem:[#allocation17 + $0x60] sm:$0xff] }
0x122a   :  { %v3776_v1 = vadd.f32 %v3775_v24, %v3768_v38 }
0x122b   :  { %v3752_v4 = vpop.permute.xlu1 %3751  ;;  %v3757_v18 = vpop.permute.xlu0 %3756 }
0x122c   :  { %v3777_v15 = vadd.f32 %v3776_v1, %v3769_v53  ;;  %v3770_v29 = vmul.f32 %v3752_v4, %v6687_v63  ;;  %v3771_v48 = vmul.f32 %v3757_v18, %v6695_v11  ;;  %v3981_v63 = vld [vmem:[#allocation17 + $0x58] sm:$0xff]  ;;  %v3980_v11 = vld [vmem:[#allocation17 + $0x50] sm:$0xff] }
0x122e   :  { %v3778_v34 = vadd.f32 %v3777_v15, %v3770_v29 }
0x122f   :  { %v3762_v13 = vpop.permute.xlu1 %3761  ;;  %v4087_v8 = vpop.permute.xlu0 %4086 }
0x1230   :  { %v3779_v16 = vadd.f32 %v3778_v34, %v3771_v48  ;;  %v3772_v47 = vmul.f32 %v3762_v13, %v6741_v57  ;;  %v3979_v57 = vld [vmem:[#allocation17 + $0x48] sm:$0xff] }
0x1232   :  { %v3780_v36 = vadd.f32 %v3779_v16, %v3772_v47 }
0x1234   :  { %4701 = vmatmul.mubr.f32.vlgmr.msra.gmra.mxu0 %v3780_v36 }
0x1235   :  { %4739 = vmatpush3.msra.mxu0 %v3985_v35  ;;  %4770 = vmatprep.mubr.msk.f32.mxu0 %vm5317_vm2, %v7020_v54 }
0x1236   :  { %4740 = vmatprep.subr.mxu0 %v7020_v54 }
0x1237   :  { %4741 = vmatpush3.msra.mxu0 %v3984_v60 }
0x1238   :  { %4742 = vmatprep.subr.mxu0 %v7020_v54 }
0x1239   :  { %4743 = vmatpush3.msra.mxu0 %v3983_v7 }
0x123a   :  { %4744 = vmatprep.subr.mxu0 %v7020_v54 }
0x123b   :  { %4745 = vmatpush3.msra.mxu0 %v3982_v12 }
0x123c   :  { %4746 = vmatprep.subr.mxu0 %v7020_v54 }
0x123d   :  { %4747 = vmatpush3.msra.mxu0 %v3981_v63 }
0x123e   :  { %4748 = vmatprep.subr.mxu0 %v7020_v54 }
0x123f   :  { %4749 = vmatpush3.msra.mxu0 %v3980_v11 }
0x1240   :  { %4750 = vmatprep.subr.mxu0 %v7020_v54 }
0x1241   :  { %4751 = vmatpush3.msra.mxu0 %v3979_v57 }
0x1242   :  { %4752 = vmatprep.subr.mxu0 %v7020_v54 }
0x1243   :  { %4753 = vmatpush3.msra.mxu0 %v3978_v33 }
0x1244   :  { %4754 = vmatprep.subr.mxu0 %v7020_v54 }
0x1245   :  { %4755 = vmatpush3.msra.mxu0 %v3977_v0 }
0x1246   :  { %4756 = vmatprep.subr.mxu0 %v7020_v54 }
0x1247   :  { %4757 = vmatpush3.msra.mxu0 %v3976_v27 }
0x1248   :  { %4758 = vmatprep.subr.mxu0 %v7020_v54 }
0x1249   :  { %4759 = vmatpush3.msra.mxu0 %v3975_v61 }
0x124a   :  { %4760 = vmatprep.subr.mxu0 %v7020_v54 }
0x124b   :  { %4761 = vmatpush3.msra.mxu0 %v3974_v19 }
0x124c   :  { %4762 = vmatprep.subr.mxu0 %v7020_v54 }
0x124d   :  { %4763 = vmatpush3.msra.mxu0 %v3973_v49 }
0x124e   :  { %4764 = vmatprep.subr.mxu0 %v7020_v54 }
0x124f   :  { %4765 = vmatpush3.msra.mxu0 %v3972_v23 }
0x1250   :  { %4766 = vmatprep.subr.mxu0 %v7020_v54 }
0x1251   :  { %4767 = vmatpush3.msra.mxu0 %v3971_v32 }
0x1252   :  { %4768 = vmatprep.subr.mxu0 %v7020_v54 }
0x1253   :  { %4769 = vmatpush3.msra.mxu0 %v3970_v43 }
0x12f4   :  { %v3870_v25 = vpop.f32.mrf.mxu0 }
0x12f5   :  { %v3871_v6 = vadd.f32 %v4424_v22, %v3870_v25 }
0x12f6   :  { %v4702_v30 = vpop.f32.mrf.mxu0 }
0x12f7   :  { %v3960_v44 = vadd.f32 %v6831_v3, %v3871_v6 }
0x12f9   :  { %v3968_v51 = vadd.f32 %v4425_v46, %v3960_v44 }
0x12fb   :  { %5087 = vtanh.f32 %v3968_v51 }
0x1308   :  { %v5088_v31 = vpop.eup %5087 }
0x1309   :  { %4771 = vmatmul.mubr.f32.vlgmr.msra.gmra.mxu0 %v5088_v31 }
0x13c9   :  { %v4059_v5 = vpop.f32.mrf.mxu0 }
0x13ca   :  { %v4060_v62 = vadd.f32 %v4426_v2, %v4059_v5 }
0x13cb   :  { %v4772_v10 = vpop.f32.mrf.mxu0 }
0x13cc   :  { %v4089_v54 = vsel %vm4081_vm14, %v4087_v8, %v4060_v62 }
0x13cd   :  { %4090 = vst [vmem:[%s6961_s20] sm:$0xff] %v4089_v54 }
0x13ce   :  { %4095 = vsyncpa [#allocation5], 1 }
0x13cf   :  { %4096 = vsyncpa [#allocation7], 1 }
0x13d0   :  { %4097 = vsyncpa [#allocation10], 1 }
0x13d1   :  { %4098 = vsyncpa [#allocation13], 1 }
0x13d2   :  { %4099 = vsyncpa [#allocation16], 1 }
0x13d3   :  { %4100 = vsyncpa [#allocation19], 1 }

</bundles_post_ra>
